<compile_context>
chip_gen: v6e
topology: v6e:2x2x1
jax: 0.10.0
libtpu: 0.0.40
codegen_flags: <defaults>
</compile_context>

<pallas_src>
import jax
import jax.numpy as jnp
from jax.experimental import pallas as pl
from jax.experimental.pallas import tpu as pltpu


# --------------------------- fused Pallas kernel ---------------------------

def _make_fused_kernel(layer_num_parts, H, W, K):
    """Builds the fused kernel.

    Ref order: mel(1,1,M*T), pk(M*T,H*W),
               then per conv layer: [w_part_0 .. w_part_{p-1}, bias],
               then out(1,1,H*W).
    """
    HW = H * W
    pad = K // 2

    def kernel(*refs):
        mel_ref, pk_ref = refs[0], refs[1]
        pos = 2
        layer_refs = []
        for nparts in layer_num_parts:
            wrefs = refs[pos:pos + nparts]
            bref = refs[pos + nparts]
            pos += nparts + 1
            layer_refs.append((wrefs, bref))
        o_ref = refs[pos]

        # Per-tap lane shift + zero-padding validity masks, shared by every
        # conv layer (computed once per grid step; a few VPU ops on 4 vregs).
        flat = jax.lax.broadcasted_iota(jnp.int32, (1, HW), 1)
        col = flat % W
        taps = []
        for kh in range(K):
            for kw in range(K):
                dh, dw = kh - pad, kw - pad
                valid = ((flat >= (-dh) * W) & (flat < (H - dh) * W) &
                         (col >= -dw) & (col < W - dw))
                # roll so that shifted[p] = x[p + dh*W + dw] (cyclic), then the
                # mask zeroes every position that fell off the H x W image.
                shift = (-(dh * W + dw)) % HW
                taps.append((shift, valid.astype(jnp.float32)))

        def conv_bn_relu(x_parts, wrefs, bref):
            """'same' conv + folded-BN bias + ReLU via K*K tap GEMMs.

            x_parts: list of f32 (Cin_i, H*W) activations (channel concat is
                     replaced by split-weight accumulation -> skips stay in VMEM).
            wrefs:   matching bf16 (K*K, Cout, Cin_i) weight refs.
            """
            acc = None
            for t, (shift, mask) in enumerate(taps):
                for xp, wref in zip(x_parts, wrefs):
                    xs = pltpu.roll(xp, shift, 1) * mask        # XLU roll + VPU mask
                    w_t = wref[t]                               # (Cout, Cin_i) bf16
                    if wref.shape[2] == 1:
                        # Cin == 1: a rank-1 GEMM is just a broadcast multiply on
                        # the VPU (round activation to bf16 to match MXU numerics).
                        xs_b = xs.astype(jnp.bfloat16).astype(jnp.float32)
                        c = w_t.astype(jnp.float32) * xs_b
                    else:
                        c = jnp.dot(w_t, xs.astype(jnp.bfloat16),
                                    preferred_element_type=jnp.float32)
                    acc = c if acc is None else acc + c
            return jnp.maximum(acc + bref[...], 0.0)

        # ---- PInv block: one lane-dense GEMM (1, M*T) @ (M*T, H*W) ----
        x = jnp.dot(mel_ref[0].astype(jnp.bfloat16), pk_ref[...],
                    preferred_element_type=jnp.float32)          # (1, H*W) f32

        # ---- encoder / bottleneck / decoder, all VMEM-resident ----
        n = len(layer_refs)
        skips = []
        for l in range(n // 2):
            x = conv_bn_relu([x], *layer_refs[l])
            skips.append(x)                                      # stays on-chip
        skips = skips[::-1]
        x = conv_bn_relu([x], *layer_refs[n // 2])
        for l in range(n // 2 + 1, n):
            skip = skips[l - (n // 2 + 1)]
            x = conv_bn_relu([x, skip], *layer_refs[l])          # split-weight "concat"

        # ---- per-batch max-normalisation, lane-dense (512-lane) store ----
        m = jnp.maximum(jnp.max(x, axis=(0, 1), keepdims=True), 1e-12)
        o_ref[0] = x * pl.reciprocal(m, approx=True)

    return kernel


# ----------------------------- wrappers ------------------------------------

def prepare_kernel_params(params, T):
    """One-time fold of the model constants into the kernel-ready layout."""
    pinv = params["pinv"]                       # (F, M) f32
    F_dim, M = pinv.shape
    H, W = F_dim, T
    convs = params["convs"]
    K = convs[0][2]
    n = len(convs)

    # PInv GEMM re-expressed so its output is already lane-flat:
    #   x_flat(1, H*W)[h*T + t] = sum_m pinv[h, m] * mel[m, t]
    #                           = (mel_flat(1, M*T) @ kron(pinv, I_T).T)[h*T + t]
    pk = jnp.kron(pinv, jnp.eye(T, dtype=pinv.dtype)).T.astype(jnp.bfloat16)

    out_ch = [w.shape[0] for (w, _, _) in convs]
    layers = []
    for l, (w, b, _) in enumerate(convs):
        cout, cin_total = w.shape[0], w.shape[1]
        if l > n // 2:
            # decoder layer: input is cat([x, skip]) -> split the weight columns
            c_prev = out_ch[l - 1]
            splits = [(0, c_prev), (c_prev, cin_total)]
        else:
            splits = [(0, cin_total)]
        parts = []
        for c0, c1 in splits:
            wp = jnp.transpose(w[:, c0:c1], (2, 3, 0, 1))        # (K, K, Cout, Cin_p)
            parts.append(wp.reshape(K * K, cout, c1 - c0).astype(jnp.bfloat16))
        layers.append((tuple(parts), b.reshape(cout, 1).astype(jnp.float32)))

    return {"pk": pk, "layers": tuple(layers),
            "H": H, "W": W, "K": K, "M": M, "T": T}


def pinvdae_forward(kp, melspec):
    """melspec: (B, 1, M, T) -> stft_hat: (B, 1, F, T); a single fused kernel."""
    B = melspec.shape[0]
    M, T, H, W, K = kp["M"], kp["T"], kp["H"], kp["W"], kp["K"]
    assert melspec.shape[1:] == (1, M, T), melspec.shape
    HW, MT = H * W, M * T
    layers = kp["layers"]
    layer_num_parts = tuple(len(parts) for (parts, _) in layers)

    mel_flat = melspec.reshape(B, 1, MT)              # free layout change in HBM

    inputs = [mel_flat, kp["pk"]]
    in_specs = [
        pl.BlockSpec((1, 1, MT), lambda b: (b, 0, 0)),   # per-batch, lane-dense
        pl.BlockSpec((MT, HW), lambda b: (0, 0)),        # grid-invariant -> DMA'd once
    ]
    for parts, bias in layers:
        for wp in parts:
            inputs.append(wp)
            in_specs.append(pl.BlockSpec(wp.shape, lambda b: (0, 0, 0)))
        inputs.append(bias)
        in_specs.append(pl.BlockSpec(bias.shape, lambda b: (0, 0)))

    out = pl.pallas_call(
        _make_fused_kernel(layer_num_parts, H, W, K),
        out_shape=jax.ShapeDtypeStruct((B, 1, HW), jnp.float32),
        grid_spec=pltpu.PrefetchScalarGridSpec(
            num_scalar_prefetch=0,
            grid=(B,),
            in_specs=in_specs,
            out_specs=pl.BlockSpec((1, 1, HW), lambda b: (b, 0, 0)),
        ),
        compiler_params=pltpu.CompilerParams(
            dimension_semantics=("parallel",)),     # 2 parallel steps -> both v7x TCs
    )(*inputs)
    return out.reshape(B, 1, H, W)


# ----------------------------- model setup ---------------------------------

def build_params(key, *, n_mels, n_stft, conv_channels, kernel_size):
    """Deterministic synthetic parameters mirroring PInvDAE.__init__."""
    out_channels = conv_channels + conv_channels[-1::-1] + [1]
    in_channels = out_channels[::-1]
    in_channels = (in_channels[:len(out_channels) // 2 + 1]
                   + [c * 2 for c in out_channels[len(out_channels) // 2:-1]])

    # synthetic triangular mel filterbank (n_mels, n_stft) and its pinv
    f = jnp.arange(n_stft, dtype=jnp.float32)
    centers = jnp.linspace(0.0, n_stft - 1, n_mels, dtype=jnp.float32)
    width = (n_stft - 1) / (n_mels - 1)
    melfb = jnp.maximum(0.0, 1.0 - jnp.abs(f[None, :] - centers[:, None]) / width)
    pinv_mat = jnp.linalg.pinv(melfb).astype(jnp.float32)       # (n_stft, n_mels)

    # Conv + BatchNorm(eval, fresh running stats) folded: scale = 1/sqrt(1+eps)
    eps = 1e-5
    bn_scale = 1.0 / jnp.sqrt(1.0 + eps)
    convs = []
    for cin, cout in zip(in_channels, out_channels):
        key, kw, kb = jax.random.split(key, 3)
        fan_in = cin * kernel_size * kernel_size
        w = jax.random.normal(kw, (cout, cin, kernel_size, kernel_size),
                              jnp.float32) * jnp.sqrt(2.0 / fan_in)
        b = jax.random.normal(kb, (cout,), jnp.float32) * 0.01
        convs.append((w * bn_scale, b * bn_scale, kernel_size))
    return {"pinv": pinv_mat, "convs": convs}


# ----------------------------- reference -----------------------------------

def reference_forward(params, melspec):
    """Pure-jnp reference with matching (bf16 inputs, f32 accumulate) numerics."""
    x = jnp.einsum("fm,bcmt->bcft",
                   params["pinv"].astype(jnp.bfloat16),
                   melspec.astype(jnp.bfloat16),
                   preferred_element_type=jnp.float32)
    convs = params["convs"]
    n = len(convs)

    def block(x, w, b):
        y = jax.lax.conv_general_dilated(
            x.astype(jnp.bfloat16), w.astype(jnp.bfloat16),
            window_strides=(1, 1), padding="SAME",
            dimension_numbers=("NCHW", "OIHW", "NCHW"),
            preferred_element_type=jnp.float32)
        return jnp.maximum(y + b[None, :, None, None], 0.0)

    skips = []
    for l in range(n // 2):
        x = block(x, convs[l][0], convs[l][1])
        skips.append(x)
    skips = skips[::-1]
    x = block(x, convs[n // 2][0], convs[n // 2][1])
    for l in range(n // 2 + 1, n):
        x = jnp.concatenate([x, skips[l - (n // 2 + 1)]], axis=1)
        x = block(x, convs[l][0], convs[l][1])
    xmax = jnp.maximum(jnp.max(x, axis=(1, 2, 3), keepdims=True), 1e-12)
    return x / xmax


# ----------------------------- main -----------------------------------------

if __name__ == "__main__":
    B, n_mels, n_stft, T = 2, 16, 32, 16
    conv_channels = [4, 8]          # out_channels [4,8,8,4,1], in [1,4,8,16,8]
    kernel_size = 3

    key = jax.random.PRNGKey(0)
    key, k_in = jax.random.split(key)
    # mel spectrogram in dB, normalized to [0, 1]
    melspec = jax.random.uniform(k_in, (B, 1, n_mels, T), jnp.float32)

    params = build_params(key, n_mels=n_mels, n_stft=n_stft,
                          conv_channels=conv_channels, kernel_size=kernel_size)
    kp = prepare_kernel_params(params, T)

    stft_hat = jax.block_until_ready(pinvdae_forward(kp, melspec))

    assert stft_hat.shape == (B, 1, n_stft, T), stft_hat.shape
    assert stft_hat.dtype == jnp.float32

    # numerical sanity check against a same-precision pure-JAX reference
    ref = reference_forward(params, melspec)
    err = float(jnp.max(jnp.abs(stft_hat - ref)))
    assert err < 5e-2, f"kernel/reference mismatch: max|err|={err}"
    print("KERNEL_OK")
</pallas_src>

<mosaic_0001>
module attributes {stable_mosaic.version = 11 : i64} {
  func.func @kernel(%arg0: i32, %arg1: memref<1x1x256xf32, #tpu.memory_space<vmem>>, %arg2: memref<256x512xbf16, #tpu.memory_space<vmem>>, %arg3: memref<9x4x1xbf16, #tpu.memory_space<vmem>>, %arg4: memref<4x1xf32, #tpu.memory_space<vmem>>, %arg5: memref<9x8x4xbf16, #tpu.memory_space<vmem>>, %arg6: memref<8x1xf32, #tpu.memory_space<vmem>>, %arg7: memref<9x8x8xbf16, #tpu.memory_space<vmem>>, %arg8: memref<8x1xf32, #tpu.memory_space<vmem>>, %arg9: memref<9x4x8xbf16, #tpu.memory_space<vmem>>, %arg10: memref<9x4x8xbf16, #tpu.memory_space<vmem>>, %arg11: memref<4x1xf32, #tpu.memory_space<vmem>>, %arg12: memref<9x1x4xbf16, #tpu.memory_space<vmem>>, %arg13: memref<9x1x4xbf16, #tpu.memory_space<vmem>>, %arg14: memref<1x1xf32, #tpu.memory_space<vmem>>, %arg15: memref<1x1x512xf32, #tpu.memory_space<vmem>>) attributes {dimension_semantics = [#tpu.dimension_semantics<parallel>], iteration_bounds = array<i64: 2>, scalar_prefetch = 0 : i64, scratch_operands = 0 : i64, tpu.core_type = #tpu.core_type<tc>, window_params = [{transform_indices = @transform_0, window_bounds = array<i64: 1, 1, 256>}, {pipeline_mode = #tpu.pipeline_mode<synchronous>, transform_indices = @transform_1, window_bounds = array<i64: 256, 512>}, {pipeline_mode = #tpu.pipeline_mode<synchronous>, transform_indices = @transform_2, window_bounds = array<i64: 9, 4, 1>}, {pipeline_mode = #tpu.pipeline_mode<synchronous>, transform_indices = @transform_3, window_bounds = array<i64: 4, 1>}, {pipeline_mode = #tpu.pipeline_mode<synchronous>, transform_indices = @transform_4, window_bounds = array<i64: 9, 8, 4>}, {pipeline_mode = #tpu.pipeline_mode<synchronous>, transform_indices = @transform_5, window_bounds = array<i64: 8, 1>}, {pipeline_mode = #tpu.pipeline_mode<synchronous>, transform_indices = @transform_6, window_bounds = array<i64: 9, 8, 8>}, {pipeline_mode = #tpu.pipeline_mode<synchronous>, transform_indices = @transform_7, window_bounds = array<i64: 8, 1>}, {pipeline_mode = #tpu.pipeline_mode<synchronous>, transform_indices = @transform_8, window_bounds = array<i64: 9, 4, 8>}, {pipeline_mode = #tpu.pipeline_mode<synchronous>, transform_indices = @transform_9, window_bounds = array<i64: 9, 4, 8>}, {pipeline_mode = #tpu.pipeline_mode<synchronous>, transform_indices = @transform_10, window_bounds = array<i64: 4, 1>}, {pipeline_mode = #tpu.pipeline_mode<synchronous>, transform_indices = @transform_11, window_bounds = array<i64: 9, 1, 4>}, {pipeline_mode = #tpu.pipeline_mode<synchronous>, transform_indices = @transform_12, window_bounds = array<i64: 9, 1, 4>}, {pipeline_mode = #tpu.pipeline_mode<synchronous>, transform_indices = @transform_13, window_bounds = array<i64: 1, 1>}, {transform_indices = @transform_14, window_bounds = array<i64: 1, 1, 512>}]} {
    %0 = tpu.iota {dimensions = array<i32: 1>} : vector<1x512xi32>
    %c16_i32 = arith.constant 16 : i32
    %c0_i32 = arith.constant 0 : i32
    %1 = arith.cmpi eq, %c16_i32, %c0_i32 : i32
    %c1_i32 = arith.constant 1 : i32
    %2 = arith.select %1, %c1_i32, %c16_i32 : i32
    %3 = vector.broadcast %2 : i32 to vector<1x512xi32>
    %4 = arith.remsi %0, %3 : vector<1x512xi32>
    %c0_i32_0 = arith.constant 0 : i32
    %5 = vector.broadcast %c0_i32_0 : i32 to vector<1x512xi32>
    %6 = arith.cmpi ne, %4, %5 : vector<1x512xi32>
    %c0_i32_1 = arith.constant 0 : i32
    %7 = vector.broadcast %c0_i32_1 : i32 to vector<1x512xi32>
    %8 = arith.cmpi slt, %4, %7 : vector<1x512xi32>
    %c0_i32_2 = arith.constant 0 : i32
    %9 = arith.cmpi slt, %2, %c0_i32_2 : i32
    %10 = vector.broadcast %9 : i1 to vector<1x512xi1>
    %11 = vector.broadcast %10 : vector<1x512xi1> to vector<1x512xi1>
    %12 = arith.xori %8, %11 : vector<1x512xi1>
    %13 = arith.andi %12, %6 : vector<1x512xi1>
    %14 = vector.broadcast %2 : i32 to vector<1x512xi32>
    %15 = arith.addi %4, %14 : vector<1x512xi32>
    %16 = arith.select %13, %15, %4 : vector<1x512xi1>, vector<1x512xi32>
    %c16_i32_3 = arith.constant 16 : i32
    %17 = vector.broadcast %c16_i32_3 : i32 to vector<1x512xi32>
    %18 = arith.cmpi sge, %0, %17 : vector<1x512xi32>
    %c528_i32 = arith.constant 528 : i32
    %19 = vector.broadcast %c528_i32 : i32 to vector<1x512xi32>
    %20 = arith.cmpi slt, %0, %19 : vector<1x512xi32>
    %21 = arith.andi %18, %20 : vector<1x512xi1>
    %c1_i32_4 = arith.constant 1 : i32
    %22 = vector.broadcast %c1_i32_4 : i32 to vector<1x512xi32>
    %23 = arith.cmpi sge, %16, %22 : vector<1x512xi32>
    %24 = arith.andi %21, %23 : vector<1x512xi1>
    %c17_i32 = arith.constant 17 : i32
    %25 = vector.broadcast %c17_i32 : i32 to vector<1x512xi32>
    %26 = arith.cmpi slt, %16, %25 : vector<1x512xi32>
    %27 = arith.andi %24, %26 : vector<1x512xi1>
    %28 = arith.extui %27 : vector<1x512xi1> to vector<1x512xi32>
    %29 = arith.sitofp %28 : vector<1x512xi32> to vector<1x512xf32>
    %c16_i32_5 = arith.constant 16 : i32
    %30 = vector.broadcast %c16_i32_5 : i32 to vector<1x512xi32>
    %31 = arith.cmpi sge, %0, %30 : vector<1x512xi32>
    %c528_i32_6 = arith.constant 528 : i32
    %32 = vector.broadcast %c528_i32_6 : i32 to vector<1x512xi32>
    %33 = arith.cmpi slt, %0, %32 : vector<1x512xi32>
    %34 = arith.andi %31, %33 : vector<1x512xi1>
    %c0_i32_7 = arith.constant 0 : i32
    %35 = vector.broadcast %c0_i32_7 : i32 to vector<1x512xi32>
    %36 = arith.cmpi sge, %16, %35 : vector<1x512xi32>
    %37 = arith.andi %34, %36 : vector<1x512xi1>
    %c16_i32_8 = arith.constant 16 : i32
    %38 = vector.broadcast %c16_i32_8 : i32 to vector<1x512xi32>
    %39 = arith.cmpi slt, %16, %38 : vector<1x512xi32>
    %40 = arith.andi %37, %39 : vector<1x512xi1>
    %41 = arith.extui %40 : vector<1x512xi1> to vector<1x512xi32>
    %42 = arith.sitofp %41 : vector<1x512xi32> to vector<1x512xf32>
    %c16_i32_9 = arith.constant 16 : i32
    %43 = vector.broadcast %c16_i32_9 : i32 to vector<1x512xi32>
    %44 = arith.cmpi sge, %0, %43 : vector<1x512xi32>
    %c528_i32_10 = arith.constant 528 : i32
    %45 = vector.broadcast %c528_i32_10 : i32 to vector<1x512xi32>
    %46 = arith.cmpi slt, %0, %45 : vector<1x512xi32>
    %47 = arith.andi %44, %46 : vector<1x512xi1>
    %c-1_i32 = arith.constant -1 : i32
    %48 = vector.broadcast %c-1_i32 : i32 to vector<1x512xi32>
    %49 = arith.cmpi sge, %16, %48 : vector<1x512xi32>
    %50 = arith.andi %47, %49 : vector<1x512xi1>
    %c15_i32 = arith.constant 15 : i32
    %51 = vector.broadcast %c15_i32 : i32 to vector<1x512xi32>
    %52 = arith.cmpi slt, %16, %51 : vector<1x512xi32>
    %53 = arith.andi %50, %52 : vector<1x512xi1>
    %54 = arith.extui %53 : vector<1x512xi1> to vector<1x512xi32>
    %55 = arith.sitofp %54 : vector<1x512xi32> to vector<1x512xf32>
    %c0_i32_11 = arith.constant 0 : i32
    %56 = vector.broadcast %c0_i32_11 : i32 to vector<1x512xi32>
    %57 = arith.cmpi sge, %0, %56 : vector<1x512xi32>
    %c512_i32 = arith.constant 512 : i32
    %58 = vector.broadcast %c512_i32 : i32 to vector<1x512xi32>
    %59 = arith.cmpi slt, %0, %58 : vector<1x512xi32>
    %60 = arith.andi %57, %59 : vector<1x512xi1>
    %c1_i32_12 = arith.constant 1 : i32
    %61 = vector.broadcast %c1_i32_12 : i32 to vector<1x512xi32>
    %62 = arith.cmpi sge, %16, %61 : vector<1x512xi32>
    %63 = arith.andi %60, %62 : vector<1x512xi1>
    %c17_i32_13 = arith.constant 17 : i32
    %64 = vector.broadcast %c17_i32_13 : i32 to vector<1x512xi32>
    %65 = arith.cmpi slt, %16, %64 : vector<1x512xi32>
    %66 = arith.andi %63, %65 : vector<1x512xi1>
    %67 = arith.extui %66 : vector<1x512xi1> to vector<1x512xi32>
    %68 = arith.sitofp %67 : vector<1x512xi32> to vector<1x512xf32>
    %c0_i32_14 = arith.constant 0 : i32
    %69 = vector.broadcast %c0_i32_14 : i32 to vector<1x512xi32>
    %70 = arith.cmpi sge, %0, %69 : vector<1x512xi32>
    %c512_i32_15 = arith.constant 512 : i32
    %71 = vector.broadcast %c512_i32_15 : i32 to vector<1x512xi32>
    %72 = arith.cmpi slt, %0, %71 : vector<1x512xi32>
    %73 = arith.andi %70, %72 : vector<1x512xi1>
    %c0_i32_16 = arith.constant 0 : i32
    %74 = vector.broadcast %c0_i32_16 : i32 to vector<1x512xi32>
    %75 = arith.cmpi sge, %16, %74 : vector<1x512xi32>
    %76 = arith.andi %73, %75 : vector<1x512xi1>
    %c16_i32_17 = arith.constant 16 : i32
    %77 = vector.broadcast %c16_i32_17 : i32 to vector<1x512xi32>
    %78 = arith.cmpi slt, %16, %77 : vector<1x512xi32>
    %79 = arith.andi %76, %78 : vector<1x512xi1>
    %80 = arith.extui %79 : vector<1x512xi1> to vector<1x512xi32>
    %81 = arith.sitofp %80 : vector<1x512xi32> to vector<1x512xf32>
    %c0_i32_18 = arith.constant 0 : i32
    %82 = vector.broadcast %c0_i32_18 : i32 to vector<1x512xi32>
    %83 = arith.cmpi sge, %0, %82 : vector<1x512xi32>
    %c512_i32_19 = arith.constant 512 : i32
    %84 = vector.broadcast %c512_i32_19 : i32 to vector<1x512xi32>
    %85 = arith.cmpi slt, %0, %84 : vector<1x512xi32>
    %86 = arith.andi %83, %85 : vector<1x512xi1>
    %c-1_i32_20 = arith.constant -1 : i32
    %87 = vector.broadcast %c-1_i32_20 : i32 to vector<1x512xi32>
    %88 = arith.cmpi sge, %16, %87 : vector<1x512xi32>
    %89 = arith.andi %86, %88 : vector<1x512xi1>
    %c15_i32_21 = arith.constant 15 : i32
    %90 = vector.broadcast %c15_i32_21 : i32 to vector<1x512xi32>
    %91 = arith.cmpi slt, %16, %90 : vector<1x512xi32>
    %92 = arith.andi %89, %91 : vector<1x512xi1>
    %93 = arith.extui %92 : vector<1x512xi1> to vector<1x512xi32>
    %94 = arith.sitofp %93 : vector<1x512xi32> to vector<1x512xf32>
    %c-16_i32 = arith.constant -16 : i32
    %95 = vector.broadcast %c-16_i32 : i32 to vector<1x512xi32>
    %96 = arith.cmpi sge, %0, %95 : vector<1x512xi32>
    %c496_i32 = arith.constant 496 : i32
    %97 = vector.broadcast %c496_i32 : i32 to vector<1x512xi32>
    %98 = arith.cmpi slt, %0, %97 : vector<1x512xi32>
    %99 = arith.andi %96, %98 : vector<1x512xi1>
    %c1_i32_22 = arith.constant 1 : i32
    %100 = vector.broadcast %c1_i32_22 : i32 to vector<1x512xi32>
    %101 = arith.cmpi sge, %16, %100 : vector<1x512xi32>
    %102 = arith.andi %99, %101 : vector<1x512xi1>
    %c17_i32_23 = arith.constant 17 : i32
    %103 = vector.broadcast %c17_i32_23 : i32 to vector<1x512xi32>
    %104 = arith.cmpi slt, %16, %103 : vector<1x512xi32>
    %105 = arith.andi %102, %104 : vector<1x512xi1>
    %106 = arith.extui %105 : vector<1x512xi1> to vector<1x512xi32>
    %107 = arith.sitofp %106 : vector<1x512xi32> to vector<1x512xf32>
    %c-16_i32_24 = arith.constant -16 : i32
    %108 = vector.broadcast %c-16_i32_24 : i32 to vector<1x512xi32>
    %109 = arith.cmpi sge, %0, %108 : vector<1x512xi32>
    %c496_i32_25 = arith.constant 496 : i32
    %110 = vector.broadcast %c496_i32_25 : i32 to vector<1x512xi32>
    %111 = arith.cmpi slt, %0, %110 : vector<1x512xi32>
    %112 = arith.andi %109, %111 : vector<1x512xi1>
    %c0_i32_26 = arith.constant 0 : i32
    %113 = vector.broadcast %c0_i32_26 : i32 to vector<1x512xi32>
    %114 = arith.cmpi sge, %16, %113 : vector<1x512xi32>
    %115 = arith.andi %112, %114 : vector<1x512xi1>
    %c16_i32_27 = arith.constant 16 : i32
    %116 = vector.broadcast %c16_i32_27 : i32 to vector<1x512xi32>
    %117 = arith.cmpi slt, %16, %116 : vector<1x512xi32>
    %118 = arith.andi %115, %117 : vector<1x512xi1>
    %119 = arith.extui %118 : vector<1x512xi1> to vector<1x512xi32>
    %120 = arith.sitofp %119 : vector<1x512xi32> to vector<1x512xf32>
    %c-16_i32_28 = arith.constant -16 : i32
    %121 = vector.broadcast %c-16_i32_28 : i32 to vector<1x512xi32>
    %122 = arith.cmpi sge, %0, %121 : vector<1x512xi32>
    %c496_i32_29 = arith.constant 496 : i32
    %123 = vector.broadcast %c496_i32_29 : i32 to vector<1x512xi32>
    %124 = arith.cmpi slt, %0, %123 : vector<1x512xi32>
    %125 = arith.andi %122, %124 : vector<1x512xi1>
    %c-1_i32_30 = arith.constant -1 : i32
    %126 = vector.broadcast %c-1_i32_30 : i32 to vector<1x512xi32>
    %127 = arith.cmpi sge, %16, %126 : vector<1x512xi32>
    %128 = arith.andi %125, %127 : vector<1x512xi1>
    %c15_i32_31 = arith.constant 15 : i32
    %129 = vector.broadcast %c15_i32_31 : i32 to vector<1x512xi32>
    %130 = arith.cmpi slt, %16, %129 : vector<1x512xi32>
    %131 = arith.andi %128, %130 : vector<1x512xi1>
    %132 = arith.extui %131 : vector<1x512xi1> to vector<1x512xi32>
    %133 = arith.sitofp %132 : vector<1x512xi32> to vector<1x512xf32>
    %c0 = arith.constant 0 : index
    %c0_32 = arith.constant 0 : index
    %c0_33 = arith.constant 0 : index
    %134 = vector.load %arg1[%c0, %c0_32, %c0_33] : memref<1x1x256xf32, #tpu.memory_space<vmem>>, vector<1x1x256xf32>
    %135 = vector.shape_cast %134 : vector<1x1x256xf32> to vector<1x256xf32>
    %136 = arith.truncf %135 : vector<1x256xf32> to vector<1x256xbf16>
    %c0_34 = arith.constant 0 : index
    %c0_35 = arith.constant 0 : index
    %137 = vector.load %arg2[%c0_34, %c0_35] : memref<256x512xbf16, #tpu.memory_space<vmem>>, vector<256x512xbf16>
    %cst = arith.constant dense<0.000000e+00> : vector<1x512xf32>
    %138 = tpu.matmul %136, %137, %cst {dimension_numbers = #tpu.dot_dimension_numbers<[1], [0], [0], [1], [0, 0, 1, 1], [], []>} : vector<1x256xbf16>, vector<256x512xbf16>, vector<1x512xf32> -> vector<1x512xf32>
    %c17_i32_36 = arith.constant 17 : i32
    %139 = tpu.dynamic_rotate %138 by %c17_i32_36 dim 1 : vector<1x512xf32>, i32 -> vector<1x512xf32>
    %140 = arith.mulf %139, %29 : vector<1x512xf32>
    %c0_37 = arith.constant 0 : index
    %c0_38 = arith.constant 0 : index
    %c0_39 = arith.constant 0 : index
    %141 = vector.load %arg3[%c0_37, %c0_38, %c0_39] : memref<9x4x1xbf16, #tpu.memory_space<vmem>>, vector<1x4x1xbf16>
    %142 = vector.shape_cast %141 : vector<1x4x1xbf16> to vector<4x1xbf16>
    %143 = arith.truncf %140 : vector<1x512xf32> to vector<1x512xbf16>
    %144 = arith.extf %143 : vector<1x512xbf16> to vector<1x512xf32>
    %145 = arith.extf %142 : vector<4x1xbf16> to vector<4x1xf32>
    %146 = vector.broadcast %145 : vector<4x1xf32> to vector<4x512xf32>
    %147 = vector.broadcast %144 : vector<1x512xf32> to vector<4x512xf32>
    %148 = arith.mulf %146, %147 : vector<4x512xf32>
    %c16_i32_40 = arith.constant 16 : i32
    %149 = tpu.dynamic_rotate %138 by %c16_i32_40 dim 1 : vector<1x512xf32>, i32 -> vector<1x512xf32>
    %150 = arith.mulf %149, %42 : vector<1x512xf32>
    %c1 = arith.constant 1 : index
    %c0_41 = arith.constant 0 : index
    %c0_42 = arith.constant 0 : index
    %151 = vector.load %arg3[%c1, %c0_41, %c0_42] : memref<9x4x1xbf16, #tpu.memory_space<vmem>>, vector<1x4x1xbf16>
    %152 = vector.shape_cast %151 : vector<1x4x1xbf16> to vector<4x1xbf16>
    %153 = arith.truncf %150 : vector<1x512xf32> to vector<1x512xbf16>
    %154 = arith.extf %153 : vector<1x512xbf16> to vector<1x512xf32>
    %155 = arith.extf %152 : vector<4x1xbf16> to vector<4x1xf32>
    %156 = vector.broadcast %155 : vector<4x1xf32> to vector<4x512xf32>
    %157 = vector.broadcast %154 : vector<1x512xf32> to vector<4x512xf32>
    %158 = arith.mulf %156, %157 : vector<4x512xf32>
    %159 = arith.addf %148, %158 : vector<4x512xf32>
    %c15_i32_43 = arith.constant 15 : i32
    %160 = tpu.dynamic_rotate %138 by %c15_i32_43 dim 1 : vector<1x512xf32>, i32 -> vector<1x512xf32>
    %161 = arith.mulf %160, %55 : vector<1x512xf32>
    %c2 = arith.constant 2 : index
    %c0_44 = arith.constant 0 : index
    %c0_45 = arith.constant 0 : index
    %162 = vector.load %arg3[%c2, %c0_44, %c0_45] : memref<9x4x1xbf16, #tpu.memory_space<vmem>>, vector<1x4x1xbf16>
    %163 = vector.shape_cast %162 : vector<1x4x1xbf16> to vector<4x1xbf16>
    %164 = arith.truncf %161 : vector<1x512xf32> to vector<1x512xbf16>
    %165 = arith.extf %164 : vector<1x512xbf16> to vector<1x512xf32>
    %166 = arith.extf %163 : vector<4x1xbf16> to vector<4x1xf32>
    %167 = vector.broadcast %166 : vector<4x1xf32> to vector<4x512xf32>
    %168 = vector.broadcast %165 : vector<1x512xf32> to vector<4x512xf32>
    %169 = arith.mulf %167, %168 : vector<4x512xf32>
    %170 = arith.addf %159, %169 : vector<4x512xf32>
    %c1_i32_46 = arith.constant 1 : i32
    %171 = tpu.dynamic_rotate %138 by %c1_i32_46 dim 1 : vector<1x512xf32>, i32 -> vector<1x512xf32>
    %172 = arith.mulf %171, %68 : vector<1x512xf32>
    %c3 = arith.constant 3 : index
    %c0_47 = arith.constant 0 : index
    %c0_48 = arith.constant 0 : index
    %173 = vector.load %arg3[%c3, %c0_47, %c0_48] : memref<9x4x1xbf16, #tpu.memory_space<vmem>>, vector<1x4x1xbf16>
    %174 = vector.shape_cast %173 : vector<1x4x1xbf16> to vector<4x1xbf16>
    %175 = arith.truncf %172 : vector<1x512xf32> to vector<1x512xbf16>
    %176 = arith.extf %175 : vector<1x512xbf16> to vector<1x512xf32>
    %177 = arith.extf %174 : vector<4x1xbf16> to vector<4x1xf32>
    %178 = vector.broadcast %177 : vector<4x1xf32> to vector<4x512xf32>
    %179 = vector.broadcast %176 : vector<1x512xf32> to vector<4x512xf32>
    %180 = arith.mulf %178, %179 : vector<4x512xf32>
    %181 = arith.addf %170, %180 : vector<4x512xf32>
    %c0_i32_49 = arith.constant 0 : i32
    %182 = tpu.dynamic_rotate %138 by %c0_i32_49 dim 1 : vector<1x512xf32>, i32 -> vector<1x512xf32>
    %183 = arith.mulf %182, %81 : vector<1x512xf32>
    %c4 = arith.constant 4 : index
    %c0_50 = arith.constant 0 : index
    %c0_51 = arith.constant 0 : index
    %184 = vector.load %arg3[%c4, %c0_50, %c0_51] : memref<9x4x1xbf16, #tpu.memory_space<vmem>>, vector<1x4x1xbf16>
    %185 = vector.shape_cast %184 : vector<1x4x1xbf16> to vector<4x1xbf16>
    %186 = arith.truncf %183 : vector<1x512xf32> to vector<1x512xbf16>
    %187 = arith.extf %186 : vector<1x512xbf16> to vector<1x512xf32>
    %188 = arith.extf %185 : vector<4x1xbf16> to vector<4x1xf32>
    %189 = vector.broadcast %188 : vector<4x1xf32> to vector<4x512xf32>
    %190 = vector.broadcast %187 : vector<1x512xf32> to vector<4x512xf32>
    %191 = arith.mulf %189, %190 : vector<4x512xf32>
    %192 = arith.addf %181, %191 : vector<4x512xf32>
    %c511_i32 = arith.constant 511 : i32
    %193 = tpu.dynamic_rotate %138 by %c511_i32 dim 1 : vector<1x512xf32>, i32 -> vector<1x512xf32>
    %194 = arith.mulf %193, %94 : vector<1x512xf32>
    %c5 = arith.constant 5 : index
    %c0_52 = arith.constant 0 : index
    %c0_53 = arith.constant 0 : index
    %195 = vector.load %arg3[%c5, %c0_52, %c0_53] : memref<9x4x1xbf16, #tpu.memory_space<vmem>>, vector<1x4x1xbf16>
    %196 = vector.shape_cast %195 : vector<1x4x1xbf16> to vector<4x1xbf16>
    %197 = arith.truncf %194 : vector<1x512xf32> to vector<1x512xbf16>
    %198 = arith.extf %197 : vector<1x512xbf16> to vector<1x512xf32>
    %199 = arith.extf %196 : vector<4x1xbf16> to vector<4x1xf32>
    %200 = vector.broadcast %199 : vector<4x1xf32> to vector<4x512xf32>
    %201 = vector.broadcast %198 : vector<1x512xf32> to vector<4x512xf32>
    %202 = arith.mulf %200, %201 : vector<4x512xf32>
    %203 = arith.addf %192, %202 : vector<4x512xf32>
    %c497_i32 = arith.constant 497 : i32
    %204 = tpu.dynamic_rotate %138 by %c497_i32 dim 1 : vector<1x512xf32>, i32 -> vector<1x512xf32>
    %205 = arith.mulf %204, %107 : vector<1x512xf32>
    %c6 = arith.constant 6 : index
    %c0_54 = arith.constant 0 : index
    %c0_55 = arith.constant 0 : index
    %206 = vector.load %arg3[%c6, %c0_54, %c0_55] : memref<9x4x1xbf16, #tpu.memory_space<vmem>>, vector<1x4x1xbf16>
    %207 = vector.shape_cast %206 : vector<1x4x1xbf16> to vector<4x1xbf16>
    %208 = arith.truncf %205 : vector<1x512xf32> to vector<1x512xbf16>
    %209 = arith.extf %208 : vector<1x512xbf16> to vector<1x512xf32>
    %210 = arith.extf %207 : vector<4x1xbf16> to vector<4x1xf32>
    %211 = vector.broadcast %210 : vector<4x1xf32> to vector<4x512xf32>
    %212 = vector.broadcast %209 : vector<1x512xf32> to vector<4x512xf32>
    %213 = arith.mulf %211, %212 : vector<4x512xf32>
    %214 = arith.addf %203, %213 : vector<4x512xf32>
    %c496_i32_56 = arith.constant 496 : i32
    %215 = tpu.dynamic_rotate %138 by %c496_i32_56 dim 1 : vector<1x512xf32>, i32 -> vector<1x512xf32>
    %216 = arith.mulf %215, %120 : vector<1x512xf32>
    %c7 = arith.constant 7 : index
    %c0_57 = arith.constant 0 : index
    %c0_58 = arith.constant 0 : index
    %217 = vector.load %arg3[%c7, %c0_57, %c0_58] : memref<9x4x1xbf16, #tpu.memory_space<vmem>>, vector<1x4x1xbf16>
    %218 = vector.shape_cast %217 : vector<1x4x1xbf16> to vector<4x1xbf16>
    %219 = arith.truncf %216 : vector<1x512xf32> to vector<1x512xbf16>
    %220 = arith.extf %219 : vector<1x512xbf16> to vector<1x512xf32>
    %221 = arith.extf %218 : vector<4x1xbf16> to vector<4x1xf32>
    %222 = vector.broadcast %221 : vector<4x1xf32> to vector<4x512xf32>
    %223 = vector.broadcast %220 : vector<1x512xf32> to vector<4x512xf32>
    %224 = arith.mulf %222, %223 : vector<4x512xf32>
    %225 = arith.addf %214, %224 : vector<4x512xf32>
    %c495_i32 = arith.constant 495 : i32
    %226 = tpu.dynamic_rotate %138 by %c495_i32 dim 1 : vector<1x512xf32>, i32 -> vector<1x512xf32>
    %227 = arith.mulf %226, %133 : vector<1x512xf32>
    %c8 = arith.constant 8 : index
    %c0_59 = arith.constant 0 : index
    %c0_60 = arith.constant 0 : index
    %228 = vector.load %arg3[%c8, %c0_59, %c0_60] : memref<9x4x1xbf16, #tpu.memory_space<vmem>>, vector<1x4x1xbf16>
    %229 = vector.shape_cast %228 : vector<1x4x1xbf16> to vector<4x1xbf16>
    %230 = arith.truncf %227 : vector<1x512xf32> to vector<1x512xbf16>
    %231 = arith.extf %230 : vector<1x512xbf16> to vector<1x512xf32>
    %232 = arith.extf %229 : vector<4x1xbf16> to vector<4x1xf32>
    %233 = vector.broadcast %232 : vector<4x1xf32> to vector<4x512xf32>
    %234 = vector.broadcast %231 : vector<1x512xf32> to vector<4x512xf32>
    %235 = arith.mulf %233, %234 : vector<4x512xf32>
    %236 = arith.addf %225, %235 : vector<4x512xf32>
    %c0_61 = arith.constant 0 : index
    %c0_62 = arith.constant 0 : index
    %237 = vector.load %arg4[%c0_61, %c0_62] : memref<4x1xf32, #tpu.memory_space<vmem>>, vector<4x1xf32>
    %238 = vector.broadcast %237 : vector<4x1xf32> to vector<4x512xf32>
    %239 = arith.addf %236, %238 : vector<4x512xf32>
    %cst_63 = arith.constant 0.000000e+00 : f32
    %240 = vector.broadcast %cst_63 : f32 to vector<4x512xf32>
    %241 = arith.maximumf %239, %240 : vector<4x512xf32>
    %c17_i32_64 = arith.constant 17 : i32
    %242 = tpu.dynamic_rotate %241 by %c17_i32_64 dim 1 : vector<4x512xf32>, i32 -> vector<4x512xf32>
    %243 = vector.broadcast %29 : vector<1x512xf32> to vector<4x512xf32>
    %244 = arith.mulf %242, %243 : vector<4x512xf32>
    %c0_65 = arith.constant 0 : index
    %c0_66 = arith.constant 0 : index
    %c0_67 = arith.constant 0 : index
    %245 = vector.load %arg5[%c0_65, %c0_66, %c0_67] : memref<9x8x4xbf16, #tpu.memory_space<vmem>>, vector<1x8x4xbf16>
    %246 = vector.shape_cast %245 : vector<1x8x4xbf16> to vector<8x4xbf16>
    %247 = arith.truncf %244 : vector<4x512xf32> to vector<4x512xbf16>
    %cst_68 = arith.constant dense<0.000000e+00> : vector<8x512xf32>
    %248 = tpu.matmul %246, %247, %cst_68 {dimension_numbers = #tpu.dot_dimension_numbers<[1], [0], [0], [1], [0, 0, 1, 1], [], []>} : vector<8x4xbf16>, vector<4x512xbf16>, vector<8x512xf32> -> vector<8x512xf32>
    %c16_i32_69 = arith.constant 16 : i32
    %249 = tpu.dynamic_rotate %241 by %c16_i32_69 dim 1 : vector<4x512xf32>, i32 -> vector<4x512xf32>
    %250 = vector.broadcast %42 : vector<1x512xf32> to vector<4x512xf32>
    %251 = arith.mulf %249, %250 : vector<4x512xf32>
    %c1_70 = arith.constant 1 : index
    %c0_71 = arith.constant 0 : index
    %c0_72 = arith.constant 0 : index
    %252 = vector.load %arg5[%c1_70, %c0_71, %c0_72] : memref<9x8x4xbf16, #tpu.memory_space<vmem>>, vector<1x8x4xbf16>
    %253 = vector.shape_cast %252 : vector<1x8x4xbf16> to vector<8x4xbf16>
    %254 = arith.truncf %251 : vector<4x512xf32> to vector<4x512xbf16>
    %cst_73 = arith.constant dense<0.000000e+00> : vector<8x512xf32>
    %255 = tpu.matmul %253, %254, %cst_73 {dimension_numbers = #tpu.dot_dimension_numbers<[1], [0], [0], [1], [0, 0, 1, 1], [], []>} : vector<8x4xbf16>, vector<4x512xbf16>, vector<8x512xf32> -> vector<8x512xf32>
    %256 = arith.addf %248, %255 : vector<8x512xf32>
    %c15_i32_74 = arith.constant 15 : i32
    %257 = tpu.dynamic_rotate %241 by %c15_i32_74 dim 1 : vector<4x512xf32>, i32 -> vector<4x512xf32>
    %258 = vector.broadcast %55 : vector<1x512xf32> to vector<4x512xf32>
    %259 = arith.mulf %257, %258 : vector<4x512xf32>
    %c2_75 = arith.constant 2 : index
    %c0_76 = arith.constant 0 : index
    %c0_77 = arith.constant 0 : index
    %260 = vector.load %arg5[%c2_75, %c0_76, %c0_77] : memref<9x8x4xbf16, #tpu.memory_space<vmem>>, vector<1x8x4xbf16>
    %261 = vector.shape_cast %260 : vector<1x8x4xbf16> to vector<8x4xbf16>
    %262 = arith.truncf %259 : vector<4x512xf32> to vector<4x512xbf16>
    %cst_78 = arith.constant dense<0.000000e+00> : vector<8x512xf32>
    %263 = tpu.matmul %261, %262, %cst_78 {dimension_numbers = #tpu.dot_dimension_numbers<[1], [0], [0], [1], [0, 0, 1, 1], [], []>} : vector<8x4xbf16>, vector<4x512xbf16>, vector<8x512xf32> -> vector<8x512xf32>
    %264 = arith.addf %256, %263 : vector<8x512xf32>
    %c1_i32_79 = arith.constant 1 : i32
    %265 = tpu.dynamic_rotate %241 by %c1_i32_79 dim 1 : vector<4x512xf32>, i32 -> vector<4x512xf32>
    %266 = vector.broadcast %68 : vector<1x512xf32> to vector<4x512xf32>
    %267 = arith.mulf %265, %266 : vector<4x512xf32>
    %c3_80 = arith.constant 3 : index
    %c0_81 = arith.constant 0 : index
    %c0_82 = arith.constant 0 : index
    %268 = vector.load %arg5[%c3_80, %c0_81, %c0_82] : memref<9x8x4xbf16, #tpu.memory_space<vmem>>, vector<1x8x4xbf16>
    %269 = vector.shape_cast %268 : vector<1x8x4xbf16> to vector<8x4xbf16>
    %270 = arith.truncf %267 : vector<4x512xf32> to vector<4x512xbf16>
    %cst_83 = arith.constant dense<0.000000e+00> : vector<8x512xf32>
    %271 = tpu.matmul %269, %270, %cst_83 {dimension_numbers = #tpu.dot_dimension_numbers<[1], [0], [0], [1], [0, 0, 1, 1], [], []>} : vector<8x4xbf16>, vector<4x512xbf16>, vector<8x512xf32> -> vector<8x512xf32>
    %272 = arith.addf %264, %271 : vector<8x512xf32>
    %c0_i32_84 = arith.constant 0 : i32
    %273 = tpu.dynamic_rotate %241 by %c0_i32_84 dim 1 : vector<4x512xf32>, i32 -> vector<4x512xf32>
    %274 = vector.broadcast %81 : vector<1x512xf32> to vector<4x512xf32>
    %275 = arith.mulf %273, %274 : vector<4x512xf32>
    %c4_85 = arith.constant 4 : index
    %c0_86 = arith.constant 0 : index
    %c0_87 = arith.constant 0 : index
    %276 = vector.load %arg5[%c4_85, %c0_86, %c0_87] : memref<9x8x4xbf16, #tpu.memory_space<vmem>>, vector<1x8x4xbf16>
    %277 = vector.shape_cast %276 : vector<1x8x4xbf16> to vector<8x4xbf16>
    %278 = arith.truncf %275 : vector<4x512xf32> to vector<4x512xbf16>
    %cst_88 = arith.constant dense<0.000000e+00> : vector<8x512xf32>
    %279 = tpu.matmul %277, %278, %cst_88 {dimension_numbers = #tpu.dot_dimension_numbers<[1], [0], [0], [1], [0, 0, 1, 1], [], []>} : vector<8x4xbf16>, vector<4x512xbf16>, vector<8x512xf32> -> vector<8x512xf32>
    %280 = arith.addf %272, %279 : vector<8x512xf32>
    %c511_i32_89 = arith.constant 511 : i32
    %281 = tpu.dynamic_rotate %241 by %c511_i32_89 dim 1 : vector<4x512xf32>, i32 -> vector<4x512xf32>
    %282 = vector.broadcast %94 : vector<1x512xf32> to vector<4x512xf32>
    %283 = arith.mulf %281, %282 : vector<4x512xf32>
    %c5_90 = arith.constant 5 : index
    %c0_91 = arith.constant 0 : index
    %c0_92 = arith.constant 0 : index
    %284 = vector.load %arg5[%c5_90, %c0_91, %c0_92] : memref<9x8x4xbf16, #tpu.memory_space<vmem>>, vector<1x8x4xbf16>
    %285 = vector.shape_cast %284 : vector<1x8x4xbf16> to vector<8x4xbf16>
    %286 = arith.truncf %283 : vector<4x512xf32> to vector<4x512xbf16>
    %cst_93 = arith.constant dense<0.000000e+00> : vector<8x512xf32>
    %287 = tpu.matmul %285, %286, %cst_93 {dimension_numbers = #tpu.dot_dimension_numbers<[1], [0], [0], [1], [0, 0, 1, 1], [], []>} : vector<8x4xbf16>, vector<4x512xbf16>, vector<8x512xf32> -> vector<8x512xf32>
    %288 = arith.addf %280, %287 : vector<8x512xf32>
    %c497_i32_94 = arith.constant 497 : i32
    %289 = tpu.dynamic_rotate %241 by %c497_i32_94 dim 1 : vector<4x512xf32>, i32 -> vector<4x512xf32>
    %290 = vector.broadcast %107 : vector<1x512xf32> to vector<4x512xf32>
    %291 = arith.mulf %289, %290 : vector<4x512xf32>
    %c6_95 = arith.constant 6 : index
    %c0_96 = arith.constant 0 : index
    %c0_97 = arith.constant 0 : index
    %292 = vector.load %arg5[%c6_95, %c0_96, %c0_97] : memref<9x8x4xbf16, #tpu.memory_space<vmem>>, vector<1x8x4xbf16>
    %293 = vector.shape_cast %292 : vector<1x8x4xbf16> to vector<8x4xbf16>
    %294 = arith.truncf %291 : vector<4x512xf32> to vector<4x512xbf16>
    %cst_98 = arith.constant dense<0.000000e+00> : vector<8x512xf32>
    %295 = tpu.matmul %293, %294, %cst_98 {dimension_numbers = #tpu.dot_dimension_numbers<[1], [0], [0], [1], [0, 0, 1, 1], [], []>} : vector<8x4xbf16>, vector<4x512xbf16>, vector<8x512xf32> -> vector<8x512xf32>
    %296 = arith.addf %288, %295 : vector<8x512xf32>
    %c496_i32_99 = arith.constant 496 : i32
    %297 = tpu.dynamic_rotate %241 by %c496_i32_99 dim 1 : vector<4x512xf32>, i32 -> vector<4x512xf32>
    %298 = vector.broadcast %120 : vector<1x512xf32> to vector<4x512xf32>
    %299 = arith.mulf %297, %298 : vector<4x512xf32>
    %c7_100 = arith.constant 7 : index
    %c0_101 = arith.constant 0 : index
    %c0_102 = arith.constant 0 : index
    %300 = vector.load %arg5[%c7_100, %c0_101, %c0_102] : memref<9x8x4xbf16, #tpu.memory_space<vmem>>, vector<1x8x4xbf16>
    %301 = vector.shape_cast %300 : vector<1x8x4xbf16> to vector<8x4xbf16>
    %302 = arith.truncf %299 : vector<4x512xf32> to vector<4x512xbf16>
    %cst_103 = arith.constant dense<0.000000e+00> : vector<8x512xf32>
    %303 = tpu.matmul %301, %302, %cst_103 {dimension_numbers = #tpu.dot_dimension_numbers<[1], [0], [0], [1], [0, 0, 1, 1], [], []>} : vector<8x4xbf16>, vector<4x512xbf16>, vector<8x512xf32> -> vector<8x512xf32>
    %304 = arith.addf %296, %303 : vector<8x512xf32>
    %c495_i32_104 = arith.constant 495 : i32
    %305 = tpu.dynamic_rotate %241 by %c495_i32_104 dim 1 : vector<4x512xf32>, i32 -> vector<4x512xf32>
    %306 = vector.broadcast %133 : vector<1x512xf32> to vector<4x512xf32>
    %307 = arith.mulf %305, %306 : vector<4x512xf32>
    %c8_105 = arith.constant 8 : index
    %c0_106 = arith.constant 0 : index
    %c0_107 = arith.constant 0 : index
    %308 = vector.load %arg5[%c8_105, %c0_106, %c0_107] : memref<9x8x4xbf16, #tpu.memory_space<vmem>>, vector<1x8x4xbf16>
    %309 = vector.shape_cast %308 : vector<1x8x4xbf16> to vector<8x4xbf16>
    %310 = arith.truncf %307 : vector<4x512xf32> to vector<4x512xbf16>
    %cst_108 = arith.constant dense<0.000000e+00> : vector<8x512xf32>
    %311 = tpu.matmul %309, %310, %cst_108 {dimension_numbers = #tpu.dot_dimension_numbers<[1], [0], [0], [1], [0, 0, 1, 1], [], []>} : vector<8x4xbf16>, vector<4x512xbf16>, vector<8x512xf32> -> vector<8x512xf32>
    %312 = arith.addf %304, %311 : vector<8x512xf32>
    %c0_109 = arith.constant 0 : index
    %c0_110 = arith.constant 0 : index
    %313 = vector.load %arg6[%c0_109, %c0_110] : memref<8x1xf32, #tpu.memory_space<vmem>>, vector<8x1xf32>
    %314 = vector.broadcast %313 : vector<8x1xf32> to vector<8x512xf32>
    %315 = arith.addf %312, %314 : vector<8x512xf32>
    %cst_111 = arith.constant 0.000000e+00 : f32
    %316 = vector.broadcast %cst_111 : f32 to vector<8x512xf32>
    %317 = arith.maximumf %315, %316 : vector<8x512xf32>
    %c17_i32_112 = arith.constant 17 : i32
    %318 = tpu.dynamic_rotate %317 by %c17_i32_112 dim 1 : vector<8x512xf32>, i32 -> vector<8x512xf32>
    %319 = vector.broadcast %29 : vector<1x512xf32> to vector<8x512xf32>
    %320 = arith.mulf %318, %319 : vector<8x512xf32>
    %c0_113 = arith.constant 0 : index
    %c0_114 = arith.constant 0 : index
    %c0_115 = arith.constant 0 : index
    %321 = vector.load %arg7[%c0_113, %c0_114, %c0_115] : memref<9x8x8xbf16, #tpu.memory_space<vmem>>, vector<1x8x8xbf16>
    %322 = vector.shape_cast %321 : vector<1x8x8xbf16> to vector<8x8xbf16>
    %323 = arith.truncf %320 : vector<8x512xf32> to vector<8x512xbf16>
    %cst_116 = arith.constant dense<0.000000e+00> : vector<8x512xf32>
    %324 = tpu.matmul %322, %323, %cst_116 {dimension_numbers = #tpu.dot_dimension_numbers<[1], [0], [0], [1], [0, 0, 1, 1], [], []>} : vector<8x8xbf16>, vector<8x512xbf16>, vector<8x512xf32> -> vector<8x512xf32>
    %c16_i32_117 = arith.constant 16 : i32
    %325 = tpu.dynamic_rotate %317 by %c16_i32_117 dim 1 : vector<8x512xf32>, i32 -> vector<8x512xf32>
    %326 = vector.broadcast %42 : vector<1x512xf32> to vector<8x512xf32>
    %327 = arith.mulf %325, %326 : vector<8x512xf32>
    %c1_118 = arith.constant 1 : index
    %c0_119 = arith.constant 0 : index
    %c0_120 = arith.constant 0 : index
    %328 = vector.load %arg7[%c1_118, %c0_119, %c0_120] : memref<9x8x8xbf16, #tpu.memory_space<vmem>>, vector<1x8x8xbf16>
    %329 = vector.shape_cast %328 : vector<1x8x8xbf16> to vector<8x8xbf16>
    %330 = arith.truncf %327 : vector<8x512xf32> to vector<8x512xbf16>
    %cst_121 = arith.constant dense<0.000000e+00> : vector<8x512xf32>
    %331 = tpu.matmul %329, %330, %cst_121 {dimension_numbers = #tpu.dot_dimension_numbers<[1], [0], [0], [1], [0, 0, 1, 1], [], []>} : vector<8x8xbf16>, vector<8x512xbf16>, vector<8x512xf32> -> vector<8x512xf32>
    %332 = arith.addf %324, %331 : vector<8x512xf32>
    %c15_i32_122 = arith.constant 15 : i32
    %333 = tpu.dynamic_rotate %317 by %c15_i32_122 dim 1 : vector<8x512xf32>, i32 -> vector<8x512xf32>
    %334 = vector.broadcast %55 : vector<1x512xf32> to vector<8x512xf32>
    %335 = arith.mulf %333, %334 : vector<8x512xf32>
    %c2_123 = arith.constant 2 : index
    %c0_124 = arith.constant 0 : index
    %c0_125 = arith.constant 0 : index
    %336 = vector.load %arg7[%c2_123, %c0_124, %c0_125] : memref<9x8x8xbf16, #tpu.memory_space<vmem>>, vector<1x8x8xbf16>
    %337 = vector.shape_cast %336 : vector<1x8x8xbf16> to vector<8x8xbf16>
    %338 = arith.truncf %335 : vector<8x512xf32> to vector<8x512xbf16>
    %cst_126 = arith.constant dense<0.000000e+00> : vector<8x512xf32>
    %339 = tpu.matmul %337, %338, %cst_126 {dimension_numbers = #tpu.dot_dimension_numbers<[1], [0], [0], [1], [0, 0, 1, 1], [], []>} : vector<8x8xbf16>, vector<8x512xbf16>, vector<8x512xf32> -> vector<8x512xf32>
    %340 = arith.addf %332, %339 : vector<8x512xf32>
    %c1_i32_127 = arith.constant 1 : i32
    %341 = tpu.dynamic_rotate %317 by %c1_i32_127 dim 1 : vector<8x512xf32>, i32 -> vector<8x512xf32>
    %342 = vector.broadcast %68 : vector<1x512xf32> to vector<8x512xf32>
    %343 = arith.mulf %341, %342 : vector<8x512xf32>
    %c3_128 = arith.constant 3 : index
    %c0_129 = arith.constant 0 : index
    %c0_130 = arith.constant 0 : index
    %344 = vector.load %arg7[%c3_128, %c0_129, %c0_130] : memref<9x8x8xbf16, #tpu.memory_space<vmem>>, vector<1x8x8xbf16>
    %345 = vector.shape_cast %344 : vector<1x8x8xbf16> to vector<8x8xbf16>
    %346 = arith.truncf %343 : vector<8x512xf32> to vector<8x512xbf16>
    %cst_131 = arith.constant dense<0.000000e+00> : vector<8x512xf32>
    %347 = tpu.matmul %345, %346, %cst_131 {dimension_numbers = #tpu.dot_dimension_numbers<[1], [0], [0], [1], [0, 0, 1, 1], [], []>} : vector<8x8xbf16>, vector<8x512xbf16>, vector<8x512xf32> -> vector<8x512xf32>
    %348 = arith.addf %340, %347 : vector<8x512xf32>
    %c0_i32_132 = arith.constant 0 : i32
    %349 = tpu.dynamic_rotate %317 by %c0_i32_132 dim 1 : vector<8x512xf32>, i32 -> vector<8x512xf32>
    %350 = vector.broadcast %81 : vector<1x512xf32> to vector<8x512xf32>
    %351 = arith.mulf %349, %350 : vector<8x512xf32>
    %c4_133 = arith.constant 4 : index
    %c0_134 = arith.constant 0 : index
    %c0_135 = arith.constant 0 : index
    %352 = vector.load %arg7[%c4_133, %c0_134, %c0_135] : memref<9x8x8xbf16, #tpu.memory_space<vmem>>, vector<1x8x8xbf16>
    %353 = vector.shape_cast %352 : vector<1x8x8xbf16> to vector<8x8xbf16>
    %354 = arith.truncf %351 : vector<8x512xf32> to vector<8x512xbf16>
    %cst_136 = arith.constant dense<0.000000e+00> : vector<8x512xf32>
    %355 = tpu.matmul %353, %354, %cst_136 {dimension_numbers = #tpu.dot_dimension_numbers<[1], [0], [0], [1], [0, 0, 1, 1], [], []>} : vector<8x8xbf16>, vector<8x512xbf16>, vector<8x512xf32> -> vector<8x512xf32>
    %356 = arith.addf %348, %355 : vector<8x512xf32>
    %c511_i32_137 = arith.constant 511 : i32
    %357 = tpu.dynamic_rotate %317 by %c511_i32_137 dim 1 : vector<8x512xf32>, i32 -> vector<8x512xf32>
    %358 = vector.broadcast %94 : vector<1x512xf32> to vector<8x512xf32>
    %359 = arith.mulf %357, %358 : vector<8x512xf32>
    %c5_138 = arith.constant 5 : index
    %c0_139 = arith.constant 0 : index
    %c0_140 = arith.constant 0 : index
    %360 = vector.load %arg7[%c5_138, %c0_139, %c0_140] : memref<9x8x8xbf16, #tpu.memory_space<vmem>>, vector<1x8x8xbf16>
    %361 = vector.shape_cast %360 : vector<1x8x8xbf16> to vector<8x8xbf16>
    %362 = arith.truncf %359 : vector<8x512xf32> to vector<8x512xbf16>
    %cst_141 = arith.constant dense<0.000000e+00> : vector<8x512xf32>
    %363 = tpu.matmul %361, %362, %cst_141 {dimension_numbers = #tpu.dot_dimension_numbers<[1], [0], [0], [1], [0, 0, 1, 1], [], []>} : vector<8x8xbf16>, vector<8x512xbf16>, vector<8x512xf32> -> vector<8x512xf32>
    %364 = arith.addf %356, %363 : vector<8x512xf32>
    %c497_i32_142 = arith.constant 497 : i32
    %365 = tpu.dynamic_rotate %317 by %c497_i32_142 dim 1 : vector<8x512xf32>, i32 -> vector<8x512xf32>
    %366 = vector.broadcast %107 : vector<1x512xf32> to vector<8x512xf32>
    %367 = arith.mulf %365, %366 : vector<8x512xf32>
    %c6_143 = arith.constant 6 : index
    %c0_144 = arith.constant 0 : index
    %c0_145 = arith.constant 0 : index
    %368 = vector.load %arg7[%c6_143, %c0_144, %c0_145] : memref<9x8x8xbf16, #tpu.memory_space<vmem>>, vector<1x8x8xbf16>
    %369 = vector.shape_cast %368 : vector<1x8x8xbf16> to vector<8x8xbf16>
    %370 = arith.truncf %367 : vector<8x512xf32> to vector<8x512xbf16>
    %cst_146 = arith.constant dense<0.000000e+00> : vector<8x512xf32>
    %371 = tpu.matmul %369, %370, %cst_146 {dimension_numbers = #tpu.dot_dimension_numbers<[1], [0], [0], [1], [0, 0, 1, 1], [], []>} : vector<8x8xbf16>, vector<8x512xbf16>, vector<8x512xf32> -> vector<8x512xf32>
    %372 = arith.addf %364, %371 : vector<8x512xf32>
    %c496_i32_147 = arith.constant 496 : i32
    %373 = tpu.dynamic_rotate %317 by %c496_i32_147 dim 1 : vector<8x512xf32>, i32 -> vector<8x512xf32>
    %374 = vector.broadcast %120 : vector<1x512xf32> to vector<8x512xf32>
    %375 = arith.mulf %373, %374 : vector<8x512xf32>
    %c7_148 = arith.constant 7 : index
    %c0_149 = arith.constant 0 : index
    %c0_150 = arith.constant 0 : index
    %376 = vector.load %arg7[%c7_148, %c0_149, %c0_150] : memref<9x8x8xbf16, #tpu.memory_space<vmem>>, vector<1x8x8xbf16>
    %377 = vector.shape_cast %376 : vector<1x8x8xbf16> to vector<8x8xbf16>
    %378 = arith.truncf %375 : vector<8x512xf32> to vector<8x512xbf16>
    %cst_151 = arith.constant dense<0.000000e+00> : vector<8x512xf32>
    %379 = tpu.matmul %377, %378, %cst_151 {dimension_numbers = #tpu.dot_dimension_numbers<[1], [0], [0], [1], [0, 0, 1, 1], [], []>} : vector<8x8xbf16>, vector<8x512xbf16>, vector<8x512xf32> -> vector<8x512xf32>
    %380 = arith.addf %372, %379 : vector<8x512xf32>
    %c495_i32_152 = arith.constant 495 : i32
    %381 = tpu.dynamic_rotate %317 by %c495_i32_152 dim 1 : vector<8x512xf32>, i32 -> vector<8x512xf32>
    %382 = vector.broadcast %133 : vector<1x512xf32> to vector<8x512xf32>
    %383 = arith.mulf %381, %382 : vector<8x512xf32>
    %c8_153 = arith.constant 8 : index
    %c0_154 = arith.constant 0 : index
    %c0_155 = arith.constant 0 : index
    %384 = vector.load %arg7[%c8_153, %c0_154, %c0_155] : memref<9x8x8xbf16, #tpu.memory_space<vmem>>, vector<1x8x8xbf16>
    %385 = vector.shape_cast %384 : vector<1x8x8xbf16> to vector<8x8xbf16>
    %386 = arith.truncf %383 : vector<8x512xf32> to vector<8x512xbf16>
    %cst_156 = arith.constant dense<0.000000e+00> : vector<8x512xf32>
    %387 = tpu.matmul %385, %386, %cst_156 {dimension_numbers = #tpu.dot_dimension_numbers<[1], [0], [0], [1], [0, 0, 1, 1], [], []>} : vector<8x8xbf16>, vector<8x512xbf16>, vector<8x512xf32> -> vector<8x512xf32>
    %388 = arith.addf %380, %387 : vector<8x512xf32>
    %c0_157 = arith.constant 0 : index
    %c0_158 = arith.constant 0 : index
    %389 = vector.load %arg8[%c0_157, %c0_158] : memref<8x1xf32, #tpu.memory_space<vmem>>, vector<8x1xf32>
    %390 = vector.broadcast %389 : vector<8x1xf32> to vector<8x512xf32>
    %391 = arith.addf %388, %390 : vector<8x512xf32>
    %cst_159 = arith.constant 0.000000e+00 : f32
    %392 = vector.broadcast %cst_159 : f32 to vector<8x512xf32>
    %393 = arith.maximumf %391, %392 : vector<8x512xf32>
    %c17_i32_160 = arith.constant 17 : i32
    %394 = tpu.dynamic_rotate %393 by %c17_i32_160 dim 1 : vector<8x512xf32>, i32 -> vector<8x512xf32>
    %395 = vector.broadcast %29 : vector<1x512xf32> to vector<8x512xf32>
    %396 = arith.mulf %394, %395 : vector<8x512xf32>
    %c0_161 = arith.constant 0 : index
    %c0_162 = arith.constant 0 : index
    %c0_163 = arith.constant 0 : index
    %397 = vector.load %arg9[%c0_161, %c0_162, %c0_163] : memref<9x4x8xbf16, #tpu.memory_space<vmem>>, vector<1x4x8xbf16>
    %398 = vector.shape_cast %397 : vector<1x4x8xbf16> to vector<4x8xbf16>
    %399 = arith.truncf %396 : vector<8x512xf32> to vector<8x512xbf16>
    %cst_164 = arith.constant dense<0.000000e+00> : vector<4x512xf32>
    %400 = tpu.matmul %398, %399, %cst_164 {dimension_numbers = #tpu.dot_dimension_numbers<[1], [0], [0], [1], [0, 0, 1, 1], [], []>} : vector<4x8xbf16>, vector<8x512xbf16>, vector<4x512xf32> -> vector<4x512xf32>
    %c17_i32_165 = arith.constant 17 : i32
    %401 = tpu.dynamic_rotate %317 by %c17_i32_165 dim 1 : vector<8x512xf32>, i32 -> vector<8x512xf32>
    %402 = vector.broadcast %29 : vector<1x512xf32> to vector<8x512xf32>
    %403 = arith.mulf %401, %402 : vector<8x512xf32>
    %c0_166 = arith.constant 0 : index
    %c0_167 = arith.constant 0 : index
    %c0_168 = arith.constant 0 : index
    %404 = vector.load %arg10[%c0_166, %c0_167, %c0_168] : memref<9x4x8xbf16, #tpu.memory_space<vmem>>, vector<1x4x8xbf16>
    %405 = vector.shape_cast %404 : vector<1x4x8xbf16> to vector<4x8xbf16>
    %406 = arith.truncf %403 : vector<8x512xf32> to vector<8x512xbf16>
    %cst_169 = arith.constant dense<0.000000e+00> : vector<4x512xf32>
    %407 = tpu.matmul %405, %406, %cst_169 {dimension_numbers = #tpu.dot_dimension_numbers<[1], [0], [0], [1], [0, 0, 1, 1], [], []>} : vector<4x8xbf16>, vector<8x512xbf16>, vector<4x512xf32> -> vector<4x512xf32>
    %408 = arith.addf %400, %407 : vector<4x512xf32>
    %c16_i32_170 = arith.constant 16 : i32
    %409 = tpu.dynamic_rotate %393 by %c16_i32_170 dim 1 : vector<8x512xf32>, i32 -> vector<8x512xf32>
    %410 = vector.broadcast %42 : vector<1x512xf32> to vector<8x512xf32>
    %411 = arith.mulf %409, %410 : vector<8x512xf32>
    %c1_171 = arith.constant 1 : index
    %c0_172 = arith.constant 0 : index
    %c0_173 = arith.constant 0 : index
    %412 = vector.load %arg9[%c1_171, %c0_172, %c0_173] : memref<9x4x8xbf16, #tpu.memory_space<vmem>>, vector<1x4x8xbf16>
    %413 = vector.shape_cast %412 : vector<1x4x8xbf16> to vector<4x8xbf16>
    %414 = arith.truncf %411 : vector<8x512xf32> to vector<8x512xbf16>
    %cst_174 = arith.constant dense<0.000000e+00> : vector<4x512xf32>
    %415 = tpu.matmul %413, %414, %cst_174 {dimension_numbers = #tpu.dot_dimension_numbers<[1], [0], [0], [1], [0, 0, 1, 1], [], []>} : vector<4x8xbf16>, vector<8x512xbf16>, vector<4x512xf32> -> vector<4x512xf32>
    %416 = arith.addf %408, %415 : vector<4x512xf32>
    %c16_i32_175 = arith.constant 16 : i32
    %417 = tpu.dynamic_rotate %317 by %c16_i32_175 dim 1 : vector<8x512xf32>, i32 -> vector<8x512xf32>
    %418 = vector.broadcast %42 : vector<1x512xf32> to vector<8x512xf32>
    %419 = arith.mulf %417, %418 : vector<8x512xf32>
    %c1_176 = arith.constant 1 : index
    %c0_177 = arith.constant 0 : index
    %c0_178 = arith.constant 0 : index
    %420 = vector.load %arg10[%c1_176, %c0_177, %c0_178] : memref<9x4x8xbf16, #tpu.memory_space<vmem>>, vector<1x4x8xbf16>
    %421 = vector.shape_cast %420 : vector<1x4x8xbf16> to vector<4x8xbf16>
    %422 = arith.truncf %419 : vector<8x512xf32> to vector<8x512xbf16>
    %cst_179 = arith.constant dense<0.000000e+00> : vector<4x512xf32>
    %423 = tpu.matmul %421, %422, %cst_179 {dimension_numbers = #tpu.dot_dimension_numbers<[1], [0], [0], [1], [0, 0, 1, 1], [], []>} : vector<4x8xbf16>, vector<8x512xbf16>, vector<4x512xf32> -> vector<4x512xf32>
    %424 = arith.addf %416, %423 : vector<4x512xf32>
    %c15_i32_180 = arith.constant 15 : i32
    %425 = tpu.dynamic_rotate %393 by %c15_i32_180 dim 1 : vector<8x512xf32>, i32 -> vector<8x512xf32>
    %426 = vector.broadcast %55 : vector<1x512xf32> to vector<8x512xf32>
    %427 = arith.mulf %425, %426 : vector<8x512xf32>
    %c2_181 = arith.constant 2 : index
    %c0_182 = arith.constant 0 : index
    %c0_183 = arith.constant 0 : index
    %428 = vector.load %arg9[%c2_181, %c0_182, %c0_183] : memref<9x4x8xbf16, #tpu.memory_space<vmem>>, vector<1x4x8xbf16>
    %429 = vector.shape_cast %428 : vector<1x4x8xbf16> to vector<4x8xbf16>
    %430 = arith.truncf %427 : vector<8x512xf32> to vector<8x512xbf16>
    %cst_184 = arith.constant dense<0.000000e+00> : vector<4x512xf32>
    %431 = tpu.matmul %429, %430, %cst_184 {dimension_numbers = #tpu.dot_dimension_numbers<[1], [0], [0], [1], [0, 0, 1, 1], [], []>} : vector<4x8xbf16>, vector<8x512xbf16>, vector<4x512xf32> -> vector<4x512xf32>
    %432 = arith.addf %424, %431 : vector<4x512xf32>
    %c15_i32_185 = arith.constant 15 : i32
    %433 = tpu.dynamic_rotate %317 by %c15_i32_185 dim 1 : vector<8x512xf32>, i32 -> vector<8x512xf32>
    %434 = vector.broadcast %55 : vector<1x512xf32> to vector<8x512xf32>
    %435 = arith.mulf %433, %434 : vector<8x512xf32>
    %c2_186 = arith.constant 2 : index
    %c0_187 = arith.constant 0 : index
    %c0_188 = arith.constant 0 : index
    %436 = vector.load %arg10[%c2_186, %c0_187, %c0_188] : memref<9x4x8xbf16, #tpu.memory_space<vmem>>, vector<1x4x8xbf16>
    %437 = vector.shape_cast %436 : vector<1x4x8xbf16> to vector<4x8xbf16>
    %438 = arith.truncf %435 : vector<8x512xf32> to vector<8x512xbf16>
    %cst_189 = arith.constant dense<0.000000e+00> : vector<4x512xf32>
    %439 = tpu.matmul %437, %438, %cst_189 {dimension_numbers = #tpu.dot_dimension_numbers<[1], [0], [0], [1], [0, 0, 1, 1], [], []>} : vector<4x8xbf16>, vector<8x512xbf16>, vector<4x512xf32> -> vector<4x512xf32>
    %440 = arith.addf %432, %439 : vector<4x512xf32>
    %c1_i32_190 = arith.constant 1 : i32
    %441 = tpu.dynamic_rotate %393 by %c1_i32_190 dim 1 : vector<8x512xf32>, i32 -> vector<8x512xf32>
    %442 = vector.broadcast %68 : vector<1x512xf32> to vector<8x512xf32>
    %443 = arith.mulf %441, %442 : vector<8x512xf32>
    %c3_191 = arith.constant 3 : index
    %c0_192 = arith.constant 0 : index
    %c0_193 = arith.constant 0 : index
    %444 = vector.load %arg9[%c3_191, %c0_192, %c0_193] : memref<9x4x8xbf16, #tpu.memory_space<vmem>>, vector<1x4x8xbf16>
    %445 = vector.shape_cast %444 : vector<1x4x8xbf16> to vector<4x8xbf16>
    %446 = arith.truncf %443 : vector<8x512xf32> to vector<8x512xbf16>
    %cst_194 = arith.constant dense<0.000000e+00> : vector<4x512xf32>
    %447 = tpu.matmul %445, %446, %cst_194 {dimension_numbers = #tpu.dot_dimension_numbers<[1], [0], [0], [1], [0, 0, 1, 1], [], []>} : vector<4x8xbf16>, vector<8x512xbf16>, vector<4x512xf32> -> vector<4x512xf32>
    %448 = arith.addf %440, %447 : vector<4x512xf32>
    %c1_i32_195 = arith.constant 1 : i32
    %449 = tpu.dynamic_rotate %317 by %c1_i32_195 dim 1 : vector<8x512xf32>, i32 -> vector<8x512xf32>
    %450 = vector.broadcast %68 : vector<1x512xf32> to vector<8x512xf32>
    %451 = arith.mulf %449, %450 : vector<8x512xf32>
    %c3_196 = arith.constant 3 : index
    %c0_197 = arith.constant 0 : index
    %c0_198 = arith.constant 0 : index
    %452 = vector.load %arg10[%c3_196, %c0_197, %c0_198] : memref<9x4x8xbf16, #tpu.memory_space<vmem>>, vector<1x4x8xbf16>
    %453 = vector.shape_cast %452 : vector<1x4x8xbf16> to vector<4x8xbf16>
    %454 = arith.truncf %451 : vector<8x512xf32> to vector<8x512xbf16>
    %cst_199 = arith.constant dense<0.000000e+00> : vector<4x512xf32>
    %455 = tpu.matmul %453, %454, %cst_199 {dimension_numbers = #tpu.dot_dimension_numbers<[1], [0], [0], [1], [0, 0, 1, 1], [], []>} : vector<4x8xbf16>, vector<8x512xbf16>, vector<4x512xf32> -> vector<4x512xf32>
    %456 = arith.addf %448, %455 : vector<4x512xf32>
    %c0_i32_200 = arith.constant 0 : i32
    %457 = tpu.dynamic_rotate %393 by %c0_i32_200 dim 1 : vector<8x512xf32>, i32 -> vector<8x512xf32>
    %458 = vector.broadcast %81 : vector<1x512xf32> to vector<8x512xf32>
    %459 = arith.mulf %457, %458 : vector<8x512xf32>
    %c4_201 = arith.constant 4 : index
    %c0_202 = arith.constant 0 : index
    %c0_203 = arith.constant 0 : index
    %460 = vector.load %arg9[%c4_201, %c0_202, %c0_203] : memref<9x4x8xbf16, #tpu.memory_space<vmem>>, vector<1x4x8xbf16>
    %461 = vector.shape_cast %460 : vector<1x4x8xbf16> to vector<4x8xbf16>
    %462 = arith.truncf %459 : vector<8x512xf32> to vector<8x512xbf16>
    %cst_204 = arith.constant dense<0.000000e+00> : vector<4x512xf32>
    %463 = tpu.matmul %461, %462, %cst_204 {dimension_numbers = #tpu.dot_dimension_numbers<[1], [0], [0], [1], [0, 0, 1, 1], [], []>} : vector<4x8xbf16>, vector<8x512xbf16>, vector<4x512xf32> -> vector<4x512xf32>
    %464 = arith.addf %456, %463 : vector<4x512xf32>
    %c0_i32_205 = arith.constant 0 : i32
    %465 = tpu.dynamic_rotate %317 by %c0_i32_205 dim 1 : vector<8x512xf32>, i32 -> vector<8x512xf32>
    %466 = vector.broadcast %81 : vector<1x512xf32> to vector<8x512xf32>
    %467 = arith.mulf %465, %466 : vector<8x512xf32>
    %c4_206 = arith.constant 4 : index
    %c0_207 = arith.constant 0 : index
    %c0_208 = arith.constant 0 : index
    %468 = vector.load %arg10[%c4_206, %c0_207, %c0_208] : memref<9x4x8xbf16, #tpu.memory_space<vmem>>, vector<1x4x8xbf16>
    %469 = vector.shape_cast %468 : vector<1x4x8xbf16> to vector<4x8xbf16>
    %470 = arith.truncf %467 : vector<8x512xf32> to vector<8x512xbf16>
    %cst_209 = arith.constant dense<0.000000e+00> : vector<4x512xf32>
    %471 = tpu.matmul %469, %470, %cst_209 {dimension_numbers = #tpu.dot_dimension_numbers<[1], [0], [0], [1], [0, 0, 1, 1], [], []>} : vector<4x8xbf16>, vector<8x512xbf16>, vector<4x512xf32> -> vector<4x512xf32>
    %472 = arith.addf %464, %471 : vector<4x512xf32>
    %c511_i32_210 = arith.constant 511 : i32
    %473 = tpu.dynamic_rotate %393 by %c511_i32_210 dim 1 : vector<8x512xf32>, i32 -> vector<8x512xf32>
    %474 = vector.broadcast %94 : vector<1x512xf32> to vector<8x512xf32>
    %475 = arith.mulf %473, %474 : vector<8x512xf32>
    %c5_211 = arith.constant 5 : index
    %c0_212 = arith.constant 0 : index
    %c0_213 = arith.constant 0 : index
    %476 = vector.load %arg9[%c5_211, %c0_212, %c0_213] : memref<9x4x8xbf16, #tpu.memory_space<vmem>>, vector<1x4x8xbf16>
    %477 = vector.shape_cast %476 : vector<1x4x8xbf16> to vector<4x8xbf16>
    %478 = arith.truncf %475 : vector<8x512xf32> to vector<8x512xbf16>
    %cst_214 = arith.constant dense<0.000000e+00> : vector<4x512xf32>
    %479 = tpu.matmul %477, %478, %cst_214 {dimension_numbers = #tpu.dot_dimension_numbers<[1], [0], [0], [1], [0, 0, 1, 1], [], []>} : vector<4x8xbf16>, vector<8x512xbf16>, vector<4x512xf32> -> vector<4x512xf32>
    %480 = arith.addf %472, %479 : vector<4x512xf32>
    %c511_i32_215 = arith.constant 511 : i32
    %481 = tpu.dynamic_rotate %317 by %c511_i32_215 dim 1 : vector<8x512xf32>, i32 -> vector<8x512xf32>
    %482 = vector.broadcast %94 : vector<1x512xf32> to vector<8x512xf32>
    %483 = arith.mulf %481, %482 : vector<8x512xf32>
    %c5_216 = arith.constant 5 : index
    %c0_217 = arith.constant 0 : index
    %c0_218 = arith.constant 0 : index
    %484 = vector.load %arg10[%c5_216, %c0_217, %c0_218] : memref<9x4x8xbf16, #tpu.memory_space<vmem>>, vector<1x4x8xbf16>
    %485 = vector.shape_cast %484 : vector<1x4x8xbf16> to vector<4x8xbf16>
    %486 = arith.truncf %483 : vector<8x512xf32> to vector<8x512xbf16>
    %cst_219 = arith.constant dense<0.000000e+00> : vector<4x512xf32>
    %487 = tpu.matmul %485, %486, %cst_219 {dimension_numbers = #tpu.dot_dimension_numbers<[1], [0], [0], [1], [0, 0, 1, 1], [], []>} : vector<4x8xbf16>, vector<8x512xbf16>, vector<4x512xf32> -> vector<4x512xf32>
    %488 = arith.addf %480, %487 : vector<4x512xf32>
    %c497_i32_220 = arith.constant 497 : i32
    %489 = tpu.dynamic_rotate %393 by %c497_i32_220 dim 1 : vector<8x512xf32>, i32 -> vector<8x512xf32>
    %490 = vector.broadcast %107 : vector<1x512xf32> to vector<8x512xf32>
    %491 = arith.mulf %489, %490 : vector<8x512xf32>
    %c6_221 = arith.constant 6 : index
    %c0_222 = arith.constant 0 : index
    %c0_223 = arith.constant 0 : index
    %492 = vector.load %arg9[%c6_221, %c0_222, %c0_223] : memref<9x4x8xbf16, #tpu.memory_space<vmem>>, vector<1x4x8xbf16>
    %493 = vector.shape_cast %492 : vector<1x4x8xbf16> to vector<4x8xbf16>
    %494 = arith.truncf %491 : vector<8x512xf32> to vector<8x512xbf16>
    %cst_224 = arith.constant dense<0.000000e+00> : vector<4x512xf32>
    %495 = tpu.matmul %493, %494, %cst_224 {dimension_numbers = #tpu.dot_dimension_numbers<[1], [0], [0], [1], [0, 0, 1, 1], [], []>} : vector<4x8xbf16>, vector<8x512xbf16>, vector<4x512xf32> -> vector<4x512xf32>
    %496 = arith.addf %488, %495 : vector<4x512xf32>
    %c497_i32_225 = arith.constant 497 : i32
    %497 = tpu.dynamic_rotate %317 by %c497_i32_225 dim 1 : vector<8x512xf32>, i32 -> vector<8x512xf32>
    %498 = vector.broadcast %107 : vector<1x512xf32> to vector<8x512xf32>
    %499 = arith.mulf %497, %498 : vector<8x512xf32>
    %c6_226 = arith.constant 6 : index
    %c0_227 = arith.constant 0 : index
    %c0_228 = arith.constant 0 : index
    %500 = vector.load %arg10[%c6_226, %c0_227, %c0_228] : memref<9x4x8xbf16, #tpu.memory_space<vmem>>, vector<1x4x8xbf16>
    %501 = vector.shape_cast %500 : vector<1x4x8xbf16> to vector<4x8xbf16>
    %502 = arith.truncf %499 : vector<8x512xf32> to vector<8x512xbf16>
    %cst_229 = arith.constant dense<0.000000e+00> : vector<4x512xf32>
    %503 = tpu.matmul %501, %502, %cst_229 {dimension_numbers = #tpu.dot_dimension_numbers<[1], [0], [0], [1], [0, 0, 1, 1], [], []>} : vector<4x8xbf16>, vector<8x512xbf16>, vector<4x512xf32> -> vector<4x512xf32>
    %504 = arith.addf %496, %503 : vector<4x512xf32>
    %c496_i32_230 = arith.constant 496 : i32
    %505 = tpu.dynamic_rotate %393 by %c496_i32_230 dim 1 : vector<8x512xf32>, i32 -> vector<8x512xf32>
    %506 = vector.broadcast %120 : vector<1x512xf32> to vector<8x512xf32>
    %507 = arith.mulf %505, %506 : vector<8x512xf32>
    %c7_231 = arith.constant 7 : index
    %c0_232 = arith.constant 0 : index
    %c0_233 = arith.constant 0 : index
    %508 = vector.load %arg9[%c7_231, %c0_232, %c0_233] : memref<9x4x8xbf16, #tpu.memory_space<vmem>>, vector<1x4x8xbf16>
    %509 = vector.shape_cast %508 : vector<1x4x8xbf16> to vector<4x8xbf16>
    %510 = arith.truncf %507 : vector<8x512xf32> to vector<8x512xbf16>
    %cst_234 = arith.constant dense<0.000000e+00> : vector<4x512xf32>
    %511 = tpu.matmul %509, %510, %cst_234 {dimension_numbers = #tpu.dot_dimension_numbers<[1], [0], [0], [1], [0, 0, 1, 1], [], []>} : vector<4x8xbf16>, vector<8x512xbf16>, vector<4x512xf32> -> vector<4x512xf32>
    %512 = arith.addf %504, %511 : vector<4x512xf32>
    %c496_i32_235 = arith.constant 496 : i32
    %513 = tpu.dynamic_rotate %317 by %c496_i32_235 dim 1 : vector<8x512xf32>, i32 -> vector<8x512xf32>
    %514 = vector.broadcast %120 : vector<1x512xf32> to vector<8x512xf32>
    %515 = arith.mulf %513, %514 : vector<8x512xf32>
    %c7_236 = arith.constant 7 : index
    %c0_237 = arith.constant 0 : index
    %c0_238 = arith.constant 0 : index
    %516 = vector.load %arg10[%c7_236, %c0_237, %c0_238] : memref<9x4x8xbf16, #tpu.memory_space<vmem>>, vector<1x4x8xbf16>
    %517 = vector.shape_cast %516 : vector<1x4x8xbf16> to vector<4x8xbf16>
    %518 = arith.truncf %515 : vector<8x512xf32> to vector<8x512xbf16>
    %cst_239 = arith.constant dense<0.000000e+00> : vector<4x512xf32>
    %519 = tpu.matmul %517, %518, %cst_239 {dimension_numbers = #tpu.dot_dimension_numbers<[1], [0], [0], [1], [0, 0, 1, 1], [], []>} : vector<4x8xbf16>, vector<8x512xbf16>, vector<4x512xf32> -> vector<4x512xf32>
    %520 = arith.addf %512, %519 : vector<4x512xf32>
    %c495_i32_240 = arith.constant 495 : i32
    %521 = tpu.dynamic_rotate %393 by %c495_i32_240 dim 1 : vector<8x512xf32>, i32 -> vector<8x512xf32>
    %522 = vector.broadcast %133 : vector<1x512xf32> to vector<8x512xf32>
    %523 = arith.mulf %521, %522 : vector<8x512xf32>
    %c8_241 = arith.constant 8 : index
    %c0_242 = arith.constant 0 : index
    %c0_243 = arith.constant 0 : index
    %524 = vector.load %arg9[%c8_241, %c0_242, %c0_243] : memref<9x4x8xbf16, #tpu.memory_space<vmem>>, vector<1x4x8xbf16>
    %525 = vector.shape_cast %524 : vector<1x4x8xbf16> to vector<4x8xbf16>
    %526 = arith.truncf %523 : vector<8x512xf32> to vector<8x512xbf16>
    %cst_244 = arith.constant dense<0.000000e+00> : vector<4x512xf32>
    %527 = tpu.matmul %525, %526, %cst_244 {dimension_numbers = #tpu.dot_dimension_numbers<[1], [0], [0], [1], [0, 0, 1, 1], [], []>} : vector<4x8xbf16>, vector<8x512xbf16>, vector<4x512xf32> -> vector<4x512xf32>
    %528 = arith.addf %520, %527 : vector<4x512xf32>
    %c495_i32_245 = arith.constant 495 : i32
    %529 = tpu.dynamic_rotate %317 by %c495_i32_245 dim 1 : vector<8x512xf32>, i32 -> vector<8x512xf32>
    %530 = vector.broadcast %133 : vector<1x512xf32> to vector<8x512xf32>
    %531 = arith.mulf %529, %530 : vector<8x512xf32>
    %c8_246 = arith.constant 8 : index
    %c0_247 = arith.constant 0 : index
    %c0_248 = arith.constant 0 : index
    %532 = vector.load %arg10[%c8_246, %c0_247, %c0_248] : memref<9x4x8xbf16, #tpu.memory_space<vmem>>, vector<1x4x8xbf16>
    %533 = vector.shape_cast %532 : vector<1x4x8xbf16> to vector<4x8xbf16>
    %534 = arith.truncf %531 : vector<8x512xf32> to vector<8x512xbf16>
    %cst_249 = arith.constant dense<0.000000e+00> : vector<4x512xf32>
    %535 = tpu.matmul %533, %534, %cst_249 {dimension_numbers = #tpu.dot_dimension_numbers<[1], [0], [0], [1], [0, 0, 1, 1], [], []>} : vector<4x8xbf16>, vector<8x512xbf16>, vector<4x512xf32> -> vector<4x512xf32>
    %536 = arith.addf %528, %535 : vector<4x512xf32>
    %c0_250 = arith.constant 0 : index
    %c0_251 = arith.constant 0 : index
    %537 = vector.load %arg11[%c0_250, %c0_251] : memref<4x1xf32, #tpu.memory_space<vmem>>, vector<4x1xf32>
    %538 = vector.broadcast %537 : vector<4x1xf32> to vector<4x512xf32>
    %539 = arith.addf %536, %538 : vector<4x512xf32>
    %cst_252 = arith.constant 0.000000e+00 : f32
    %540 = vector.broadcast %cst_252 : f32 to vector<4x512xf32>
    %541 = arith.maximumf %539, %540 : vector<4x512xf32>
    %c17_i32_253 = arith.constant 17 : i32
    %542 = tpu.dynamic_rotate %541 by %c17_i32_253 dim 1 : vector<4x512xf32>, i32 -> vector<4x512xf32>
    %543 = vector.broadcast %29 : vector<1x512xf32> to vector<4x512xf32>
    %544 = arith.mulf %542, %543 : vector<4x512xf32>
    %c0_254 = arith.constant 0 : index
    %c0_255 = arith.constant 0 : index
    %c0_256 = arith.constant 0 : index
    %545 = vector.load %arg12[%c0_254, %c0_255, %c0_256] : memref<9x1x4xbf16, #tpu.memory_space<vmem>>, vector<1x1x4xbf16>
    %546 = vector.shape_cast %545 : vector<1x1x4xbf16> to vector<1x4xbf16>
    %547 = arith.truncf %544 : vector<4x512xf32> to vector<4x512xbf16>
    %cst_257 = arith.constant dense<0.000000e+00> : vector<1x512xf32>
    %548 = tpu.matmul %546, %547, %cst_257 {dimension_numbers = #tpu.dot_dimension_numbers<[1], [0], [0], [1], [0, 0, 1, 1], [], []>} : vector<1x4xbf16>, vector<4x512xbf16>, vector<1x512xf32> -> vector<1x512xf32>
    %c17_i32_258 = arith.constant 17 : i32
    %549 = tpu.dynamic_rotate %241 by %c17_i32_258 dim 1 : vector<4x512xf32>, i32 -> vector<4x512xf32>
    %550 = vector.broadcast %29 : vector<1x512xf32> to vector<4x512xf32>
    %551 = arith.mulf %549, %550 : vector<4x512xf32>
    %c0_259 = arith.constant 0 : index
    %c0_260 = arith.constant 0 : index
    %c0_261 = arith.constant 0 : index
    %552 = vector.load %arg13[%c0_259, %c0_260, %c0_261] : memref<9x1x4xbf16, #tpu.memory_space<vmem>>, vector<1x1x4xbf16>
    %553 = vector.shape_cast %552 : vector<1x1x4xbf16> to vector<1x4xbf16>
    %554 = arith.truncf %551 : vector<4x512xf32> to vector<4x512xbf16>
    %cst_262 = arith.constant dense<0.000000e+00> : vector<1x512xf32>
    %555 = tpu.matmul %553, %554, %cst_262 {dimension_numbers = #tpu.dot_dimension_numbers<[1], [0], [0], [1], [0, 0, 1, 1], [], []>} : vector<1x4xbf16>, vector<4x512xbf16>, vector<1x512xf32> -> vector<1x512xf32>
    %556 = arith.addf %548, %555 : vector<1x512xf32>
    %c16_i32_263 = arith.constant 16 : i32
    %557 = tpu.dynamic_rotate %541 by %c16_i32_263 dim 1 : vector<4x512xf32>, i32 -> vector<4x512xf32>
    %558 = vector.broadcast %42 : vector<1x512xf32> to vector<4x512xf32>
    %559 = arith.mulf %557, %558 : vector<4x512xf32>
    %c1_264 = arith.constant 1 : index
    %c0_265 = arith.constant 0 : index
    %c0_266 = arith.constant 0 : index
    %560 = vector.load %arg12[%c1_264, %c0_265, %c0_266] : memref<9x1x4xbf16, #tpu.memory_space<vmem>>, vector<1x1x4xbf16>
    %561 = vector.shape_cast %560 : vector<1x1x4xbf16> to vector<1x4xbf16>
    %562 = arith.truncf %559 : vector<4x512xf32> to vector<4x512xbf16>
    %cst_267 = arith.constant dense<0.000000e+00> : vector<1x512xf32>
    %563 = tpu.matmul %561, %562, %cst_267 {dimension_numbers = #tpu.dot_dimension_numbers<[1], [0], [0], [1], [0, 0, 1, 1], [], []>} : vector<1x4xbf16>, vector<4x512xbf16>, vector<1x512xf32> -> vector<1x512xf32>
    %564 = arith.addf %556, %563 : vector<1x512xf32>
    %c16_i32_268 = arith.constant 16 : i32
    %565 = tpu.dynamic_rotate %241 by %c16_i32_268 dim 1 : vector<4x512xf32>, i32 -> vector<4x512xf32>
    %566 = vector.broadcast %42 : vector<1x512xf32> to vector<4x512xf32>
    %567 = arith.mulf %565, %566 : vector<4x512xf32>
    %c1_269 = arith.constant 1 : index
    %c0_270 = arith.constant 0 : index
    %c0_271 = arith.constant 0 : index
    %568 = vector.load %arg13[%c1_269, %c0_270, %c0_271] : memref<9x1x4xbf16, #tpu.memory_space<vmem>>, vector<1x1x4xbf16>
    %569 = vector.shape_cast %568 : vector<1x1x4xbf16> to vector<1x4xbf16>
    %570 = arith.truncf %567 : vector<4x512xf32> to vector<4x512xbf16>
    %cst_272 = arith.constant dense<0.000000e+00> : vector<1x512xf32>
    %571 = tpu.matmul %569, %570, %cst_272 {dimension_numbers = #tpu.dot_dimension_numbers<[1], [0], [0], [1], [0, 0, 1, 1], [], []>} : vector<1x4xbf16>, vector<4x512xbf16>, vector<1x512xf32> -> vector<1x512xf32>
    %572 = arith.addf %564, %571 : vector<1x512xf32>
    %c15_i32_273 = arith.constant 15 : i32
    %573 = tpu.dynamic_rotate %541 by %c15_i32_273 dim 1 : vector<4x512xf32>, i32 -> vector<4x512xf32>
    %574 = vector.broadcast %55 : vector<1x512xf32> to vector<4x512xf32>
    %575 = arith.mulf %573, %574 : vector<4x512xf32>
    %c2_274 = arith.constant 2 : index
    %c0_275 = arith.constant 0 : index
    %c0_276 = arith.constant 0 : index
    %576 = vector.load %arg12[%c2_274, %c0_275, %c0_276] : memref<9x1x4xbf16, #tpu.memory_space<vmem>>, vector<1x1x4xbf16>
    %577 = vector.shape_cast %576 : vector<1x1x4xbf16> to vector<1x4xbf16>
    %578 = arith.truncf %575 : vector<4x512xf32> to vector<4x512xbf16>
    %cst_277 = arith.constant dense<0.000000e+00> : vector<1x512xf32>
    %579 = tpu.matmul %577, %578, %cst_277 {dimension_numbers = #tpu.dot_dimension_numbers<[1], [0], [0], [1], [0, 0, 1, 1], [], []>} : vector<1x4xbf16>, vector<4x512xbf16>, vector<1x512xf32> -> vector<1x512xf32>
    %580 = arith.addf %572, %579 : vector<1x512xf32>
    %c15_i32_278 = arith.constant 15 : i32
    %581 = tpu.dynamic_rotate %241 by %c15_i32_278 dim 1 : vector<4x512xf32>, i32 -> vector<4x512xf32>
    %582 = vector.broadcast %55 : vector<1x512xf32> to vector<4x512xf32>
    %583 = arith.mulf %581, %582 : vector<4x512xf32>
    %c2_279 = arith.constant 2 : index
    %c0_280 = arith.constant 0 : index
    %c0_281 = arith.constant 0 : index
    %584 = vector.load %arg13[%c2_279, %c0_280, %c0_281] : memref<9x1x4xbf16, #tpu.memory_space<vmem>>, vector<1x1x4xbf16>
    %585 = vector.shape_cast %584 : vector<1x1x4xbf16> to vector<1x4xbf16>
    %586 = arith.truncf %583 : vector<4x512xf32> to vector<4x512xbf16>
    %cst_282 = arith.constant dense<0.000000e+00> : vector<1x512xf32>
    %587 = tpu.matmul %585, %586, %cst_282 {dimension_numbers = #tpu.dot_dimension_numbers<[1], [0], [0], [1], [0, 0, 1, 1], [], []>} : vector<1x4xbf16>, vector<4x512xbf16>, vector<1x512xf32> -> vector<1x512xf32>
    %588 = arith.addf %580, %587 : vector<1x512xf32>
    %c1_i32_283 = arith.constant 1 : i32
    %589 = tpu.dynamic_rotate %541 by %c1_i32_283 dim 1 : vector<4x512xf32>, i32 -> vector<4x512xf32>
    %590 = vector.broadcast %68 : vector<1x512xf32> to vector<4x512xf32>
    %591 = arith.mulf %589, %590 : vector<4x512xf32>
    %c3_284 = arith.constant 3 : index
    %c0_285 = arith.constant 0 : index
    %c0_286 = arith.constant 0 : index
    %592 = vector.load %arg12[%c3_284, %c0_285, %c0_286] : memref<9x1x4xbf16, #tpu.memory_space<vmem>>, vector<1x1x4xbf16>
    %593 = vector.shape_cast %592 : vector<1x1x4xbf16> to vector<1x4xbf16>
    %594 = arith.truncf %591 : vector<4x512xf32> to vector<4x512xbf16>
    %cst_287 = arith.constant dense<0.000000e+00> : vector<1x512xf32>
    %595 = tpu.matmul %593, %594, %cst_287 {dimension_numbers = #tpu.dot_dimension_numbers<[1], [0], [0], [1], [0, 0, 1, 1], [], []>} : vector<1x4xbf16>, vector<4x512xbf16>, vector<1x512xf32> -> vector<1x512xf32>
    %596 = arith.addf %588, %595 : vector<1x512xf32>
    %c1_i32_288 = arith.constant 1 : i32
    %597 = tpu.dynamic_rotate %241 by %c1_i32_288 dim 1 : vector<4x512xf32>, i32 -> vector<4x512xf32>
    %598 = vector.broadcast %68 : vector<1x512xf32> to vector<4x512xf32>
    %599 = arith.mulf %597, %598 : vector<4x512xf32>
    %c3_289 = arith.constant 3 : index
    %c0_290 = arith.constant 0 : index
    %c0_291 = arith.constant 0 : index
    %600 = vector.load %arg13[%c3_289, %c0_290, %c0_291] : memref<9x1x4xbf16, #tpu.memory_space<vmem>>, vector<1x1x4xbf16>
    %601 = vector.shape_cast %600 : vector<1x1x4xbf16> to vector<1x4xbf16>
    %602 = arith.truncf %599 : vector<4x512xf32> to vector<4x512xbf16>
    %cst_292 = arith.constant dense<0.000000e+00> : vector<1x512xf32>
    %603 = tpu.matmul %601, %602, %cst_292 {dimension_numbers = #tpu.dot_dimension_numbers<[1], [0], [0], [1], [0, 0, 1, 1], [], []>} : vector<1x4xbf16>, vector<4x512xbf16>, vector<1x512xf32> -> vector<1x512xf32>
    %604 = arith.addf %596, %603 : vector<1x512xf32>
    %c0_i32_293 = arith.constant 0 : i32
    %605 = tpu.dynamic_rotate %541 by %c0_i32_293 dim 1 : vector<4x512xf32>, i32 -> vector<4x512xf32>
    %606 = vector.broadcast %81 : vector<1x512xf32> to vector<4x512xf32>
    %607 = arith.mulf %605, %606 : vector<4x512xf32>
    %c4_294 = arith.constant 4 : index
    %c0_295 = arith.constant 0 : index
    %c0_296 = arith.constant 0 : index
    %608 = vector.load %arg12[%c4_294, %c0_295, %c0_296] : memref<9x1x4xbf16, #tpu.memory_space<vmem>>, vector<1x1x4xbf16>
    %609 = vector.shape_cast %608 : vector<1x1x4xbf16> to vector<1x4xbf16>
    %610 = arith.truncf %607 : vector<4x512xf32> to vector<4x512xbf16>
    %cst_297 = arith.constant dense<0.000000e+00> : vector<1x512xf32>
    %611 = tpu.matmul %609, %610, %cst_297 {dimension_numbers = #tpu.dot_dimension_numbers<[1], [0], [0], [1], [0, 0, 1, 1], [], []>} : vector<1x4xbf16>, vector<4x512xbf16>, vector<1x512xf32> -> vector<1x512xf32>
    %612 = arith.addf %604, %611 : vector<1x512xf32>
    %c0_i32_298 = arith.constant 0 : i32
    %613 = tpu.dynamic_rotate %241 by %c0_i32_298 dim 1 : vector<4x512xf32>, i32 -> vector<4x512xf32>
    %614 = vector.broadcast %81 : vector<1x512xf32> to vector<4x512xf32>
    %615 = arith.mulf %613, %614 : vector<4x512xf32>
    %c4_299 = arith.constant 4 : index
    %c0_300 = arith.constant 0 : index
    %c0_301 = arith.constant 0 : index
    %616 = vector.load %arg13[%c4_299, %c0_300, %c0_301] : memref<9x1x4xbf16, #tpu.memory_space<vmem>>, vector<1x1x4xbf16>
    %617 = vector.shape_cast %616 : vector<1x1x4xbf16> to vector<1x4xbf16>
    %618 = arith.truncf %615 : vector<4x512xf32> to vector<4x512xbf16>
    %cst_302 = arith.constant dense<0.000000e+00> : vector<1x512xf32>
    %619 = tpu.matmul %617, %618, %cst_302 {dimension_numbers = #tpu.dot_dimension_numbers<[1], [0], [0], [1], [0, 0, 1, 1], [], []>} : vector<1x4xbf16>, vector<4x512xbf16>, vector<1x512xf32> -> vector<1x512xf32>
    %620 = arith.addf %612, %619 : vector<1x512xf32>
    %c511_i32_303 = arith.constant 511 : i32
    %621 = tpu.dynamic_rotate %541 by %c511_i32_303 dim 1 : vector<4x512xf32>, i32 -> vector<4x512xf32>
    %622 = vector.broadcast %94 : vector<1x512xf32> to vector<4x512xf32>
    %623 = arith.mulf %621, %622 : vector<4x512xf32>
    %c5_304 = arith.constant 5 : index
    %c0_305 = arith.constant 0 : index
    %c0_306 = arith.constant 0 : index
    %624 = vector.load %arg12[%c5_304, %c0_305, %c0_306] : memref<9x1x4xbf16, #tpu.memory_space<vmem>>, vector<1x1x4xbf16>
    %625 = vector.shape_cast %624 : vector<1x1x4xbf16> to vector<1x4xbf16>
    %626 = arith.truncf %623 : vector<4x512xf32> to vector<4x512xbf16>
    %cst_307 = arith.constant dense<0.000000e+00> : vector<1x512xf32>
    %627 = tpu.matmul %625, %626, %cst_307 {dimension_numbers = #tpu.dot_dimension_numbers<[1], [0], [0], [1], [0, 0, 1, 1], [], []>} : vector<1x4xbf16>, vector<4x512xbf16>, vector<1x512xf32> -> vector<1x512xf32>
    %628 = arith.addf %620, %627 : vector<1x512xf32>
    %c511_i32_308 = arith.constant 511 : i32
    %629 = tpu.dynamic_rotate %241 by %c511_i32_308 dim 1 : vector<4x512xf32>, i32 -> vector<4x512xf32>
    %630 = vector.broadcast %94 : vector<1x512xf32> to vector<4x512xf32>
    %631 = arith.mulf %629, %630 : vector<4x512xf32>
    %c5_309 = arith.constant 5 : index
    %c0_310 = arith.constant 0 : index
    %c0_311 = arith.constant 0 : index
    %632 = vector.load %arg13[%c5_309, %c0_310, %c0_311] : memref<9x1x4xbf16, #tpu.memory_space<vmem>>, vector<1x1x4xbf16>
    %633 = vector.shape_cast %632 : vector<1x1x4xbf16> to vector<1x4xbf16>
    %634 = arith.truncf %631 : vector<4x512xf32> to vector<4x512xbf16>
    %cst_312 = arith.constant dense<0.000000e+00> : vector<1x512xf32>
    %635 = tpu.matmul %633, %634, %cst_312 {dimension_numbers = #tpu.dot_dimension_numbers<[1], [0], [0], [1], [0, 0, 1, 1], [], []>} : vector<1x4xbf16>, vector<4x512xbf16>, vector<1x512xf32> -> vector<1x512xf32>
    %636 = arith.addf %628, %635 : vector<1x512xf32>
    %c497_i32_313 = arith.constant 497 : i32
    %637 = tpu.dynamic_rotate %541 by %c497_i32_313 dim 1 : vector<4x512xf32>, i32 -> vector<4x512xf32>
    %638 = vector.broadcast %107 : vector<1x512xf32> to vector<4x512xf32>
    %639 = arith.mulf %637, %638 : vector<4x512xf32>
    %c6_314 = arith.constant 6 : index
    %c0_315 = arith.constant 0 : index
    %c0_316 = arith.constant 0 : index
    %640 = vector.load %arg12[%c6_314, %c0_315, %c0_316] : memref<9x1x4xbf16, #tpu.memory_space<vmem>>, vector<1x1x4xbf16>
    %641 = vector.shape_cast %640 : vector<1x1x4xbf16> to vector<1x4xbf16>
    %642 = arith.truncf %639 : vector<4x512xf32> to vector<4x512xbf16>
    %cst_317 = arith.constant dense<0.000000e+00> : vector<1x512xf32>
    %643 = tpu.matmul %641, %642, %cst_317 {dimension_numbers = #tpu.dot_dimension_numbers<[1], [0], [0], [1], [0, 0, 1, 1], [], []>} : vector<1x4xbf16>, vector<4x512xbf16>, vector<1x512xf32> -> vector<1x512xf32>
    %644 = arith.addf %636, %643 : vector<1x512xf32>
    %c497_i32_318 = arith.constant 497 : i32
    %645 = tpu.dynamic_rotate %241 by %c497_i32_318 dim 1 : vector<4x512xf32>, i32 -> vector<4x512xf32>
    %646 = vector.broadcast %107 : vector<1x512xf32> to vector<4x512xf32>
    %647 = arith.mulf %645, %646 : vector<4x512xf32>
    %c6_319 = arith.constant 6 : index
    %c0_320 = arith.constant 0 : index
    %c0_321 = arith.constant 0 : index
    %648 = vector.load %arg13[%c6_319, %c0_320, %c0_321] : memref<9x1x4xbf16, #tpu.memory_space<vmem>>, vector<1x1x4xbf16>
    %649 = vector.shape_cast %648 : vector<1x1x4xbf16> to vector<1x4xbf16>
    %650 = arith.truncf %647 : vector<4x512xf32> to vector<4x512xbf16>
    %cst_322 = arith.constant dense<0.000000e+00> : vector<1x512xf32>
    %651 = tpu.matmul %649, %650, %cst_322 {dimension_numbers = #tpu.dot_dimension_numbers<[1], [0], [0], [1], [0, 0, 1, 1], [], []>} : vector<1x4xbf16>, vector<4x512xbf16>, vector<1x512xf32> -> vector<1x512xf32>
    %652 = arith.addf %644, %651 : vector<1x512xf32>
    %c496_i32_323 = arith.constant 496 : i32
    %653 = tpu.dynamic_rotate %541 by %c496_i32_323 dim 1 : vector<4x512xf32>, i32 -> vector<4x512xf32>
    %654 = vector.broadcast %120 : vector<1x512xf32> to vector<4x512xf32>
    %655 = arith.mulf %653, %654 : vector<4x512xf32>
    %c7_324 = arith.constant 7 : index
    %c0_325 = arith.constant 0 : index
    %c0_326 = arith.constant 0 : index
    %656 = vector.load %arg12[%c7_324, %c0_325, %c0_326] : memref<9x1x4xbf16, #tpu.memory_space<vmem>>, vector<1x1x4xbf16>
    %657 = vector.shape_cast %656 : vector<1x1x4xbf16> to vector<1x4xbf16>
    %658 = arith.truncf %655 : vector<4x512xf32> to vector<4x512xbf16>
    %cst_327 = arith.constant dense<0.000000e+00> : vector<1x512xf32>
    %659 = tpu.matmul %657, %658, %cst_327 {dimension_numbers = #tpu.dot_dimension_numbers<[1], [0], [0], [1], [0, 0, 1, 1], [], []>} : vector<1x4xbf16>, vector<4x512xbf16>, vector<1x512xf32> -> vector<1x512xf32>
    %660 = arith.addf %652, %659 : vector<1x512xf32>
    %c496_i32_328 = arith.constant 496 : i32
    %661 = tpu.dynamic_rotate %241 by %c496_i32_328 dim 1 : vector<4x512xf32>, i32 -> vector<4x512xf32>
    %662 = vector.broadcast %120 : vector<1x512xf32> to vector<4x512xf32>
    %663 = arith.mulf %661, %662 : vector<4x512xf32>
    %c7_329 = arith.constant 7 : index
    %c0_330 = arith.constant 0 : index
    %c0_331 = arith.constant 0 : index
    %664 = vector.load %arg13[%c7_329, %c0_330, %c0_331] : memref<9x1x4xbf16, #tpu.memory_space<vmem>>, vector<1x1x4xbf16>
    %665 = vector.shape_cast %664 : vector<1x1x4xbf16> to vector<1x4xbf16>
    %666 = arith.truncf %663 : vector<4x512xf32> to vector<4x512xbf16>
    %cst_332 = arith.constant dense<0.000000e+00> : vector<1x512xf32>
    %667 = tpu.matmul %665, %666, %cst_332 {dimension_numbers = #tpu.dot_dimension_numbers<[1], [0], [0], [1], [0, 0, 1, 1], [], []>} : vector<1x4xbf16>, vector<4x512xbf16>, vector<1x512xf32> -> vector<1x512xf32>
    %668 = arith.addf %660, %667 : vector<1x512xf32>
    %c495_i32_333 = arith.constant 495 : i32
    %669 = tpu.dynamic_rotate %541 by %c495_i32_333 dim 1 : vector<4x512xf32>, i32 -> vector<4x512xf32>
    %670 = vector.broadcast %133 : vector<1x512xf32> to vector<4x512xf32>
    %671 = arith.mulf %669, %670 : vector<4x512xf32>
    %c8_334 = arith.constant 8 : index
    %c0_335 = arith.constant 0 : index
    %c0_336 = arith.constant 0 : index
    %672 = vector.load %arg12[%c8_334, %c0_335, %c0_336] : memref<9x1x4xbf16, #tpu.memory_space<vmem>>, vector<1x1x4xbf16>
    %673 = vector.shape_cast %672 : vector<1x1x4xbf16> to vector<1x4xbf16>
    %674 = arith.truncf %671 : vector<4x512xf32> to vector<4x512xbf16>
    %cst_337 = arith.constant dense<0.000000e+00> : vector<1x512xf32>
    %675 = tpu.matmul %673, %674, %cst_337 {dimension_numbers = #tpu.dot_dimension_numbers<[1], [0], [0], [1], [0, 0, 1, 1], [], []>} : vector<1x4xbf16>, vector<4x512xbf16>, vector<1x512xf32> -> vector<1x512xf32>
    %676 = arith.addf %668, %675 : vector<1x512xf32>
    %c495_i32_338 = arith.constant 495 : i32
    %677 = tpu.dynamic_rotate %241 by %c495_i32_338 dim 1 : vector<4x512xf32>, i32 -> vector<4x512xf32>
    %678 = vector.broadcast %133 : vector<1x512xf32> to vector<4x512xf32>
    %679 = arith.mulf %677, %678 : vector<4x512xf32>
    %c8_339 = arith.constant 8 : index
    %c0_340 = arith.constant 0 : index
    %c0_341 = arith.constant 0 : index
    %680 = vector.load %arg13[%c8_339, %c0_340, %c0_341] : memref<9x1x4xbf16, #tpu.memory_space<vmem>>, vector<1x1x4xbf16>
    %681 = vector.shape_cast %680 : vector<1x1x4xbf16> to vector<1x4xbf16>
    %682 = arith.truncf %679 : vector<4x512xf32> to vector<4x512xbf16>
    %cst_342 = arith.constant dense<0.000000e+00> : vector<1x512xf32>
    %683 = tpu.matmul %681, %682, %cst_342 {dimension_numbers = #tpu.dot_dimension_numbers<[1], [0], [0], [1], [0, 0, 1, 1], [], []>} : vector<1x4xbf16>, vector<4x512xbf16>, vector<1x512xf32> -> vector<1x512xf32>
    %684 = arith.addf %676, %683 : vector<1x512xf32>
    %c0_343 = arith.constant 0 : index
    %c0_344 = arith.constant 0 : index
    %685 = vector.load %arg14[%c0_343, %c0_344] : memref<1x1xf32, #tpu.memory_space<vmem>>, vector<1x1xf32>
    %686 = vector.broadcast %685 : vector<1x1xf32> to vector<1x512xf32>
    %687 = arith.addf %684, %686 : vector<1x512xf32>
    %cst_345 = arith.constant 0.000000e+00 : f32
    %688 = vector.broadcast %cst_345 : f32 to vector<1x512xf32>
    %689 = arith.maximumf %687, %688 : vector<1x512xf32>
    %690 = vector.shape_cast %689 : vector<1x512xf32> to vector<1x1x512xf32>
    %cst_346 = arith.constant dense<0xFF800000> : vector<1xf32>
    %691 = vector.multi_reduction <maximumf>, %690, %cst_346 [1, 2] : vector<1x1x512xf32> to vector<1xf32>
    %692 = vector.shape_cast %691 : vector<1xf32> to vector<1x1x1xf32>
    %693 = vector.extract %692[0, 0, 0] : f32 from vector<1x1x1xf32>
    %694 = vector.broadcast %693 : f32 to vector<1x1xf32>
    %cst_347 = arith.constant 9.99999996E-13 : f32
    %695 = vector.broadcast %cst_347 : f32 to vector<1x1xf32>
    %696 = arith.maximumf %694, %695 : vector<1x1xf32>
    %697 = tpu.reciprocal %696 {approx = true} : vector<1x1xf32> -> vector<1x1xf32>
    %698 = vector.broadcast %697 : vector<1x1xf32> to vector<1x512xf32>
    %699 = arith.mulf %689, %698 : vector<1x512xf32>
    %c0_348 = arith.constant 0 : index
    %c0_349 = arith.constant 0 : index
    %c0_350 = arith.constant 0 : index
    %700 = vector.load %arg15[%c0_348, %c0_349, %c0_350] : memref<1x1x512xf32, #tpu.memory_space<vmem>>, vector<1x1x512xf32>
    %701 = vector.shape_cast %700 : vector<1x1x512xf32> to vector<1x512xf32>
    %702 = vector.shape_cast %699 : vector<1x512xf32> to vector<1x1x512xf32>
    tpu.vector_store %arg15[%c0_348, %c0_349, %c0_350], %702 {strides = array<i32>} : memref<1x1x512xf32, #tpu.memory_space<vmem>>, vector<1x1x512xf32>,
    return
  }
  func.func @transform_0(%arg0: i32) -> (i32, i32, i32) {
    %c0_i32 = arith.constant 0 : i32
    %c0_i32_0 = arith.constant 0 : i32
    %c0_i32_1 = arith.constant 0 : i32
    return %arg0, %c0_i32, %c0_i32_0 : i32, i32, i32
  }
  func.func @transform_1(%arg0: i32) -> (i32, i32) {
    %c0_i32 = arith.constant 0 : i32
    %c0_i32_0 = arith.constant 0 : i32
    %c0_i32_1 = arith.constant 0 : i32
    return %c0_i32, %c0_i32_0 : i32, i32
  }
  func.func @transform_2(%arg0: i32) -> (i32, i32, i32) {
    %c0_i32 = arith.constant 0 : i32
    %c0_i32_0 = arith.constant 0 : i32
    %c0_i32_1 = arith.constant 0 : i32
    %c0_i32_2 = arith.constant 0 : i32
    return %c0_i32, %c0_i32_0, %c0_i32_1 : i32, i32, i32
  }
  func.func @transform_3(%arg0: i32) -> (i32, i32) {
    %c0_i32 = arith.constant 0 : i32
    %c0_i32_0 = arith.constant 0 : i32
    %c0_i32_1 = arith.constant 0 : i32
    return %c0_i32, %c0_i32_0 : i32, i32
  }
  func.func @transform_4(%arg0: i32) -> (i32, i32, i32) {
    %c0_i32 = arith.constant 0 : i32
    %c0_i32_0 = arith.constant 0 : i32
    %c0_i32_1 = arith.constant 0 : i32
    %c0_i32_2 = arith.constant 0 : i32
    return %c0_i32, %c0_i32_0, %c0_i32_1 : i32, i32, i32
  }
  func.func @transform_5(%arg0: i32) -> (i32, i32) {
    %c0_i32 = arith.constant 0 : i32
    %c0_i32_0 = arith.constant 0 : i32
    %c0_i32_1 = arith.constant 0 : i32
    return %c0_i32, %c0_i32_0 : i32, i32
  }
  func.func @transform_6(%arg0: i32) -> (i32, i32, i32) {
    %c0_i32 = arith.constant 0 : i32
    %c0_i32_0 = arith.constant 0 : i32
    %c0_i32_1 = arith.constant 0 : i32
    %c0_i32_2 = arith.constant 0 : i32
    return %c0_i32, %c0_i32_0, %c0_i32_1 : i32, i32, i32
  }
  func.func @transform_7(%arg0: i32) -> (i32, i32) {
    %c0_i32 = arith.constant 0 : i32
    %c0_i32_0 = arith.constant 0 : i32
    %c0_i32_1 = arith.constant 0 : i32
    return %c0_i32, %c0_i32_0 : i32, i32
  }
  func.func @transform_8(%arg0: i32) -> (i32, i32, i32) {
    %c0_i32 = arith.constant 0 : i32
    %c0_i32_0 = arith.constant 0 : i32
    %c0_i32_1 = arith.constant 0 : i32
    %c0_i32_2 = arith.constant 0 : i32
    return %c0_i32, %c0_i32_0, %c0_i32_1 : i32, i32, i32
  }
  func.func @transform_9(%arg0: i32) -> (i32, i32, i32) {
    %c0_i32 = arith.constant 0 : i32
    %c0_i32_0 = arith.constant 0 : i32
    %c0_i32_1 = arith.constant 0 : i32
    %c0_i32_2 = arith.constant 0 : i32
    return %c0_i32, %c0_i32_0, %c0_i32_1 : i32, i32, i32
  }
  func.func @transform_10(%arg0: i32) -> (i32, i32) {
    %c0_i32 = arith.constant 0 : i32
    %c0_i32_0 = arith.constant 0 : i32
    %c0_i32_1 = arith.constant 0 : i32
    return %c0_i32, %c0_i32_0 : i32, i32
  }
  func.func @transform_11(%arg0: i32) -> (i32, i32, i32) {
    %c0_i32 = arith.constant 0 : i32
    %c0_i32_0 = arith.constant 0 : i32
    %c0_i32_1 = arith.constant 0 : i32
    %c0_i32_2 = arith.constant 0 : i32
    return %c0_i32, %c0_i32_0, %c0_i32_1 : i32, i32, i32
  }
  func.func @transform_12(%arg0: i32) -> (i32, i32, i32) {
    %c0_i32 = arith.constant 0 : i32
    %c0_i32_0 = arith.constant 0 : i32
    %c0_i32_1 = arith.constant 0 : i32
    %c0_i32_2 = arith.constant 0 : i32
    return %c0_i32, %c0_i32_0, %c0_i32_1 : i32, i32, i32
  }
  func.func @transform_13(%arg0: i32) -> (i32, i32) {
    %c0_i32 = arith.constant 0 : i32
    %c0_i32_0 = arith.constant 0 : i32
    %c0_i32_1 = arith.constant 0 : i32
    return %c0_i32, %c0_i32_0 : i32, i32
  }
  func.func @transform_14(%arg0: i32) -> (i32, i32, i32) {
    %c0_i32 = arith.constant 0 : i32
    %c0_i32_0 = arith.constant 0 : i32
    %c0_i32_1 = arith.constant 0 : i32
    return %arg0, %c0_i32, %c0_i32_0 : i32, i32, i32
  }
}

</mosaic_0001>

<bundles_post_ra>
// kernel: tpu_custom_call.1
= control target key start
LH: loop header
LB: loop body
LE: loop exit
PB: predicated region body
PF: predicated region fallthrough
CT: control target
= control target key end

     0   :  { %s10940_s0 = inlined_call_operand.vmem [shape: f32[2,1,256], index: 0, kind: input, shape index: {}]   ;;  %s10941_s1 = inlined_call_operand.hbm [shape: bf16[256,512], index: 1, kind: input, shape index: {}]   ;;  %s10942_s2 = inlined_call_operand.vmem [shape: bf16[9,4,1], index: 2, kind: input, shape index: {}]   ;;  %s10943_s3 = inlined_call_operand.vmem [shape: f32[4,1], index: 3, kind: input, shape index: {}]   ;;  %s10944_s4 = inlined_call_operand.vmem [shape: bf16[9,8,4], index: 4, kind: input, shape index: {}]   ;;  %s10945_s5 = inlined_call_operand.vmem [shape: f32[8,1], index: 5, kind: input, shape index: {}]   ;;  %s10946_s6 = inlined_call_operand.vmem [shape: bf16[9,8,8], index: 6, kind: input, shape index: {}]   ;;  %s10947_s7 = inlined_call_operand.vmem [shape: f32[8,1], index: 7, kind: input, shape index: {}]   ;;  %s10948_s8 = inlined_call_operand.vmem [shape: bf16[9,4,8], index: 8, kind: input, shape index: {}]   ;;  %s10949_s9 = inlined_call_operand.vmem [shape: bf16[9,4,8], index: 9, kind: input, shape index: {}]   ;;  %s10950_s10 = inlined_call_operand.vmem [shape: f32[4,1], index: 10, kind: input, shape index: {}]   ;;  %s10951_s11 = inlined_call_operand.vmem [shape: bf16[9,1,4], index: 11, kind: input, shape index: {}]   ;;  %s10952_s12 = inlined_call_operand.vmem [shape: bf16[9,1,4], index: 12, kind: input, shape index: {}]   ;;  %s10953_s13 = inlined_call_operand.<no memory space> [shape: f32[1,1], index: 13, kind: input, shape index: {}]   ;;  %s10954_s14 = inlined_call_operand.hbm [shape: f32[2,1,512], index: 14, kind: output, shape index: {}]  }
   0x1   :  { %11041 = sst [smem:[#allocation79_spill]] %s10940_s0  ;;  %v19_v0 = vstv %s10953_s13 }
   0x2   :  { %11042 = sst [smem:[#allocation80_spill]] %s10941_s1  ;;  %20 = vst [vmem:[#allocation2] sm:$0x1] %v19_v0 }
   0x3   :  { %11043 = sst [smem:[#allocation81_spill]] %s10942_s2 }
   0x4   :  { %11044 = sst [smem:[#allocation82_spill]] %s10943_s3 }
   0x5   :  { %21 = vsyncpa [#allocation4], 0 }
   0x6   :  { %22 = vsyncpa [#allocation5], 0 }
   0x7   :  { %24 = vsyncpa [#allocation5 + $0x1], 0  ;;  %s8818_s15 = smov 0   ;;  %s8820_s16 = smov 0  }
   0x8   :  { %s8822_s17 = smov 0   ;;  %s8824_s18 = smov 0  }
   0x9 LB: > { %s8839_s13 = sadd.s32 4294967295, %s8722_s18   ;;  %s8025_s19 = sadd.s32 4294967294, %s8722_s18   ;;  %s8722_s18 = sphi %s8824_s18, %s11213_s18   ;;  %s8718_s17 = sphi %s8822_s17, %s11212_s17   ;;  %s8714_s16 = sphi %s8820_s16, %s11211_s16   ;;  %s8710_s15 = sphi %s8818_s15, %s11210_s15  }
   0xa   : > { %s8843_s20 = sadd.s32 1, %s8722_s18   ;;  %s336_s21 = sadd.s32 1, %s8718_s17 }
   0xb   : > { %s333_s22 = ssub.s32 %s8722_s18, %s8843_s20  ;;  %p346_p0 = scmp.ne.s32.totalorder %s8718_s17, %s8714_s16 }
   0xc   : > { %p334_p1 = scmp.eq.s32.totalorder %s333_s22, 0  ;;  %p347_p2 = scmp.eq.s32.totalorder %s8839_s13, 1 }
   0xd   : > { %p352_p3 = scmp.ne.s32.totalorder %s8714_s16, %s8710_s15  ;;  %p353_p4 = scmp.eq.s32.totalorder %s8025_s19, 1 }
   0xe   : > { %s8854_s23 = scalar_select %p334_p1, %s8718_s17, %s336_s21  }
   0xf   : > { %p8856_p5 = por %p347_p2, %p346_p0  ;;  %p8860_p6 = por %p353_p4, %p352_p3 }
  0x10   : > { %p8026_p7 = scmp.ge.s32.totalorder %s8722_s18, 1  ;;  %p360_p8 = scmp.lt.s32.totalorder %s8722_s18, 3 }
  0x11   : > { %s11046_s25 = scalar_select %p8860_p6, 1, 0 }
  0x12   : > { %p8417_p9 = scmp.eq.s32.totalorder %s8839_s13, 0  ;;  %p8867_p10 = pnand %p8026_p7, %p360_p8 }
  0x13   : > { %s8724_s27 = smov [#allocation3]  }
  0x14   : > { %s372_s28 = sshll.u32 %s8724_s27, 4  ;;  %p8409_p11 = pneg %p8867_p10  ;;  %s373_s28 = int_to_ptr.vmem [resolvable:$true] %s372_s28 }
  0x15   : > { %s8643_s29 = scalar_lea.vmem %s373_s28, 8192  ;;  %p8651_p3 = scmp.lt.s32.totalorder %s373_s28, %s373_s28 }
  0x16   : > { %p8410_p12 = pnand %p8417_p9, %p8409_p11  ;;  %p8644_p0 = scmp.ne.s32.totalorder %s373_s28, %s8643_s29 }
  0x17   : > { %p8652_p4 = scmp.lt.s32.totalorder %s8643_s29, %s8643_s29 }
  0x18   : > { %p8634_p13 = pneg %p8410_p12 }
  0x19   : > { %p8653_p6 = por %p8652_p4, %p8651_p3 }
  0x1a   : > { %p8646_p1 = pnand %p8644_p0, %p8634_p13 }
  0x1c   : > { %p8647_p2 = pneg %p8646_p1 }
  0x1e   : > { %p8654_p7 = pnand %p8653_p6, %p8647_p2 }
  0x20   : > { %8657 = shalt.err (!%p8654_p7)
}
  0x21   : > { %s8725_s30 = smov 256   ;;  %s8726_s19 = smov 16  }
  0x22   : > { %s11048_s1 = sld [smem:[#allocation80_spill]] }
  0x24   : > { %431 = sbr.rel (%p8867_p10) target bundleno = 2446 (0x98e), region = 76 }
  0x28   : > { %8412 = dma.hbm_to_vmem [thread:$0]  (!%p8410_p12), %s11048_s1, 8192, %s373_s28, [#allocation4], %s8725_s30, %s8725_s30, %s8726_s19  }
  0x29   : > { %8701 = dma.done.wait (%p8417_p9), [#allocation4], 8192  }
  0x2a   : > { %8703 = vsyncadd (%p8417_p9), [#allocation4], 4294959104  ;;  %v10964_v1 = vmov 0   ;;  %v8534_v2 = vld [vmem:[#allocation3 + $0xe4] ss:$16 sps:$4 sm:$0xff]   ;;  %p476_p6 = scmp.lt.s32.totalorder %s8839_s13, 1  ;;  %v10963_v38 = vlaneseq }
  0x2b   : > { %8473 = vset.pattern.permute.xlu0 %v10964_v1  ;;  %8467 = vset.pattern.permute.xlu1 %v10964_v1  ;;  %v8536_v3 = vld [vmem:[#allocation3 + $0xec] ss:$16 sps:$4 sm:$0xff]   ;;  %v8538_v4 = vld [vmem:[#allocation3 + $0xe0] ss:$16 sps:$4 sm:$0xff]   ;;  %v8539_v5 = vld [vmem:[#allocation3 + $0xe8] ss:$16 sps:$4 sm:$0xff]  }
  0x2c   : > { %1136 = vmatprep.subr.bf16.mxu0 %v8534_v2  ;;  %1177 = vmatprep.subr.bf16.mxu1 %v8536_v3  ;;  %v8540_v6 = vld [vmem:[#allocation3 + $0xc4] ss:$16 sps:$4 sm:$0xff]   ;;  %v8542_v7 = vld [vmem:[#allocation3 + $0xcc] ss:$16 sps:$4 sm:$0xff]   ;;  %v8544_v8 = vld [vmem:[#allocation3 + $0xc0] ss:$16 sps:$4 sm:$0xff]  }
  0x2d   : > { %1137 = vmatpush1.bf16.msra.mxu0 %v8538_v4  ;;  %1178 = vmatpush1.bf16.msra.mxu1 %v8539_v5  ;;  %v8545_v9 = vld [vmem:[#allocation3 + $0xc8] ss:$16 sps:$4 sm:$0xff]   ;;  %v8546_v10 = vld [vmem:[#allocation3 + $0xa4] ss:$16 sps:$4 sm:$0xff]   ;;  %v8548_v11 = vld [vmem:[#allocation3 + $0xac] ss:$16 sps:$4 sm:$0xff]  }
  0x2e   : > { %1138 = vmatprep.subr.bf16.mxu0 %v8540_v6  ;;  %1179 = vmatprep.subr.bf16.mxu1 %v8542_v7  ;;  %v8550_v12 = vld [vmem:[#allocation3 + $0xa0] ss:$16 sps:$4 sm:$0xff]   ;;  %v8551_v13 = vld [vmem:[#allocation3 + $0xa8] ss:$16 sps:$4 sm:$0xff]   ;;  %v8552_v14 = vld [vmem:[#allocation3 + $0x84] ss:$16 sps:$4 sm:$0xff]  }
  0x2f   : > { %v8554_v15 = vld [vmem:[#allocation3 + $0x8c] ss:$16 sps:$4 sm:$0xff]   ;;  %v8556_v16 = vld [vmem:[#allocation3 + $0x80] ss:$16 sps:$4 sm:$0xff]   ;;  %v8557_v17 = vld [vmem:[#allocation3 + $0x88] ss:$16 sps:$4 sm:$0xff]  }
  0x30   : > { %v8558_v18 = vld [vmem:[#allocation3 + $0x64] ss:$16 sps:$4 sm:$0xff]   ;;  %v8560_v19 = vld [vmem:[#allocation3 + $0x6c] ss:$16 sps:$4 sm:$0xff]   ;;  %v8562_v20 = vld [vmem:[#allocation3 + $0x60] ss:$16 sps:$4 sm:$0xff]  }
  0x31   : > { %1139 = vmatpush1.bf16.msra.mxu0 %v8544_v8  ;;  %1180 = vmatpush1.bf16.msra.mxu1 %v8545_v9  ;;  %v8563_v21 = vld [vmem:[#allocation3 + $0x68] ss:$16 sps:$4 sm:$0xff]   ;;  %v8564_v22 = vld [vmem:[#allocation3 + $0x44] ss:$16 sps:$4 sm:$0xff]   ;;  %v8566_v23 = vld [vmem:[#allocation3 + $0x4c] ss:$16 sps:$4 sm:$0xff]  }
  0x32   : > { %1140 = vmatprep.subr.bf16.mxu0 %v8546_v10  ;;  %1181 = vmatprep.subr.bf16.mxu1 %v8548_v11  ;;  %v8568_v24 = vld [vmem:[#allocation3 + $0x40] ss:$16 sps:$4 sm:$0xff]   ;;  %v8569_v25 = vld [vmem:[#allocation3 + $0x48] ss:$16 sps:$4 sm:$0xff]   ;;  %v8570_v26 = vld [vmem:[#allocation3 + $0x24] ss:$16 sps:$4 sm:$0xff]  }
  0x33   : > { %v8572_v27 = vld [vmem:[#allocation3 + $0x2c] ss:$16 sps:$4 sm:$0xff]   ;;  %v8574_v28 = vld [vmem:[#allocation3 + $0x20] ss:$16 sps:$4 sm:$0xff]   ;;  %v8575_v29 = vld [vmem:[#allocation3 + $0x28] ss:$16 sps:$4 sm:$0xff]  }
  0x34   : > { %v8576_v30 = vld [vmem:[#allocation3 + $0x4] ss:$16 sps:$4 sm:$0xff]   ;;  %v8578_v31 = vld [vmem:[#allocation3 + $0xc] ss:$16 sps:$4 sm:$0xff]   ;;  %v8580_v32 = vld [vmem:[#allocation3] ss:$16 sps:$4 sm:$0xff]  }
  0x35   : > { %1141 = vmatpush1.bf16.msra.mxu0 %v8550_v12  ;;  %1182 = vmatpush1.bf16.msra.mxu1 %v8551_v13  ;;  %v8581_v33 = vld [vmem:[#allocation3 + $0x8] ss:$16 sps:$4 sm:$0xff]   ;;  %v8582_v34 = vld [vmem:[#allocation3 + $0x1e4] ss:$16 sps:$4 sm:$0xff]   ;;  %v8584_v35 = vld [vmem:[#allocation3 + $0x1ec] ss:$16 sps:$4 sm:$0xff]  }
  0x36   : > { %1142 = vmatprep.subr.bf16.mxu0 %v8552_v14  ;;  %1183 = vmatprep.subr.bf16.mxu1 %v8554_v15  ;;  %v8586_v36 = vld [vmem:[#allocation3 + $0x1e0] ss:$16 sps:$4 sm:$0xff]   ;;  %v8587_v37 = vld [vmem:[#allocation3 + $0x1e8] ss:$16 sps:$4 sm:$0xff]   ;;  %v8588_v39 = vld [vmem:[#allocation3 + $0x1c4] ss:$16 sps:$4 sm:$0xff]  }
  0x37   : > { %s477_s26 = scalar_select %p476_p6, %s8839_s13, 1  ;;  %v8590_v40 = vld [vmem:[#allocation3 + $0x1cc] ss:$16 sps:$4 sm:$0xff]   ;;  %v8592_v41 = vld [vmem:[#allocation3 + $0x1c0] ss:$16 sps:$4 sm:$0xff]   ;;  %v8889_v42 = vshrl.u32 %v10963_v38, 7 }
  0x38   : > { %v8593_v43 = vld [vmem:[#allocation3 + $0x1c8] ss:$16 sps:$4 sm:$0xff]   ;;  %v8594_v44 = vld [vmem:[#allocation3 + $0x1a4] ss:$16 sps:$4 sm:$0xff]   ;;  %v8596_v45 = vld [vmem:[#allocation3 + $0x1ac] ss:$16 sps:$4 sm:$0xff]  }
  0x39   : > { %1143 = vmatpush1.bf16.msra.mxu0 %v8556_v16  ;;  %1184 = vmatpush1.bf16.msra.mxu1 %v8557_v17  ;;  %11049 = vst [vmem:[#allocation9_spill] sm:$0xff] %v8889_v42  ;;  %s8032_s27 = sshll.u32 %s477_s26, 1  ;;  %v8598_v46 = vld [vmem:[#allocation3 + $0x1a0] ss:$16 sps:$4 sm:$0xff]   ;;  %v8599_v47 = vld [vmem:[#allocation3 + $0x1a8] ss:$16 sps:$4 sm:$0xff]  }
  0x3a   : > { %1144 = vmatprep.subr.bf16.mxu0 %v8558_v18  ;;  %1185 = vmatprep.subr.bf16.mxu1 %v8560_v19  ;;  %s11050_s0 = sld [smem:[#allocation79_spill]]  ;;  %v746_v48 = vsub.s32 1, %v8889_v42  ;;  %v8600_v49 = vld [vmem:[#allocation3 + $0x184] ss:$16 sps:$4 sm:$0xff]   ;;  %v8602_v50 = vld [vmem:[#allocation3 + $0x18c] ss:$16 sps:$4 sm:$0xff]  }
  0x3b   : > { %v8604_v51 = vld [vmem:[#allocation3 + $0x180] ss:$16 sps:$4 sm:$0xff]   ;;  %v8605_v52 = vld [vmem:[#allocation3 + $0x188] ss:$16 sps:$4 sm:$0xff]   ;;  %s11051_s2 = sld [smem:[#allocation81_spill]]  ;;  %s10957_s1 = smov 17  }
  0x3c   : > { %v8606_v63 = vld [vmem:[#allocation3 + $0x164] ss:$16 sps:$4 sm:$0xff]   ;;  %v8608_v0 = vld [vmem:[#allocation3 + $0x16c] ss:$16 sps:$4 sm:$0xff]   ;;  %v8610_v9 = vld [vmem:[#allocation3 + $0x160] ss:$16 sps:$4 sm:$0xff]  }
  0x3d   : > { %1145 = vmatpush1.bf16.msra.mxu0 %v8562_v20  ;;  %1186 = vmatpush1.bf16.msra.mxu1 %v8563_v21  ;;  %v8611_v10 = vld [vmem:[#allocation3 + $0x168] ss:$16 sps:$4 sm:$0xff]   ;;  %v8612_v12 = vld [vmem:[#allocation3 + $0x144] ss:$16 sps:$4 sm:$0xff]   ;;  %v8614_v13 = vld [vmem:[#allocation3 + $0x14c] ss:$16 sps:$4 sm:$0xff]  }
  0x3e   : > { %1146 = vmatprep.subr.bf16.mxu0 %v8564_v22  ;;  %1187 = vmatprep.subr.bf16.mxu1 %v8566_v23  ;;  %v8616_v16 = vld [vmem:[#allocation3 + $0x140] ss:$16 sps:$4 sm:$0xff]   ;;  %v8617_v17 = vld [vmem:[#allocation3 + $0x148] ss:$16 sps:$4 sm:$0xff]   ;;  %v8618_v18 = vld [vmem:[#allocation3 + $0x124] ss:$16 sps:$4 sm:$0xff]  }
  0x3f   : > { %v8620_v19 = vld [vmem:[#allocation3 + $0x12c] ss:$16 sps:$4 sm:$0xff]   ;;  %v8917_v20 = vsub.s32 0, %v8889_v42  ;;  %v8622_v21 = vld [vmem:[#allocation3 + $0x120] ss:$16 sps:$4 sm:$0xff]   ;;  %s10955_s26 = smov 15  }
  0x40   : > { %s479_s30 = scalar_lea.vmem %s11050_s0, %s8032_s27  ;;  %v8623_v22 = vld [vmem:[#allocation3 + $0x128] ss:$16 sps:$4 sm:$0xff]   ;;  %v8624_v23 = vld [vmem:[#allocation3 + $0x104] ss:$16 sps:$4 sm:$0xff]   ;;  %s8730_s27 = smov 16  }
  0x41   : > { %1147 = vmatpush1.bf16.msra.mxu0 %v8568_v24  ;;  %1188 = vmatpush1.bf16.msra.mxu1 %v8569_v25  ;;  %v738_v53 = vld [vmem:[%s479_s30] sm:$0x3]  ;;  %v8124_v55 = vld [vmem:[%s11051_s2 + $0x4] sm:$0x3]  ;;  %v8125_v56 = vld [vmem:[%s11051_s2 + $0x6] sm:$0x3] }
  0x42   : > { %1148 = vmatprep.subr.bf16.mxu0 %v8570_v26  ;;  %1189 = vmatprep.subr.bf16.mxu1 %v8572_v27  ;;  %v747_v54 = vrot.slane %v738_v53, %v746_v48  ;;  %v8126_v57 = vld [vmem:[%s11051_s2 + $0x8] sm:$0x3]  ;;  %v1378_v58 = vunpack.c.l.bf16 %v8124_v55  ;;  %v1446_v59 = vunpack.c.l.bf16 %v8125_v56  ;;  %v8127_v60 = vld [vmem:[%s11051_s2 + $0xa] sm:$0x3]  ;;  %v1235_v61 = vld [vmem:[%s11051_s2] sm:$0x3]  ;;  %v743_v25 = vrot.slane %v738_v53, %v8917_v20 }
  0x43   : > { %v8123_v62 = vld [vmem:[%s11051_s2 + $0x2] sm:$0x3]  ;;  %v1244_v3 = vunpack.c.l.bf16 %v1235_v61  ;;  %v1501_v5 = vunpack.c.l.bf16 %v8126_v57  ;;  %v1569_v6 = vunpack.c.l.bf16 %v8127_v60  ;;  %v8128_v8 = vld [vmem:[%s11051_s2 + $0xc] sm:$0x3]  ;;  %11052 = vst [vmem:[#allocation10_spill] sm:$0xff] %v8917_v20  ;;  %s8731_s28 = smov 1  }
  0x44   : > { %v751_v2 = vpack.c.bf16 %v747_v54, %v747_v54  ;;  %v8474_v4 = vpack.i.bf16 %v1446_v59, %v1378_v58  ;;  %v1310_v7 = vunpack.c.l.bf16 %v8123_v62  ;;  %v1637_v15 = vunpack.c.l.bf16 %v8128_v8  ;;  %v8626_v24 = vld [vmem:[#allocation3 + $0x10c] ss:$16 sps:$4 sm:$0xff]   ;;  %v8628_v26 = vld [vmem:[#allocation3 + $0x100] ss:$16 sps:$4 sm:$0xff]   ;;  %v8629_v27 = vld [vmem:[#allocation3 + $0x108] ss:$16 sps:$4 sm:$0xff]  }
  0x45   : > { %1149 = vmatpush1.bf16.msra.mxu0 %v8574_v28  ;;  %1190 = vmatpush1.bf16.msra.mxu1 %v8575_v29  ;;  %v8479_v14 = vpack.i.bf16 %v1569_v6, %v1501_v5  ;;  %v750_v28 = vpack.c.bf16 %v743_v25, %v743_v25  ;;  %s8732_s29 = smov 127   ;;  %s10961_s30 = smov 113   ;;  %v8129_v54 = vld [vmem:[%s11051_s2 + $0xe] sm:$0x3]  ;;  %v8130_v55 = vld [vmem:[%s11051_s2 + $0x10] sm:$0x3] }
  0x46   : > { %1150 = vmatprep.subr.bf16.mxu0 %v8576_v30  ;;  %1191 = vmatprep.subr.bf16.mxu1 %v8578_v31  ;;  %v8468_v11 = vpack.i.bf16 %v1310_v7, %v1244_v3  ;;  %s10959_s19 = smov 112   ;;  %s8735_s21 = smov 111   ;;  %v1705_v56 = vunpack.c.l.bf16 %v8129_v54  ;;  %v1773_v57 = vunpack.c.l.bf16 %v8130_v55  ;;  %v8736_v5 = vmov 839922192  }
  0x47   : > { %1168 = vmatprep.mubr.bf16.mxu0 %v751_v2  ;;  %1209 = vmatprep.mubr.bf16.mxu1 %v751_v2  ;;  %s11053_s3 = sld [smem:[#allocation82_spill]]  ;;  %v8974_v2 = vand.u32 127, %v10963_v38  ;;  %v1251_v6 = vunpack.c.l.s4 %v8736_v5  ;;  %s8739_s2 = smov [#allocation6]  }
  0x48   : > { %8475 = vperm.xlu0 %8473, %v8474_v4   ;;  %8469 = vperm.xlu1 %8467, %v8468_v11  }
  0x49   : > { %1151 = vmatpush1.bf16.msra.mxu0 %v8580_v32  ;;  %1192 = vmatpush1.bf16.msra.mxu1 %v8581_v33  ;;  %v1252_v11 = vunpack.c.0.s8 %v1251_v6  ;;  %vm1226_vm2 = vcmp.lt.s32.totalorder %v8974_v2, 17  ;;  %vm534_vm3 = vcmp.ge.s32.totalorder %v8974_v2, 16  ;;  %vm1291_vm10 = vcmp.lt.s32.totalorder %v8974_v2, 16 }
  0x4a   : > { %1152 = vmatprep.subr.bf16.mxu0 %v8582_v34  ;;  %1193 = vmatprep.subr.bf16.mxu1 %v8584_v35  ;;  %vm1359_vm13 = vcmp.lt.s32.totalorder %v8974_v2, 15  ;;  %vm1618_vm15 = vcmp.lt.s32.totalorder %v8974_v2, 113 }
  0x4c   : > { %8480 = vperm.xlu0 %8473, %v8479_v14   ;;  %1640 = vperm.xlu1 %8467, %v1637_v15  }
  0x4d   : > { %1153 = vmatpush2.bf16.msra.mxu0 %v8586_v36  ;;  %1194 = vmatpush2.bf16.msra.mxu1 %v8587_v37  ;;  %v1814_v58 = vld [vmem:[%s11053_s3] sm:$0xf] }
  0x4e   : > { %1154 = vmatprep.subr.bf16.mxu0 %v8588_v39  ;;  %1195 = vmatprep.subr.bf16.mxu1 %v8590_v40 }
  0x51   : > { %1155 = vmatpush2.bf16.msra.mxu0 %v8592_v41  ;;  %1196 = vmatpush2.bf16.msra.mxu1 %v8593_v43 }
  0x52   : > { %1156 = vmatprep.subr.bf16.mxu0 %v8594_v44  ;;  %1197 = vmatprep.subr.bf16.mxu1 %v8596_v45 }
  0x55   : > { %1157 = vmatpush2.bf16.msra.mxu0 %v8598_v46  ;;  %1198 = vmatpush2.bf16.msra.mxu1 %v8599_v47 }
  0x56   : > { %1158 = vmatprep.subr.bf16.mxu0 %v8600_v49  ;;  %1199 = vmatprep.subr.bf16.mxu1 %v8602_v50 }
  0x59   : > { %1159 = vmatpush2.bf16.msra.mxu0 %v8604_v51  ;;  %1200 = vmatpush2.bf16.msra.mxu1 %v8605_v52 }
  0x5a   : > { %1160 = vmatprep.subr.bf16.mxu0 %v8606_v63  ;;  %1201 = vmatprep.subr.bf16.mxu1 %v8608_v0 }
  0x5d   : > { %1161 = vmatpush2.bf16.msra.mxu0 %v8610_v9  ;;  %1202 = vmatpush2.bf16.msra.mxu1 %v8611_v10  ;;  %v483_v9 = vadd.s32 128, %v8974_v2  ;;  %v484_v10 = vadd.s32 256, %v8974_v2 }
  0x5e   : > { %1162 = vmatprep.subr.bf16.mxu0 %v8612_v12  ;;  %1203 = vmatprep.subr.bf16.mxu1 %v8614_v13 }
  0x5f   : > { %v497_v14 = vand.u32 15, %v483_v9  ;;  %v504_v15 = vand.u32 15, %v484_v10 }
  0x61   : > { %1163 = vmatpush2.bf16.msra.mxu0 %v8616_v16  ;;  %1204 = vmatpush2.bf16.msra.mxu1 %v8617_v17  ;;  %v8991_v16 = vsub.s32 %v1252_v11, %v8889_v42  ;;  %vm547_vm0 = vcmp.ge.s32.totalorder %v497_v14, 1  ;;  %vm548_vm1 = vcmp.ge.s32.totalorder %v504_v15, 1  ;;  %vm603_vm6 = vcmp.lt.s32.totalorder %v497_v14, 15 }
  0x62   : > { %1164 = vmatprep.subr.bf16.mxu0 %v8618_v18  ;;  %1205 = vmatprep.subr.bf16.mxu1 %v8620_v19  ;;  %vm604_vm7 = vcmp.lt.s32.totalorder %v504_v15, 15 }
  0x65   : > { %1165 = vmatpush2.bf16.msra.mxu0 %v8622_v21  ;;  %1206 = vmatpush2.bf16.msra.mxu1 %v8623_v22  ;;  %v8998_v22 = vadd.s32 384, %v8974_v2 }
  0x66   : > { %1166 = vmatprep.subr.bf16.mxu0 %v8624_v23  ;;  %1207 = vmatprep.subr.bf16.mxu1 %v8626_v24  ;;  %v490_v23 = vand.u32 15, %v8974_v2 }
  0x67   : > { %vm685_vm14 = vcmp.lt.s32.totalorder %v8998_v22, 496 }
  0x68   : > { %vm9024_vm4 = vcmp.ge.s32.totalorder %v490_v23, 1  ;;  %vm9033_vm5 = vcmp.lt.s32.totalorder %v490_v23, 15 }
  0x69   : > { %1167 = vmatpush2.bf16.msra.mxu0 %v8628_v26  ;;  %1208 = vmatpush2.bf16.msra.mxu1 %v8629_v27  ;;  %vm550_vm9 = vmand %vm534_vm3, %vm9024_vm4 }
  0x6a   : > { %vm606_vm12 = vmand %vm534_vm3, %vm9033_vm5 }
  0x6c   : > { %1169 = vmatmul.mubr.bf16.vlgmr.msra.gmra.mxu0 %v750_v28  ;;  %1210 = vmatmul.mubr.bf16.vlgmr.msra.gmra.mxu1 %v750_v28  ;;  %v8737_v28 = vmov 0.0  }
  0x6d   : > { %1929 = vmatprep.mubr.bf16.mxu0 %v10964_v1  ;;  %1970 = vmatprep.mubr.bf16.mxu1 %v10964_v1  ;;  %v9100_v11 = vsel %vm606_vm12, 1.0, %v8737_v28  ;;  %v9143_v54 = vsel %vm685_vm14, 1.0, %v8737_v28 }
  0x6e   : > { %11065 = vst [vmem:[#allocation14_spill] sm:$0xff] %v9143_v54 }
  0xc3   : > { %v8470_v59 = vpop.permute.xlu1 %8469  ;;  %v8476_v60 = vpop.permute.xlu0 %8475 }
  0xc4   : > { %v8478_v17 = vunpack.i.h.bf16 %v8476_v60  ;;  %v8477_v24 = vunpack.i.l.bf16 %v8476_v60  ;;  %v8472_v26 = vunpack.i.h.bf16 %v8470_v59  ;;  %v8471_v27 = vunpack.i.l.bf16 %v8470_v59 }
  0xc5   : > { %v9079_v59 = vsel %vm603_vm6, 1.0, %v8737_v28  ;;  %v9082_v60 = vsel %vm604_vm7, 1.0, %v8737_v28  ;;  %vm1754_vm6 = vcmp.lt.s32.totalorder %v8974_v2, 111  ;;  %vm1884_vm7 = vcmask 1041408  }
  0xc7   : > { %v1641_v61 = vpop.permute.xlu1 %1640  ;;  %v8481_v62 = vpop.permute.xlu0 %8480 }
  0xc8   : > { %v8482_v18 = vunpack.i.l.bf16 %v8481_v62  ;;  %v8483_v25 = vunpack.i.h.bf16 %v8481_v62 }
 0x12c   : > { %v1170_v29 = vpop.f32.mrf.mxu0  ;;  %v1211_v30 = vpop.f32.mrf.mxu1 }
 0x12d   : > { %1222 = vrot.lane.b32.xlu1 %v1211_v30, %s10957_s1  ;;  %1218 = vrot.lane.b32.xlu0 %v1170_v29, %s10957_s1  ;;  %v1493_v31 = vpack.c.bf16 %v1170_v29, %v1170_v29  ;;  %v1495_v32 = vpack.c.bf16 %v1211_v30, %v1211_v30 }
 0x12e   : > { %v1172_v33 = vpop.f32.mrf.mxu0  ;;  %v1213_v34 = vpop.f32.mrf.mxu1 }
 0x12f   : > { %v1494_v35 = vpack.c.bf16 %v1172_v33, %v1172_v33  ;;  %v1496_v36 = vpack.c.bf16 %v1213_v34, %v1213_v34  ;;  %v1497_v37 = vunpack.c.l.bf16 %v1493_v31  ;;  %v1499_v39 = vunpack.c.l.bf16 %v1495_v32 }
 0x130   : > { %v1174_v40 = vpop.f32.mrf.mxu0  ;;  %v1215_v41 = vpop.f32.mrf.mxu1  ;;  %v8484_v53 = vpack.i.bf16 %v1211_v30, %v1172_v33  ;;  %v9009_v31 = vrot.slane %v8478_v17, %v8991_v16  ;;  %v9012_v32 = vrot.slane %v8482_v18, %v8991_v16  ;;  %v9116_v18 = vsel %vm9024_vm4, 1.0, %v8737_v28 }
 0x131   : > { %1351 = vrot.lane.b32.xlu1 %v1170_v29, %s10955_s26  ;;  %1283 = vrot.lane.b32.xlu0 %v1170_v29, %s8730_s27  ;;  %v1498_v43 = vunpack.c.l.bf16 %v1494_v35  ;;  %v1500_v44 = vunpack.c.l.bf16 %v1496_v36  ;;  %v1517_v45 = vrot.slane %v1497_v37, %v8917_v20  ;;  %v1525_v49 = vrot.slane %v1499_v39, %v8917_v20  ;;  %11062 = vst [vmem:[#allocation11_spill] sm:$0xff] %v9116_v18 }
 0x132   : > { %v1175_v46 = vpop.f32.mrf.mxu0  ;;  %v1216_v47 = vpop.f32.mrf.mxu1  ;;  %v511_v35 = vand.u32 15, %v8998_v22  ;;  %v9029_v40 = vrot.slane %v8477_v24, %v8991_v16 }
 0x133   : > { %v1521_v48 = vrot.slane %v1498_v43, %v8917_v20  ;;  %v1529_v50 = vrot.slane %v1500_v44, %v8917_v20  ;;  %v9041_v46 = vrot.slane %v8472_v26, %v8991_v16  ;;  %v9044_v47 = vrot.slane %v8471_v27, %v8991_v16 }
 0x134   : > { %vm9057_vm8 = vcmp.ge.s32.totalorder %v511_v35, 1  ;;  %vm9068_vm11 = vcmp.lt.s32.totalorder %v511_v35, 15  ;;  %v9130_v35 = vsel %vm9033_vm5, 1.0, %v8737_v28  ;;  %vm1550_vm5 = vcmp.lt.s32.totalorder %v8974_v2, 127 }
 0x135   : > { %v8930_v51 = vcombine.low %v1517_v45, %v1521_v48  ;;  %v8932_v52 = vcombine.low %v1525_v49, %v1529_v50  ;;  %1355 = vrot.lane.b32.xlu1 %v1211_v30, %s10955_s26  ;;  %1419 = vrot.lane.b32.xlu0 %v1170_v29, %s8731_s28  ;;  %v9038_v45 = vrot.slane %v8483_v25, %v8991_v16  ;;  %v9090_v62 = vsel %vm9057_vm8, 1.0, %v8737_v28  ;;  %vm729_vm4 = vmand %vm685_vm14, %vm9068_vm11 }
 0x136   : > { %v9047_v48 = vrot.slane %v1641_v61, %v8991_v16  ;;  %v9085_v61 = vsel %vm550_vm9, 1.0, %v8737_v28  ;;  %v9105_v14 = vsel %vm9068_vm11, 1.0, %v8737_v28  ;;  %11063 = vst [vmem:[#allocation12_spill] sm:$0xff] %v9130_v35  ;;  %vm2986_vm9 = vcmask 1043456  }
 0x137   : > { %v9051_v49 = vmul.f32 %v8930_v51, %v9012_v32  ;;  %vm2982_vm11 = vcmask 64512  }
 0x139   : > { %1542 = vrot.lane.b32.xlu1 %v1170_v29, %s8732_s29  ;;  %1423 = vrot.lane.b32.xlu0 %v1211_v30, %s8731_s28 }
 0x13d   : > { %1610 = vrot.lane.b32.xlu1 %v1170_v29, %s10961_s30  ;;  %1546 = vrot.lane.b32.xlu0 %v1211_v30, %s8732_s29 }
 0x141   : > { %1614 = vrot.lane.b32.xlu1 %v1211_v30, %s10961_s30  ;;  %1220 = vrot.lane.b32.xlu0 %v1172_v33, %s10957_s1 }
 0x145   : > { %1678 = vrot.lane.b32.xlu1 %v1170_v29, %s10959_s19  ;;  %8485 = vrot.lane.b32.xlu0 %v8484_v53, %s8730_s27 }
 0x149   : > { %1746 = vrot.lane.b32.xlu1 %v1170_v29, %s8735_s21  ;;  %1353 = vrot.lane.b32.xlu0 %v1172_v33, %s10955_s26  ;;  %v9003_v29 = vsel %vm547_vm0, 1.0, %v8737_v28  ;;  %vm693_vm0 = vmand %vm685_vm14, %vm9057_vm8  ;;  %vm1880_vm8 = vcmask 31744  }
 0x14d   : > { %1224 = vrot.lane.b32.xlu1 %v1213_v34, %s10957_s1  ;;  %1357 = vrot.lane.b32.xlu0 %v1213_v34, %s10955_s26  ;;  %s11067_s1 = smov 17   ;;  %s11068_s26 = smov 15  }
 0x151   : > { %1289 = vrot.lane.b32.xlu1 %v1213_v34, %s8730_s27  ;;  %1612 = vrot.lane.b32.xlu0 %v1172_v33, %s10961_s30 }
 0x155   : > { %1421 = vrot.lane.b32.xlu1 %v1172_v33, %s8731_s28  ;;  %1616 = vrot.lane.b32.xlu0 %v1213_v34, %s10961_s30  ;;  %s11069_s30 = smov 113  }
 0x159   : > { %1425 = vrot.lane.b32.xlu1 %v1213_v34, %s8731_s28  ;;  %1684 = vrot.lane.b32.xlu0 %v1213_v34, %s10959_s19 }
 0x15d   : > { %1544 = vrot.lane.b32.xlu1 %v1172_v33, %s8732_s29  ;;  %8490 = vrot.lane.b32.xlu0 %v8484_v53, %s10959_s19  ;;  %s11070_s19 = smov 112  }
 0x161   : > { %1548 = vrot.lane.b32.xlu1 %v1213_v34, %s8732_s29  ;;  %1748 = vrot.lane.b32.xlu0 %v1172_v33, %s8735_s21 }
 0x165   : > { %1750 = vrot.lane.b32.xlu1 %v1211_v30, %s8735_s21  ;;  %1752 = vrot.lane.b32.xlu0 %v1213_v34, %s8735_s21  ;;  %v9006_v30 = vsel %vm548_vm1, 1.0, %v8737_v28  ;;  %vm1427_vm1 = vcmp.lt.s32.totalorder %v8974_v2, 1 }
 0x169   : > { %1708 = vperm.xlu1 %8467, %v1705_v56   ;;  %1776 = vperm.xlu0 %8473, %v1773_v57  }
 0x16d   : > { %1817 = vperm.xlu1 %8467, %v1814_v58  }
 0x19f   : > { %v8969_v63 = vpop.permute.xlu1 %1222  ;;  %v8971_v0 = vpop.permute.xlu0 %1218 }
 0x1a3   : > { %v8976_v3 = vpop.permute.xlu1 %1351  ;;  %v8978_v4 = vpop.permute.xlu0 %1283 }
 0x1a7   : > { %v8980_v7 = vpop.permute.xlu1 %1355  ;;  %v8982_v8 = vpop.permute.xlu0 %1419 }
 0x1ab   : > { %v8986_v12 = vpop.permute.xlu1 %1542  ;;  %v8988_v13 = vpop.permute.xlu0 %1423 }
 0x1af   : > { %v8993_v19 = vpop.permute.xlu1 %1610  ;;  %v8995_v21 = vpop.permute.xlu0 %1546 }
 0x1b3   : > { %v9014_v33 = vpop.permute.xlu1 %1614  ;;  %v1221_v34 = vpop.permute.xlu0 %1220 }
 0x1b4   : > { %v1228_v36 = vsel %vm1226_vm2, %v1221_v34, %v8969_v63  ;;  %v1229_v37 = vsel %vm1226_vm2, %v8971_v0, %v1221_v34 }
 0x1b5   : > { %v1232_v41 = vmul.f32 %v9003_v29, %v1229_v37  ;;  %v1233_v43 = vmul.f32 %v9006_v30, %v1228_v36  ;;  %v9135_v36 = vsel %vm534_vm3, 1.0, %v8737_v28  ;;  %vm1686_vm3 = vcmp.lt.s32.totalorder %v8974_v2, 112 }
 0x1b7   : > { %v9053_v50 = vpop.permute.xlu1 %1678  ;;  %v9055_v53 = vpop.permute.xlu0 %8485  ;;  %v1237_v57 = vpack.c.bf16 %v1232_v41, %v1232_v41  ;;  %v1238_v58 = vpack.c.bf16 %v1233_v43, %v1233_v43 }
 0x1b8   : > { %v8488_v51 = vunpack.i.h.bf16 %v9055_v53  ;;  %v8487_v55 = vunpack.i.l.bf16 %v9055_v53  ;;  %v9138_v53 = vsel %vm693_vm0, 1.0, %v8737_v28 }
 0x1b9   : > { %v1241_v23 = vunpack.c.l.bf16 %v1237_v57  ;;  %v9123_v24 = vunpack.c.l.bf16 %v1238_v58  ;;  %11064 = vst [vmem:[#allocation13_spill] sm:$0xff] %v9138_v53 }
 0x1ba   : > { %v1293_v5 = vsel %vm1291_vm10, %v8487_v55, %v8488_v51  ;;  %v1294_v6 = vsel %vm1291_vm10, %v8978_v4, %v8487_v55 }
 0x1bb   : > { %v9097_v9 = vpop.permute.xlu1 %1746  ;;  %v1354_v10 = vpop.permute.xlu0 %1353  ;;  %v1303_v27 = vpack.c.bf16 %v1294_v6, %v1294_v6  ;;  %v1304_v34 = vpack.c.bf16 %v1293_v5, %v1293_v5  ;;  %v1264_v5 = vrot.slane %v1241_v23, %v8917_v20  ;;  %v1268_v6 = vrot.slane %v9123_v24, %v8917_v20 }
 0x1bc   : > { %v1361_v15 = vsel %vm1359_vm13, %v1354_v10, %v8980_v7  ;;  %v1362_v17 = vsel %vm1359_vm13, %v8976_v3, %v1354_v10 }
 0x1bd   : > { %v1365_v25 = vmul.f32 %v9079_v59, %v1362_v17  ;;  %v1366_v26 = vmul.f32 %v9082_v60, %v1361_v15  ;;  %v1307_v15 = vunpack.c.l.bf16 %v1303_v27  ;;  %v1308_v17 = vunpack.c.l.bf16 %v1304_v34 }
 0x1bf   : > { %v1371_v37 = vpack.c.bf16 %v1365_v25, %v1365_v25  ;;  %v1372_v39 = vpack.c.bf16 %v1366_v26, %v1366_v26  ;;  %v1225_v41 = vpop.permute.xlu1 %1224  ;;  %v1358_v43 = vpop.permute.xlu0 %1357 }
 0x1c0   : > { %v1227_v44 = vsel %vm1226_vm2, %v8969_v63, %v1225_v41  ;;  %v1230_v55 = vsel %vm1226_vm2, %v1225_v41, %v8971_v0  ;;  %v1360_v57 = vsel %vm1359_vm13, %v8980_v7, %v1358_v43  ;;  %v1363_v58 = vsel %vm1359_vm13, %v1358_v43, %v8976_v3 }
 0x1c1   : > { %v1231_v10 = vmul.f32 %v9085_v61, %v1230_v55  ;;  %v1234_v63 = vmul.f32 %v9090_v62, %v1227_v44  ;;  %v1364_v0 = vmul.f32 %v9100_v11, %v1363_v58  ;;  %v1367_v25 = vmul.f32 %v9105_v14, %v1360_v57 }
 0x1c2   : > { %v1375_v7 = vunpack.c.l.bf16 %v1371_v37  ;;  %v1376_v26 = vunpack.c.l.bf16 %v1372_v39 }
 0x1c3   : > { %v1236_v3 = vpack.c.bf16 %v1231_v10, %v1231_v10  ;;  %v1239_v41 = vpack.c.bf16 %v1234_v63, %v1234_v63  ;;  %v1290_v23 = vpop.permute.xlu1 %1289  ;;  %v1613_v43 = vpop.permute.xlu0 %1612  ;;  %v1370_v38 = vpack.c.bf16 %v1364_v0, %v1364_v0  ;;  %v1373_v24 = vpack.c.bf16 %v1367_v25, %v1367_v25 }
 0x1c4   : > { %v1292_v55 = vsel %vm1291_vm10, %v8488_v51, %v1290_v23  ;;  %v1295_v27 = vsel %vm1291_vm10, %v1290_v23, %v8978_v4  ;;  %v1620_v10 = vsel %vm1618_vm15, %v1613_v43, %v9014_v33  ;;  %v1621_v63 = vsel %vm1618_vm15, %v8993_v19, %v1613_v43 }
 0x1c5   : > { %v1240_v34 = vunpack.c.l.bf16 %v1236_v3  ;;  %v1243_v44 = vunpack.c.l.bf16 %v1239_v41  ;;  %v1296_v57 = vmul.f32 %v9135_v36, %v1295_v27  ;;  %v1305_v58 = vpack.c.bf16 %v1292_v55, %v1292_v55 }
 0x1c6   : > { %v1374_v37 = vunpack.c.l.bf16 %v1370_v38  ;;  %v1377_v39 = vunpack.c.l.bf16 %v1373_v24  ;;  %v1623_v24 = vmul.f32 %v9116_v18, %v1621_v63  ;;  %v1624_v55 = vmul.f32 %v9003_v29, %v1620_v10 }
 0x1c7   : > { %v1260_v51 = vrot.slane %v1240_v34, %v8917_v20  ;;  %v1272_v0 = vrot.slane %v1243_v44, %v8917_v20  ;;  %v1302_v4 = vpack.c.bf16 %v1296_v57, %v1296_v57  ;;  %v1309_v25 = vunpack.c.l.bf16 %v1305_v58  ;;  %v1422_v3 = vpop.permute.xlu1 %1421  ;;  %v1617_v41 = vpop.permute.xlu0 %1616 }
 0x1c8   : > { %v1394_v23 = vrot.slane %v1374_v37, %v8917_v20  ;;  %v1406_v38 = vrot.slane %v1377_v39, %v8917_v20  ;;  %v1334_v43 = vrot.slane %v1308_v17, %v8917_v20  ;;  %v1398_v44 = vrot.slane %v1375_v7, %v8917_v20 }
 0x1c9   : > { %v1277_v27 = vcombine.low %v1260_v51, %v1264_v5  ;;  %v1306_v1 = vunpack.c.l.bf16 %v1302_v4  ;;  %v1338_v34 = vrot.slane %v1309_v25, %v8917_v20  ;;  %v1402_v57 = vrot.slane %v1376_v26, %v8917_v20 }
 0x1ca   : > { %v1278_v58 = vcombine.low %v1268_v6, %v1272_v0  ;;  %v1629_v37 = vpack.c.bf16 %v1623_v24, %v1623_v24  ;;  %v1330_v5 = vrot.slane %v1307_v15, %v8917_v20  ;;  %v1630_v10 = vpack.c.bf16 %v1624_v55, %v1624_v55 }
 0x1cb   : > { %v1326_v39 = vrot.slane %v1306_v1, %v8917_v20  ;;  %v1344_v17 = vcombine.low %v1334_v43, %v1338_v34  ;;  %v1426_v63 = vpop.permute.xlu1 %1425  ;;  %v1281_v56 = vmul.f32 %v1277_v27, %v9044_v47  ;;  %v1411_v51 = vcombine.low %v1394_v23, %v1398_v44  ;;  %v1685_v4 = vpop.permute.xlu0 %1684 }
 0x1cc   : > { %v1412_v22 = vcombine.low %v1402_v57, %v1406_v38  ;;  %v9197_v7 = vsel %vm729_vm4, 1.0, %v8737_v28  ;;  %v1429_v1 = vsel %vm1427_vm1, %v1422_v3, %v8988_v13  ;;  %v1430_v15 = vsel %vm1427_vm1, %v8982_v8, %v1422_v3 }
 0x1cd   : > { %11066 = vst [vmem:[#allocation15_spill] sm:$0xff] %v9197_v7  ;;  %v1343_v26 = vcombine.low %v1326_v39, %v1330_v5  ;;  %v1348_v6 = vmul.f32 %v1344_v17, %v9041_v46  ;;  %v1282_v0 = vmul.f32 %v1278_v58, %v9044_v47  ;;  %v9207_v25 = vunpack.c.l.bf16 %v1629_v37 }
 0x1ce   : > { %v1433_v23 = vmul.f32 %v9003_v29, %v1430_v15  ;;  %v1434_v28 = vmul.f32 %v9006_v30, %v1429_v1  ;;  %v9212_v24 = vunpack.c.l.bf16 %v1630_v10  ;;  %v1619_v55 = vsel %vm1618_vm15, %v9014_v33, %v1617_v41 }
 0x1cf   : > { %v1347_v38 = vmul.f32 %v1343_v26, %v9041_v46  ;;  %v1622_v3 = vsel %vm1618_vm15, %v1617_v41, %v8993_v19  ;;  %v1350_v27 = vadd.f32 %v1348_v6, %v1282_v0  ;;  %v1625_v34 = vmul.f32 %v9006_v30, %v1619_v55  ;;  %v1545_v37 = vpop.permute.xlu1 %1544  ;;  %v8491_v39 = vpop.permute.xlu0 %8490 }
 0x1d0   : > { %v1439_v47 = vpack.c.bf16 %v1433_v23, %v1433_v23  ;;  %v1440_v43 = vpack.c.bf16 %v1434_v28, %v1434_v28  ;;  %v1415_v44 = vmul.f32 %v1411_v51, %v9029_v40  ;;  %v1626_v46 = vmul.f32 %v9138_v53, %v1622_v3 }
 0x1d1   : > { %v1349_v57 = vadd.f32 %v1347_v38, %v1281_v56  ;;  %v1428_v58 = vsel %vm1427_vm1, %v8988_v13, %v1426_v63  ;;  %v1416_v33 = vmul.f32 %v1412_v22, %v9029_v40  ;;  %v1653_v19 = vrot.slane %v9207_v25, %v8917_v20 }
 0x1d2   : > { %v1631_v41 = vpack.c.bf16 %v1625_v34, %v1625_v34  ;;  %v1431_v5 = vsel %vm1427_vm1, %v1426_v63, %v8982_v8  ;;  %v1443_v17 = vunpack.c.l.bf16 %v1439_v47  ;;  %v1632_v10 = vpack.c.bf16 %v1626_v46, %v1626_v46 }
 0x1d3   : > { %v1432_v56 = vmul.f32 %v9116_v18, %v1431_v5  ;;  %v1435_v51 = vmul.f32 %v9090_v62, %v1428_v58  ;;  %v1418_v26 = vadd.f32 %v1416_v33, %v1350_v27  ;;  %v1657_v13 = vrot.slane %v9212_v24, %v8917_v20  ;;  %v1549_v47 = vpop.permute.xlu1 %1548  ;;  %v1749_v46 = vpop.permute.xlu0 %1748 }
 0x1d4   : > { %v1444_v40 = vunpack.c.l.bf16 %v1440_v43  ;;  %v1690_v22 = vsel %vm1686_vm3, %v1685_v4, %v9053_v50  ;;  %v1417_v6 = vadd.f32 %v1415_v44, %v1349_v57  ;;  %v9241_v63 = vunpack.c.l.bf16 %v1631_v41 }
 0x1d5   : > { %v1438_v1 = vpack.c.bf16 %v1432_v56, %v1432_v56  ;;  %v1441_v15 = vpack.c.bf16 %v1435_v51, %v1435_v51  ;;  %v1694_v8 = vmul.f32 %v9143_v54, %v1690_v22  ;;  %v1552_v0 = vsel %vm1550_vm5, %v1545_v37, %v8995_v21 }
 0x1d6   : > { %v1553_v23 = vsel %vm1550_vm5, %v8986_v12, %v1545_v37  ;;  %v8493_v28 = vunpack.i.h.bf16 %v8491_v39  ;;  %v1466_v38 = vrot.slane %v1443_v17, %v8917_v20  ;;  %v9250_v55 = vunpack.c.l.bf16 %v1632_v10 }
 0x1d7   : > { %v1442_v3 = vunpack.c.l.bf16 %v1438_v1  ;;  %v1445_v27 = vunpack.c.l.bf16 %v1441_v15  ;;  %v1555_v43 = vmul.f32 %v9130_v35, %v1553_v23  ;;  %v1556_v34 = vmul.f32 %v9079_v59, %v1552_v0 }
 0x1d8   : > { %v1687_v44 = vsel %vm1686_vm3, %v8493_v28, %v1685_v4  ;;  %v8492_v57 = vunpack.i.l.bf16 %v8491_v39  ;;  %v1470_v58 = vrot.slane %v1444_v40, %v8917_v20  ;;  %v1700_v41 = vpack.c.bf16 %v1694_v8, %v1694_v8 }
 0x1d9   : > { %v1462_v37 = vrot.slane %v1442_v3, %v8917_v20  ;;  %v1474_v33 = vrot.slane %v1445_v27, %v8917_v20  ;;  %v1661_v5 = vrot.slane %v9241_v63, %v8917_v20  ;;  %v1561_v17 = vpack.c.bf16 %v1555_v43, %v1555_v43  ;;  %v1753_v43 = vpop.permute.xlu0 %1752 }
 0x1da   : > { %v1562_v10 = vpack.c.bf16 %v1556_v34, %v1556_v34  ;;  %v1699_v56 = vpack.c.bf16 %v1687_v44, %v1687_v44  ;;  %v1665_v51 = vrot.slane %v9250_v55, %v8917_v20  ;;  %v1689_v39 = vsel %vm1686_vm3, %v9053_v50, %v8492_v57 }
 0x1db   : > { %v1479_v22 = vcombine.low %v1462_v37, %v1466_v38  ;;  %v1480_v4 = vcombine.low %v1470_v58, %v1474_v33  ;;  %v1565_v40 = vunpack.c.l.bf16 %v1561_v17  ;;  %v1688_v15 = vsel %vm1686_vm3, %v8492_v57, %v8493_v28  ;;  %v1751_v38 = vpop.permute.xlu1 %1750 }
 0x1dc   : > { %v1566_v1 = vunpack.c.l.bf16 %v1562_v10  ;;  %v1697_v8 = vpack.c.bf16 %v1689_v39, %v1689_v39  ;;  %v1704_v0 = vunpack.c.l.bf16 %v1700_v41  ;;  %v1703_v23 = vunpack.c.l.bf16 %v1699_v56 }
 0x1dd   : > { %v1483_v63 = vmul.f32 %v1479_v22, %v9009_v31  ;;  %v1551_v55 = vsel %vm1550_vm5, %v8995_v21, %v1549_v47  ;;  %v1484_v3 = vmul.f32 %v1480_v4, %v9009_v31  ;;  %v1585_v27 = vrot.slane %v1565_v40, %v8917_v20 }
 0x1de   : > { %v1589_v50 = vrot.slane %v1566_v1, %v8917_v20  ;;  %v1554_v28 = vsel %vm1550_vm5, %v1549_v47, %v8986_v12  ;;  %v1698_v44 = vpack.c.bf16 %v1688_v15, %v1688_v15  ;;  %v1701_v57 = vunpack.c.l.bf16 %v1697_v8 }
 0x1df   : > { %v1485_v34 = vadd.f32 %v1483_v63, %v1417_v6  ;;  %v1557_v58 = vmul.f32 %v9082_v60, %v1551_v55  ;;  %v1558_v21 = vmul.f32 %v9105_v14, %v1554_v28  ;;  %v1757_v31 = vsel %vm1754_vm6, %v9097_v9, %v1749_v46 }
 0x1e0   : > { %v1602_v37 = vcombine.low %v1585_v27, %v1589_v50  ;;  %v1756_v33 = vsel %vm1754_vm6, %v1749_v46, %v1751_v38  ;;  %v1759_v17 = vmul.f32 %v9130_v35, %v1757_v31  ;;  %v1755_v6 = vsel %vm1754_vm6, %v1751_v38, %v1753_v43 }
 0x1e1   : > { %v1563_v41 = vpack.c.bf16 %v1557_v58, %v1557_v58  ;;  %v1760_v12 = vmul.f32 %v9079_v59, %v1756_v33  ;;  %v1486_v47 = vadd.f32 %v1484_v3, %v1418_v26  ;;  %v1564_v10 = vpack.c.bf16 %v1558_v21, %v1558_v21 }
 0x1e2   : > { %v1758_v56 = vsel %vm1754_vm6, %v1753_v43, %v9097_v9  ;;  %v1761_v22 = vmul.f32 %v9082_v60, %v1755_v6  ;;  %v1765_v39 = vpack.c.bf16 %v1759_v17, %v1759_v17  ;;  %v1606_v1 = vmul.f32 %v1602_v37, %v9038_v45 }
 0x1e3   : > { %v1567_v4 = vunpack.c.l.bf16 %v1563_v41  ;;  %v1766_v40 = vpack.c.bf16 %v1760_v12, %v1760_v12  ;;  %v1762_v46 = vmul.f32 %v9197_v7, %v1758_v56  ;;  %v1568_v15 = vunpack.c.l.bf16 %v1564_v10 }
 0x1e4   : > { %v1767_v8 = vpack.c.bf16 %v1761_v22, %v1761_v22  ;;  %v1540_v63 = vadd.f32 %v9051_v49, %v1485_v34  ;;  %v1702_v55 = vunpack.c.l.bf16 %v1698_v44  ;;  %v1539_v9 = vmul.f32 %v8932_v52, %v9012_v32  ;;  %v1709_v43 = vpop.permute.xlu1 %1708  ;;  %v1777_v31 = vpop.permute.xlu0 %1776 }
 0x1e5   : > { %v1593_v26 = vrot.slane %v1567_v4, %v8917_v20  ;;  %v1770_v38 = vunpack.c.l.bf16 %v1766_v40  ;;  %v1768_v3 = vpack.c.bf16 %v1762_v46, %v1762_v46  ;;  %v1670_v27 = vcombine.low %v1653_v19, %v1657_v13 }
 0x1e6   : > { %v1597_v50 = vrot.slane %v1568_v15, %v8917_v20  ;;  %v1771_v28 = vunpack.c.l.bf16 %v1767_v8  ;;  %v1671_v49 = vcombine.low %v1661_v5, %v1665_v51  ;;  %v1733_v34 = vrot.slane %v1704_v0, %v8917_v20 }
 0x1e7   : > { %v1769_v44 = vunpack.c.l.bf16 %v1765_v39  ;;  %v1772_v58 = vunpack.c.l.bf16 %v1768_v3  ;;  %v1793_v21 = vrot.slane %v1770_v38, %v8917_v20  ;;  %v1541_v52 = vadd.f32 %v1539_v9, %v1486_v47 }
 0x1e8   : > { %v1603_v37 = vcombine.low %v1593_v26, %v1597_v50  ;;  %v1608_v32 = vadd.f32 %v1606_v1, %v1540_v63  ;;  %v1717_v24 = vrot.slane %v1709_v43, %v8991_v16  ;;  %v1721_v25 = vrot.slane %v1701_v57, %v8917_v20  ;;  %v1818_v39 = vpop.permute.xlu1 %1817 }
 0x1e9   : > { %v1725_v19 = vrot.slane %v1702_v55, %v8917_v20  ;;  %v1729_v13 = vrot.slane %v1703_v23, %v8917_v20  ;;  %v1797_v51 = vrot.slane %v1771_v28, %v8917_v20  ;;  %v1801_v0 = vrot.slane %v1772_v58, %v8917_v20  ;;  %v2925_v28 = vld [vmem:[%s10945_s5] sm:$0xff] }
 0x1ea   : > { %v1607_v5 = vmul.f32 %v1603_v37, %v9038_v45  ;;  %v1674_v33 = vmul.f32 %v1670_v27, %v9047_v48  ;;  %v1789_v41 = vrot.slane %v1769_v44, %v8917_v20  ;;  %v1785_v6 = vrot.slane %v1777_v31, %v8991_v16 }
 0x1eb   : > { %v1738_v17 = vcombine.low %v1721_v25, %v1725_v19  ;;  %v1739_v12 = vcombine.low %v1729_v13, %v1733_v34  ;;  %v1675_v57 = vmul.f32 %v1671_v49, %v9047_v48  ;;  %v1807_v4 = vcombine.low %v1797_v51, %v1801_v0 }
 0x1ec   : > { %v1609_v47 = vadd.f32 %v1607_v5, %v1541_v52  ;;  %v1676_v10 = vadd.f32 %v1674_v33, %v1608_v32  ;;  %v1806_v22 = vcombine.low %v1789_v41, %v1793_v21  ;;  %v1825_v63 = vrot.slane %v1818_v39, %v8991_v16 }
 0x1ed   : > { %v1742_v56 = vmul.f32 %v1738_v17, %v1717_v24  ;;  %v1743_v23 = vmul.f32 %v1739_v12, %v1717_v24  ;;  %v1811_v15 = vmul.f32 %v1807_v4, %v1785_v6  ;;  %v8131_v12 = vld [vmem:[%s10944_s4 + $0x4] sm:$0xf]  ;;  %v11075_v39 = vmov 0  }
 0x1ee   : > { %v1677_v45 = vadd.f32 %v1675_v57, %v1609_v47  ;;  %v1810_v46 = vmul.f32 %v1806_v22, %v1785_v6 }
 0x1ef   : > { %v1744_v40 = vadd.f32 %v1742_v56, %v1676_v10 }
 0x1f0   : > { %v1745_v1 = vadd.f32 %v1743_v23, %v1677_v45 }
 0x1f1   : > { %v1812_v8 = vadd.f32 %v1810_v46, %v1744_v40 }
 0x1f2   : > { %v1813_v55 = vadd.f32 %v1811_v15, %v1745_v1 }
 0x1f3   : > { %v1827_v26 = vadd.f32 %v1825_v63, %v1812_v8 }
 0x1f4   : > { %v1828_v38 = vadd.f32 %v1825_v63, %v1813_v55 }
 0x1f5   : > { %v9320_v3 = vmax.f32 %v1827_v26, 0.0 }
 0x1f6   : > { %v9322_v48 = vmax.f32 %v1828_v38, 0.0 }
 0x1f7   : > { %1858 = vrot.lane.b32.xlu0 %v9320_v3, %s8730_s27  ;;  %v9328_v9 = vcombine.high %v9320_v3, %v9320_v3 }
 0x1f8   : > { %v9332_v27 = vcombine.high %v9322_v48, %v9322_v48 }
 0x1f9   : > { %v8494_v16 = vpack.i.bf16 %v9322_v48, %v9328_v9  ;;  %v8499_v50 = vpack.i.bf16 %v9328_v9, %v9322_v48 }
 0x1fb   : > { %1864 = vrot.lane.b32.xlu0 %v9332_v27, %s8730_s27  ;;  %8495 = vrot.lane.b32.xlu1 %v8494_v16, %s8730_s27  ;;  %v1853_v16 = vld [vmem:[%s10944_s4] sm:$0xf] }
 0x1ff   : > { %1841 = vrot.lane.b32.xlu0 %v9322_v48, %s11067_s1  ;;  %1839 = vrot.lane.b32.xlu1 %v9328_v9, %s11067_s1 }
 0x203   : > { %1837 = vrot.lane.b32.xlu0 %v9320_v3, %s11067_s1  ;;  %1843 = vrot.lane.b32.xlu1 %v9332_v27, %s11067_s1 }
 0x207   : > { %2080 = vrot.lane.b32.xlu0 %v9322_v48, %s11068_s26  ;;  %2078 = vrot.lane.b32.xlu1 %v9328_v9, %s11068_s26 }
 0x20b   : > { %2076 = vrot.lane.b32.xlu0 %v9320_v3, %s11068_s26  ;;  %2082 = vrot.lane.b32.xlu1 %v9332_v27, %s11068_s26 }
 0x20f   : > { %2203 = vrot.lane.b32.xlu0 %v9322_v48, %s8731_s28  ;;  %2201 = vrot.lane.b32.xlu1 %v9328_v9, %s8731_s28 }
 0x213   : > { %2199 = vrot.lane.b32.xlu0 %v9320_v3, %s8731_s28  ;;  %2205 = vrot.lane.b32.xlu1 %v9332_v27, %s8731_s28 }
 0x217   : > { %2437 = vrot.lane.b32.xlu0 %v9322_v48, %s8732_s29  ;;  %2433 = vrot.lane.b32.xlu1 %v9320_v3, %s8732_s29 }
 0x21b   : > { %2435 = vrot.lane.b32.xlu0 %v9328_v9, %s8732_s29  ;;  %2439 = vrot.lane.b32.xlu1 %v9332_v27, %s8732_s29 }
 0x21f   : > { %2560 = vrot.lane.b32.xlu0 %v9322_v48, %s11069_s30  ;;  %2556 = vrot.lane.b32.xlu1 %v9320_v3, %s11069_s30 }
 0x223   : > { %2558 = vrot.lane.b32.xlu0 %v9328_v9, %s11069_s30  ;;  %2562 = vrot.lane.b32.xlu1 %v9332_v27, %s11069_s30 }
 0x227   : > { %2685 = vrot.lane.b32.xlu0 %v9332_v27, %s11070_s19  ;;  %2679 = vrot.lane.b32.xlu1 %v9320_v3, %s11070_s19 }
 0x22b   : > { %2802 = vrot.lane.b32.xlu0 %v9320_v3, %s8735_s21  ;;  %8500 = vrot.lane.b32.xlu1 %v8499_v50, %s11070_s19 }
 0x22f   : > { %2808 = vrot.lane.b32.xlu0 %v9332_v27, %s8735_s21  ;;  %2806 = vrot.lane.b32.xlu1 %v9322_v48, %s8735_s21 }
 0x233   : > { %2928 = vperm.xlu0 %8473, %v2925_v28   ;;  %2804 = vrot.lane.b32.xlu1 %v9328_v9, %s8735_s21 }
 0x269   : > { %v1859_v43 = vpop.permute.xlu0 %1858 }
 0x26d   : > { %v1865_v49 = vpop.permute.xlu0 %1864  ;;  %v8496_v34 = vpop.permute.xlu1 %8495 }
 0x26e   : > { %v1869_v44 = vsel %vm1291_vm10, %v1865_v49, %v1859_v43  ;;  %v8498_v58 = vunpack.i.h.bf16 %v8496_v34  ;;  %v8497_v37 = vunpack.i.l.bf16 %v8496_v34 }
 0x26f   : > { %v1870_v21 = vmul.f32 %v9135_v36, %v1869_v44 }
 0x270   : > { %v1868_v52 = vsel %vm1291_vm10, %v1859_v43, %v8497_v37  ;;  %v1866_v32 = vsel %vm1291_vm10, %v8498_v58, %v1865_v49  ;;  %v1867_v31 = vsel %vm1291_vm10, %v8497_v37, %v8498_v58 }
 0x271   : > { %v1876_v24 = vpack.c.bf16 %v1870_v21, %v1870_v21  ;;  %v1842_v25 = vpop.permute.xlu0 %1841  ;;  %v1840_v19 = vpop.permute.xlu1 %1839  ;;  %v9406_v13 = vpack.c.bf16 %v1868_v52, %v1868_v52  ;;  %v9408_v5 = vpack.c.bf16 %v1866_v32, %v1866_v32  ;;  %v1878_v51 = vpack.c.bf16 %v1867_v31, %v1867_v31 }
 0x272   : > { %v1846_v0 = vsel %vm1226_vm2, %v1840_v19, %v1842_v25 }
 0x273   : > { %11071 = vst [vmem:[#allocation16_spill] sm:$0xff] %v9406_v13  ;;  %11072 = vst [vmem:[#allocation17_spill] sm:$0xff] %v9408_v5  ;;  %v1851_v33 = vmul.f32 %v9006_v30, %v1846_v0  ;;  %8132 = vmatprep.subr.msk.bf16.mxu0 %vm1884_vm7, %v9406_v13  ;;  %8134 = vmatprep.subr.msk.bf16.mxu1 %vm1884_vm7, %v9408_v5  ;;  %v9418_v41 = vsel %vm1884_vm7, %v1876_v24, 0  ;;  %v9421_v17 = vsel %vm1884_vm7, %v1878_v51, 0 }
 0x274   : > { %11073 = vst [vmem:[#allocation18_spill] sm:$0xff] %v9418_v41  ;;  %11074 = vst [vmem:[#allocation19_spill] sm:$0xff] %v9421_v17  ;;  %1912 = vmatpush1.bf16.msra.mxu0 %v9418_v41  ;;  %1953 = vmatpush1.bf16.msra.mxu1 %v9421_v17 }
 0x275   : > { %v1838_v6 = vpop.permute.xlu0 %1837  ;;  %v1844_v47 = vpop.permute.xlu1 %1843  ;;  %v1856_v57 = vpack.c.bf16 %v1851_v33, %v1851_v33 }
 0x276   : > { %v1847_v10 = vsel %vm1226_vm2, %v1838_v6, %v1840_v19  ;;  %v1845_v56 = vsel %vm1226_vm2, %v1842_v25, %v1844_v47  ;;  %v1848_v23 = vsel %vm1226_vm2, %v1844_v47, %v1838_v6 }
 0x277   : > { %v1850_v22 = vmul.f32 %v9003_v29, %v1847_v10  ;;  %v1849_v45 = vmul.f32 %v9085_v61, %v1848_v23  ;;  %v1852_v4 = vmul.f32 %v9090_v62, %v1845_v56  ;;  %8133 = vmatmul.mubr.msk.bf16.vlgmr.msra.gmra.mxu0 %vm1880_vm8, %v8131_v12  ;;  %8135 = vmatmul.mubr.msk.bf16.vlgmr.msra.gmra.mxu1 %vm1880_vm8, %v8131_v12  ;;  %v9456_v38 = vsel %vm1884_vm7, %v1856_v57, 0  ;;  %v8140_v12 = vld [vmem:[%s10944_s4 + $0x8] sm:$0xf] }
 0x278   : > { %2026 = vmatprep.mubr.bf16.mxu0 %v11075_v39  ;;  %2067 = vmatprep.mubr.bf16.mxu1 %v11075_v39  ;;  %11079 = vst [vmem:[#allocation23_spill] sm:$0xff] %v9456_v38 }
 0x279   : > { %v9441_v40 = vpack.c.bf16 %v1850_v22, %v1850_v22  ;;  %v1854_v46 = vpack.c.bf16 %v1849_v45, %v1849_v45  ;;  %v9443_v1 = vpack.c.bf16 %v1852_v4, %v1852_v4  ;;  %v2081_v15 = vpop.permute.xlu0 %2080  ;;  %v2079_v8 = vpop.permute.xlu1 %2078 }
 0x27a   : > { %v2085_v63 = vsel %vm1359_vm13, %v2079_v8, %v2081_v15 }
 0x27b   : > { %11076 = vst [vmem:[#allocation20_spill] sm:$0xff] %v9441_v40  ;;  %11077 = vst [vmem:[#allocation21_spill] sm:$0xff] %v9443_v1  ;;  %v2090_v55 = vmul.f32 %v9082_v60, %v2085_v63  ;;  %8136 = vmatprep.subr.msk.bf16.mxu0 %vm1884_vm7, %v9441_v40  ;;  %8138 = vmatprep.subr.msk.bf16.mxu1 %vm1884_vm7, %v9443_v1  ;;  %v9453_v26 = vsel %vm1884_vm7, %v1854_v46, 0 }
 0x27c   : > { %11078 = vst [vmem:[#allocation22_spill] sm:$0xff] %v9453_v26  ;;  %2009 = vmatpush1.bf16.msra.mxu0 %v9453_v26  ;;  %2050 = vmatpush1.bf16.msra.mxu1 %v9456_v38 }
 0x27d   : > { %v2077_v50 = vpop.permute.xlu0 %2076  ;;  %v2083_v28 = vpop.permute.xlu1 %2082  ;;  %v2096_v43 = vpack.c.bf16 %v2090_v55, %v2090_v55 }
 0x27e   : > { %v2086_v49 = vsel %vm1359_vm13, %v2077_v50, %v2079_v8  ;;  %v2084_v34 = vsel %vm1359_vm13, %v2081_v15, %v2083_v28  ;;  %v2087_v44 = vsel %vm1359_vm13, %v2083_v28, %v2077_v50 }
 0x27f   : > { %v2089_v58 = vmul.f32 %v9079_v59, %v2086_v49  ;;  %v2088_v37 = vmul.f32 %v9100_v11, %v2087_v44  ;;  %v2091_v21 = vmul.f32 %v9105_v14, %v2084_v34  ;;  %8137 = vmatmul.mubr.msk.bf16.vlgmr.msra.gmra.mxu0 %vm1880_vm8, %v1853_v16  ;;  %8139 = vmatmul.mubr.msk.bf16.vlgmr.msra.gmra.mxu1 %vm1880_vm8, %v1853_v16  ;;  %v9491_v33 = vsel %vm1884_vm7, %v2096_v43, 0 }
 0x280   : > { %2145 = vmatprep.mubr.bf16.mxu0 %v11075_v39  ;;  %2186 = vmatprep.mubr.bf16.mxu1 %v11075_v39  ;;  %11083 = vst [vmem:[#allocation27_spill] sm:$0xff] %v9491_v33  ;;  %v2328_v16 = vpack.c.bf16 %v9320_v3, %v9320_v3  ;;  %v9529_v43 = vpack.c.bf16 %v9328_v9, %v9328_v9  ;;  %v8145_v3 = vld [vmem:[%s10944_s4 + $0xc] sm:$0xf] }
 0x281   : > { %v9476_v52 = vpack.c.bf16 %v2089_v58, %v2089_v58  ;;  %v2094_v32 = vpack.c.bf16 %v2088_v37, %v2088_v37  ;;  %v9478_v31 = vpack.c.bf16 %v2091_v21, %v2091_v21  ;;  %v2204_v24 = vpop.permute.xlu0 %2203  ;;  %v2202_v25 = vpop.permute.xlu1 %2201  ;;  %v9533_v49 = vpack.c.bf16 %v9332_v27, %v9332_v27 }
 0x282   : > { %v2208_v19 = vsel %vm1427_vm1, %v2202_v25, %v2204_v24  ;;  %11088 = vst [vmem:[#allocation32_spill] sm:$0xff] %v9529_v43  ;;  %v2330_v34 = vpack.c.bf16 %v9322_v48, %v9322_v48 }
 0x283   : > { %11080 = vst [vmem:[#allocation24_spill] sm:$0xff] %v9476_v52  ;;  %11081 = vst [vmem:[#allocation25_spill] sm:$0xff] %v9478_v31  ;;  %v2213_v51 = vmul.f32 %v9006_v30, %v2208_v19  ;;  %8141 = vmatprep.subr.msk.bf16.mxu0 %vm1884_vm7, %v9476_v52  ;;  %8143 = vmatprep.subr.msk.bf16.mxu1 %vm1884_vm7, %v9478_v31  ;;  %v9488_v0 = vsel %vm1884_vm7, %v2094_v32, 0 }
 0x284   : > { %11082 = vst [vmem:[#allocation26_spill] sm:$0xff] %v9488_v0  ;;  %2128 = vmatpush1.bf16.msra.mxu0 %v9488_v0  ;;  %2169 = vmatpush1.bf16.msra.mxu1 %v9491_v33  ;;  %11089 = vst [vmem:[#allocation33_spill] sm:$0xff] %v9533_v49 }
 0x285   : > { %v2200_v6 = vpop.permute.xlu0 %2199  ;;  %v2206_v47 = vpop.permute.xlu1 %2205  ;;  %v2219_v57 = vpack.c.bf16 %v2213_v51, %v2213_v51  ;;  %v9565_v51 = vsel %vm1884_vm7, %v2330_v34, 0 }
 0x286   : > { %v2209_v10 = vsel %vm1427_vm1, %v2200_v6, %v2202_v25  ;;  %v2207_v56 = vsel %vm1427_vm1, %v2204_v24, %v2206_v47  ;;  %v2210_v23 = vsel %vm1427_vm1, %v2206_v47, %v2200_v6  ;;  %v9559_v25 = vsel %vm1884_vm7, %v2328_v16, 0  ;;  %11091 = vst [vmem:[#allocation35_spill] sm:$0xff] %v9565_v51 }
 0x287   : > { %v2212_v22 = vmul.f32 %v9003_v29, %v2209_v10  ;;  %v2211_v45 = vmul.f32 %v9116_v18, %v2210_v23  ;;  %v2214_v4 = vmul.f32 %v9090_v62, %v2207_v56  ;;  %8142 = vmatmul.mubr.msk.bf16.vlgmr.msra.gmra.mxu0 %vm1880_vm8, %v8140_v12  ;;  %8144 = vmatmul.mubr.msk.bf16.vlgmr.msra.gmra.mxu1 %vm1880_vm8, %v8140_v12  ;;  %v9525_v28 = vsel %vm1884_vm7, %v2219_v57, 0  ;;  %v8150_v23 = vld [vmem:[%s10944_s4 + $0x10] sm:$0xf] }
 0x288   : > { %2268 = vmatprep.mubr.bf16.mxu0 %v11075_v39  ;;  %2309 = vmatprep.mubr.bf16.mxu1 %v11075_v39  ;;  %11087 = vst [vmem:[#allocation31_spill] sm:$0xff] %v9525_v28  ;;  %11090 = vst [vmem:[#allocation34_spill] sm:$0xff] %v9559_v25 }
 0x289   : > { %v9511_v46 = vpack.c.bf16 %v2212_v22, %v2212_v22  ;;  %v2217_v15 = vpack.c.bf16 %v2211_v45, %v2211_v45  ;;  %v9513_v8 = vpack.c.bf16 %v2214_v4, %v2214_v4  ;;  %v2438_v63 = vpop.permute.xlu0 %2437  ;;  %v2434_v55 = vpop.permute.xlu1 %2433 }
 0x28b   : > { %11084 = vst [vmem:[#allocation28_spill] sm:$0xff] %v9511_v46  ;;  %11085 = vst [vmem:[#allocation29_spill] sm:$0xff] %v9513_v8  ;;  %8146 = vmatprep.subr.msk.bf16.mxu0 %vm1884_vm7, %v9511_v46  ;;  %8148 = vmatprep.subr.msk.bf16.mxu1 %vm1884_vm7, %v9513_v8  ;;  %v9522_v50 = vsel %vm1884_vm7, %v2217_v15, 0 }
 0x28c   : > { %11086 = vst [vmem:[#allocation30_spill] sm:$0xff] %v9522_v50  ;;  %2251 = vmatpush1.bf16.msra.mxu0 %v9522_v50  ;;  %2292 = vmatpush1.bf16.msra.mxu1 %v9525_v28 }
 0x28d   : > { %v2436_v44 = vpop.permute.xlu0 %2435  ;;  %v2440_v58 = vpop.permute.xlu1 %2439  ;;  %8151 = vmatprep.subr.msk.bf16.mxu0 %vm1884_vm7, %v9529_v43  ;;  %8153 = vmatprep.subr.msk.bf16.mxu1 %vm1884_vm7, %v9533_v49 }
 0x28e   : > { %v2442_v9 = vsel %vm1550_vm5, %v2436_v44, %v2438_v63  ;;  %v2443_v27 = vsel %vm1550_vm5, %v2434_v55, %v2436_v44  ;;  %v2441_v37 = vsel %vm1550_vm5, %v2438_v63, %v2440_v58  ;;  %v2444_v48 = vsel %vm1550_vm5, %v2440_v58, %v2434_v55 }
 0x28f   : > { %v2445_v21 = vmul.f32 %v9130_v35, %v2443_v27  ;;  %v2446_v32 = vmul.f32 %v9079_v59, %v2442_v9  ;;  %v2448_v24 = vmul.f32 %v9105_v14, %v2444_v48  ;;  %8147 = vmatmul.mubr.msk.bf16.vlgmr.msra.gmra.mxu0 %vm1880_vm8, %v8145_v3  ;;  %v2447_v19 = vmul.f32 %v9082_v60, %v2441_v37 }
 0x290   : > { %8149 = vmatmul.mubr.msk.bf16.vlgmr.msra.gmra.mxu1 %vm1880_vm8, %v8145_v3  ;;  %2362 = vmatpush1.bf16.msra.mxu0 %v9559_v25 }
 0x291   : > { %v9567_v12 = vpack.c.bf16 %v2446_v32, %v2446_v32  ;;  %v9569_v6 = vpack.c.bf16 %v2448_v24, %v2448_v24  ;;  %2403 = vmatpush1.bf16.msra.mxu1 %v9565_v51  ;;  %v2561_v47 = vpop.permute.xlu0 %2560  ;;  %v2557_v57 = vpop.permute.xlu1 %2556  ;;  %2379 = vmatprep.mubr.bf16.mxu0 %v11075_v39  ;;  %v2451_v10 = vpack.c.bf16 %v2445_v21, %v2445_v21 }
 0x292   : > { %2420 = vmatprep.mubr.bf16.mxu1 %v11075_v39  ;;  %v2453_v56 = vpack.c.bf16 %v2447_v19, %v2447_v19 }
 0x293   : > { %11092 = vst [vmem:[#allocation36_spill] sm:$0xff] %v9567_v12  ;;  %11093 = vst [vmem:[#allocation37_spill] sm:$0xff] %v9569_v6  ;;  %8156 = vmatprep.subr.msk.bf16.mxu0 %vm1884_vm7, %v9567_v12  ;;  %8158 = vmatprep.subr.msk.bf16.mxu1 %vm1884_vm7, %v9569_v6  ;;  %v9594_v44 = vsel %vm1884_vm7, %v2451_v10, 0 }
 0x294   : > { %11094 = vst [vmem:[#allocation38_spill] sm:$0xff] %v9594_v44  ;;  %v9600_v9 = vsel %vm1884_vm7, %v2453_v56, 0 }
 0x295   : > { %v2559_v22 = vpop.permute.xlu0 %2558  ;;  %v2563_v45 = vpop.permute.xlu1 %2562  ;;  %11095 = vst [vmem:[#allocation39_spill] sm:$0xff] %v9600_v9 }
 0x296   : > { %v2565_v4 = vsel %vm1618_vm15, %v2559_v22, %v2561_v47  ;;  %v2566_v15 = vsel %vm1618_vm15, %v2557_v57, %v2559_v22  ;;  %v2564_v63 = vsel %vm1618_vm15, %v2561_v47, %v2563_v45  ;;  %v2567_v55 = vsel %vm1618_vm15, %v2563_v45, %v2557_v57  ;;  %v8155_v57 = vld [vmem:[%s10944_s4 + $0x14] sm:$0xf] }
 0x297   : > { %v2568_v16 = vmul.f32 %v9116_v18, %v2566_v15  ;;  %v2569_v3 = vmul.f32 %v9003_v29, %v2565_v4  ;;  %v2571_v34 = vmul.f32 %v9138_v53, %v2567_v55  ;;  %8152 = vmatmul.mubr.msk.bf16.vlgmr.msra.gmra.mxu0 %vm1880_vm8, %v8150_v23  ;;  %v2570_v58 = vmul.f32 %v9006_v30, %v2564_v63 }
 0x298   : > { %8154 = vmatmul.mubr.msk.bf16.vlgmr.msra.gmra.mxu1 %vm1880_vm8, %v8150_v23  ;;  %2485 = vmatpush1.bf16.msra.mxu0 %v9594_v44 }
 0x299   : > { %v9602_v27 = vpack.c.bf16 %v2569_v3, %v2569_v3  ;;  %v9604_v37 = vpack.c.bf16 %v2571_v34, %v2571_v34  ;;  %2526 = vmatpush1.bf16.msra.mxu1 %v9600_v9  ;;  %v2686_v48 = vpop.permute.xlu0 %2685  ;;  %v2680_v21 = vpop.permute.xlu1 %2679  ;;  %2502 = vmatprep.mubr.bf16.mxu0 %v11075_v39  ;;  %v2574_v24 = vpack.c.bf16 %v2568_v16, %v2568_v16 }
 0x29a   : > { %v2690_v32 = vsel %vm1686_vm3, %v2686_v48, %v2680_v21  ;;  %2543 = vmatprep.mubr.bf16.mxu1 %v11075_v39  ;;  %v2576_v47 = vpack.c.bf16 %v2570_v58, %v2570_v58 }
 0x29b   : > { %11096 = vst [vmem:[#allocation40_spill] sm:$0xff] %v9602_v27  ;;  %11097 = vst [vmem:[#allocation41_spill] sm:$0xff] %v9604_v37  ;;  %v2694_v19 = vmul.f32 %v9143_v54, %v2690_v32  ;;  %8161 = vmatprep.subr.msk.bf16.mxu0 %vm1884_vm7, %v9602_v27  ;;  %8163 = vmatprep.subr.msk.bf16.mxu1 %vm1884_vm7, %v9604_v37  ;;  %v9623_v4 = vsel %vm1884_vm7, %v2574_v24, 0 }
 0x29c   : > { %11099 = vst [vmem:[#allocation43_spill] sm:$0xff] %v9623_v4  ;;  %v9628_v15 = vsel %vm1884_vm7, %v2576_v47, 0 }
 0x29d   : > { %v2803_v10 = vpop.permute.xlu0 %2802  ;;  %v8501_v56 = vpop.permute.xlu1 %8500  ;;  %v9619_v23 = vpack.c.bf16 %v2694_v19, %v2694_v19  ;;  %11100 = vst [vmem:[#allocation44_spill] sm:$0xff] %v9628_v15  ;;  %v8160_v19 = vld [vmem:[%s10944_s4 + $0x18] sm:$0xf] }
 0x29e   : > { %v8503_v22 = vunpack.i.h.bf16 %v8501_v56  ;;  %v8502_v45 = vunpack.i.l.bf16 %v8501_v56 }
 0x29f   : > { %11098 = vst [vmem:[#allocation42_spill] sm:$0xff] %v9619_v23  ;;  %8157 = vmatmul.mubr.msk.bf16.vlgmr.msra.gmra.mxu0 %vm1880_vm8, %v8155_v57 }
 0x2a0   : > { %8159 = vmatmul.mubr.msk.bf16.vlgmr.msra.gmra.mxu1 %vm1880_vm8, %v8155_v57  ;;  %2608 = vmatpush1.bf16.msra.mxu0 %v9623_v4  ;;  %v2688_v63 = vsel %vm1686_vm3, %v8503_v22, %v8502_v45  ;;  %v2689_v55 = vsel %vm1686_vm3, %v2680_v21, %v8503_v22  ;;  %v2687_v58 = vsel %vm1686_vm3, %v8502_v45, %v2686_v48 }
 0x2a1   : > { %2649 = vmatpush1.bf16.msra.mxu1 %v9628_v15  ;;  %v2809_v16 = vpop.permute.xlu0 %2808  ;;  %v2807_v3 = vpop.permute.xlu1 %2806  ;;  %v9635_v34 = vpack.c.bf16 %v2688_v63, %v2688_v63  ;;  %2625 = vmatprep.mubr.bf16.mxu0 %v11075_v39  ;;  %v2697_v24 = vpack.c.bf16 %v2689_v55, %v2689_v55  ;;  %v2699_v47 = vpack.c.bf16 %v2687_v58, %v2687_v58 }
 0x2a2   : > { %8168 = vmatprep.subr.msk.bf16.mxu1 %vm1884_vm7, %v9619_v23  ;;  %v2813_v32 = vsel %vm1754_vm6, %v2809_v16, %v2803_v10  ;;  %2666 = vmatprep.mubr.bf16.mxu1 %v11075_v39  ;;  %v2810_v48 = vsel %vm1754_vm6, %v2807_v3, %v2809_v16 }
 0x2a3   : > { %11101 = vst [vmem:[#allocation45_spill] sm:$0xff] %v9635_v34  ;;  %v2817_v21 = vmul.f32 %v9197_v7, %v2813_v32  ;;  %8166 = vmatprep.subr.msk.bf16.mxu0 %vm1884_vm7, %v9635_v34  ;;  %v9663_v58 = vsel %vm1884_vm7, %v2697_v24, 0  ;;  %v2816_v16 = vmul.f32 %v9082_v60, %v2810_v48  ;;  %v8165_v24 = vld [vmem:[%s10944_s4 + $0x1c] sm:$0xf]  ;;  %v8170_v48 = vld [vmem:[%s10944_s4 + $0x20] sm:$0xf] }
 0x2a4   : > { %11103 = vst [vmem:[#allocation47_spill] sm:$0xff] %v9663_v58 }
 0x2a5   : > { %v2805_v57 = vpop.permute.xlu1 %2804  ;;  %v9653_v56 = vpack.c.bf16 %v2817_v21, %v2817_v21  ;;  %v2822_v21 = vpack.c.bf16 %v2816_v16, %v2816_v16 }
 0x2a6   : > { %v2811_v22 = vsel %vm1754_vm6, %v2805_v57, %v2807_v3  ;;  %v2812_v45 = vsel %vm1754_vm6, %v2803_v10, %v2805_v57  ;;  %v9669_v3 = vsel %vm1884_vm7, %v2699_v47, 0 }
 0x2a7   : > { %11102 = vst [vmem:[#allocation46_spill] sm:$0xff] %v9653_v56  ;;  %v2814_v63 = vmul.f32 %v9130_v35, %v2812_v45  ;;  %v2815_v55 = vmul.f32 %v9079_v59, %v2811_v22  ;;  %8162 = vmatmul.mubr.msk.bf16.vlgmr.msra.gmra.mxu0 %vm1880_vm8, %v8160_v19  ;;  %11104 = vst [vmem:[#allocation48_spill] sm:$0xff] %v9669_v3  ;;  %v9690_v47 = vsel %vm1884_vm7, %v2822_v21, 0 }
 0x2a8   : > { %8164 = vmatmul.mubr.msk.bf16.vlgmr.msra.gmra.mxu1 %vm1880_vm8, %v8160_v19  ;;  %2731 = vmatpush1.bf16.msra.mxu0 %v9663_v58  ;;  %11107 = vst [vmem:[#allocation51_spill] sm:$0xff] %v9690_v47 }
 0x2a9   : > { %v9671_v32 = vpack.c.bf16 %v2815_v55, %v2815_v55  ;;  %2772 = vmatpush1.bf16.msra.mxu1 %v9669_v3  ;;  %2748 = vmatprep.mubr.bf16.mxu0 %v11075_v39  ;;  %v2820_v10 = vpack.c.bf16 %v2814_v63, %v2814_v63 }
 0x2aa   : > { %8173 = vmatprep.subr.msk.bf16.mxu1 %vm1884_vm7, %v9653_v56  ;;  %2789 = vmatprep.mubr.bf16.mxu1 %v11075_v39 }
 0x2ab   : > { %11105 = vst [vmem:[#allocation49_spill] sm:$0xff] %v9671_v32  ;;  %8171 = vmatprep.subr.msk.bf16.mxu0 %vm1884_vm7, %v9671_v32  ;;  %v9685_v19 = vsel %vm1884_vm7, %v2820_v10, 0 }
 0x2ac   : > { %11106 = vst [vmem:[#allocation50_spill] sm:$0xff] %v9685_v19 }
 0x2af   : > { %8167 = vmatmul.mubr.msk.bf16.vlgmr.msra.gmra.mxu0 %vm1880_vm8, %v8165_v24 }
 0x2b0   : > { %8169 = vmatmul.mubr.msk.bf16.vlgmr.msra.gmra.mxu1 %vm1880_vm8, %v8165_v24  ;;  %2854 = vmatpush1.bf16.msra.mxu0 %v9685_v19 }
 0x2b1   : > { %2895 = vmatpush1.bf16.msra.mxu1 %v9690_v47  ;;  %2871 = vmatprep.mubr.bf16.mxu0 %v11075_v39 }
 0x2b2   : > { %2912 = vmatprep.mubr.bf16.mxu1 %v11075_v39 }
 0x2b7   : > { %8172 = vmatmul.mubr.msk.bf16.vlgmr.msra.gmra.mxu0 %vm1880_vm8, %v8170_v48 }
 0x2b8   : > { %8174 = vmatmul.mubr.msk.bf16.vlgmr.msra.gmra.mxu1 %vm1880_vm8, %v8170_v48  ;;  %3031 = vmatprep.mubr.bf16.mxu0 %v11075_v39 }
 0x2b9   : > { %3072 = vmatprep.mubr.bf16.mxu1 %v11075_v39 }
 0x337   : > { %v1931_v57 = vpop.f32.mrf.mxu0  ;;  %v1972_v22 = vpop.f32.mrf.mxu1 }
 0x339   : > { %v1933_v45 = vpop.f32.mrf.mxu0  ;;  %v1974_v63 = vpop.f32.mrf.mxu1 }
 0x33b   : > { %v1935_v55 = vpop.f32.mrf.mxu0  ;;  %v1976_v16 = vpop.f32.mrf.mxu1 }
 0x33d   : > { %v1936_v10 = vpop.f32.mrf.mxu0  ;;  %v1977_v21 = vpop.f32.mrf.mxu1 }
 0x33f   : > { %v2028_v24 = vpop.f32.mrf.mxu0  ;;  %v2069_v42 = vpop.f32.mrf.mxu1 }
 0x340   : > { %v2070_v0 = vadd.f32 %v2069_v42, %v1972_v22 }
 0x341   : > { %v2030_v20 = vpop.f32.mrf.mxu0  ;;  %v2071_v47 = vpop.f32.mrf.mxu1 }
 0x342   : > { %v2031_v52 = vadd.f32 %v2030_v20, %v1933_v45 }
 0x343   : > { %v2032_v19 = vpop.f32.mrf.mxu0  ;;  %v2073_v56 = vpop.f32.mrf.mxu1 }
 0x345   : > { %v2033_v32 = vpop.f32.mrf.mxu0  ;;  %v2074_v48 = vpop.f32.mrf.mxu1 }
 0x347   : > { %v2147_v3 = vpop.f32.mrf.mxu0  ;;  %v2188_v58 = vpop.f32.mrf.mxu1 }
 0x349   : > { %v2149_v23 = vpop.f32.mrf.mxu0  ;;  %v2190_v34 = vpop.f32.mrf.mxu1 }
 0x34a   : > { %v2196_v41 = vadd.f32 %v2149_v23, %v2031_v52 }
 0x34b   : > { %v2151_v15 = vpop.f32.mrf.mxu0  ;;  %v2192_v4 = vpop.f32.mrf.mxu1 }
 0x34d   : > { %v2152_v37 = vpop.f32.mrf.mxu0  ;;  %v2193_v27 = vpop.f32.mrf.mxu1 }
 0x34f   : > { %v2270_v55 = vpop.f32.mrf.mxu0 }
 0x350   : > { %v2311_v16 = vpop.f32.mrf.mxu1 }
 0x351   : > { %v2272_v10 = vpop.f32.mrf.mxu0 }
 0x352   : > { %v2313_v21 = vpop.f32.mrf.mxu1 }
 0x353   : > { %v2274_v9 = vpop.f32.mrf.mxu0 }
 0x354   : > { %v2315_v44 = vpop.f32.mrf.mxu1 }
 0x355   : > { %v2275_v6 = vpop.f32.mrf.mxu0 }
 0x356   : > { %v2316_v12 = vpop.f32.mrf.mxu1 }
 0x357   : > { %v2381_v19 = vpop.f32.mrf.mxu0  ;;  %v2029_v12 = vadd.f32 %v2028_v24, %v1931_v57 }
 0x358   : > { %v2422_v56 = vpop.f32.mrf.mxu1 }
 0x359   : > { %v2383_v32 = vpop.f32.mrf.mxu0 }
 0x35a   : > { %v2424_v48 = vpop.f32.mrf.mxu1 }
 0x35b   : > { %v2385_v51 = vpop.f32.mrf.mxu0 }
 0x35c   : > { %v2426_v25 = vpop.f32.mrf.mxu1  ;;  %v2195_v51 = vadd.f32 %v2147_v3, %v2029_v12 }
 0x35d   : > { %v2386_v49 = vpop.f32.mrf.mxu0 }
 0x35e   : > { %v2427_v43 = vpop.f32.mrf.mxu1  ;;  %v2072_v49 = vadd.f32 %v2071_v47, %v1974_v63  ;;  %v2318_v5 = vadd.f32 %v2270_v55, %v2195_v51 }
 0x35f   : > { %v2504_v15 = vpop.f32.mrf.mxu0  ;;  %v2197_v43 = vadd.f32 %v2188_v58, %v2070_v0 }
 0x360   : > { %v2545_v4 = vpop.f32.mrf.mxu1  ;;  %v2429_v38 = vadd.f32 %v2381_v19, %v2318_v5 }
 0x361   : > { %v2506_v37 = vpop.f32.mrf.mxu0 }
 0x362   : > { %v2547_v27 = vpop.f32.mrf.mxu1 }
 0x363   : > { %v2508_v28 = vpop.f32.mrf.mxu0 }
 0x364   : > { %v2549_v50 = vpop.f32.mrf.mxu1  ;;  %v2198_v28 = vadd.f32 %v2190_v34, %v2072_v49 }
 0x365   : > { %v2509_v8 = vpop.f32.mrf.mxu0  ;;  %v2320_v50 = vadd.f32 %v2311_v16, %v2197_v43 }
 0x366   : > { %v2550_v46 = vpop.f32.mrf.mxu1  ;;  %v2321_v1 = vadd.f32 %v2313_v21, %v2198_v28  ;;  %v4027_v28 = vld [vmem:[%s10947_s7] sm:$0xff] }
 0x367   : > { %v2627_v9 = vpop.f32.mrf.mxu0  ;;  %v2319_v46 = vadd.f32 %v2272_v10, %v2196_v41  ;;  %v2431_v57 = vadd.f32 %v2422_v56, %v2320_v50 }
 0x368   : > { %v2668_v44 = vpop.f32.mrf.mxu1  ;;  %v2432_v3 = vadd.f32 %v2424_v48, %v2321_v1 }
 0x369   : > { %v2629_v6 = vpop.f32.mrf.mxu0  ;;  %v2430_v42 = vadd.f32 %v2383_v32, %v2319_v46  ;;  %v2554_v22 = vadd.f32 %v2545_v4, %v2431_v57 }
 0x36a   : > { %v2670_v33 = vpop.f32.mrf.mxu1  ;;  %v2555_v23 = vadd.f32 %v2547_v27, %v2432_v3 }
 0x36b   : > { %v2631_v31 = vpop.f32.mrf.mxu0  ;;  %v2553_v0 = vadd.f32 %v2506_v37, %v2430_v42 }
 0x36c   : > { %v2672_v25 = vpop.f32.mrf.mxu1  ;;  %v2552_v31 = vadd.f32 %v2504_v15, %v2429_v38  ;;  %v2678_v5 = vadd.f32 %v2670_v33, %v2555_v23  ;;  %v2929_v38 = vpop.permute.xlu0 %2928 }
 0x36d   : > { %v2632_v17 = vpop.f32.mrf.mxu0  ;;  %v2676_v58 = vadd.f32 %v2629_v6, %v2553_v0 }
 0x36e   : > { %v2673_v13 = vpop.f32.mrf.mxu1  ;;  %v2675_v17 = vadd.f32 %v2627_v9, %v2552_v31 }
 0x36f   : > { %v2750_v8 = vpop.f32.mrf.mxu0  ;;  %v2677_v13 = vadd.f32 %v2668_v44, %v2554_v22 }
 0x370   : > { %v2791_v26 = vpop.f32.mrf.mxu1  ;;  %v2798_v45 = vadd.f32 %v2750_v8, %v2675_v17 }
 0x371   : > { %v2752_v24 = vpop.f32.mrf.mxu0  ;;  %v2800_v63 = vadd.f32 %v2791_v26, %v2677_v13 }
 0x372   : > { %v2793_v20 = vpop.f32.mrf.mxu1  ;;  %v2799_v16 = vadd.f32 %v2752_v24, %v2676_v58 }
 0x373   : > { %v2754_v47 = vpop.f32.mrf.mxu0  ;;  %v2801_v19 = vadd.f32 %v2793_v20, %v2678_v5 }
 0x374   : > { %v2795_v52 = vpop.f32.mrf.mxu1 }
 0x375   : > { %v2755_v34 = vpop.f32.mrf.mxu0 }
 0x376   : > { %v2796_v41 = vpop.f32.mrf.mxu1 }
 0x377   : > { %v2873_v55 = vpop.f32.mrf.mxu0 }
 0x378   : > { %v2921_v10 = vadd.f32 %v2873_v55, %v2798_v45  ;;  %v2914_v21 = vpop.f32.mrf.mxu1 }
 0x379   : > { %v2923_v1 = vadd.f32 %v2914_v21, %v2800_v63  ;;  %v2875_v56 = vpop.f32.mrf.mxu0  ;;  %v8175_v63 = vld [vmem:[%s10946_s6 + $0x4] sm:$0xf] }
 0x37a   : > { %v2931_v32 = vadd.f32 %v2929_v38, %v2921_v10  ;;  %v2922_v48 = vadd.f32 %v2875_v56, %v2799_v16  ;;  %v2916_v15 = vpop.f32.mrf.mxu1 }
 0x37b   : > { %v2933_v4 = vadd.f32 %v2929_v38, %v2923_v1  ;;  %v2924_v37 = vadd.f32 %v2916_v15, %v2801_v19  ;;  %v2877_v27 = vpop.f32.mrf.mxu0 }
 0x37c   : > { %v9702_v9 = vmax.f32 %v2931_v32, 0.0  ;;  %v2932_v44 = vadd.f32 %v2929_v38, %v2922_v48  ;;  %v2918_v6 = vpop.f32.mrf.mxu1 }
 0x37d   : > { %v2934_v33 = vadd.f32 %v2929_v38, %v2924_v37  ;;  %v2878_v26 = vpop.f32.mrf.mxu0  ;;  %v9704_v12 = vmax.f32 %v2933_v4, 0.0 }
 0x37e   : > { %v9706_v51 = vmax.f32 %v2932_v44, 0.0  ;;  %v2919_v25 = vpop.f32.mrf.mxu1  ;;  %2960 = vrot.lane.b32.xlu1 %v9702_v9, %s8730_s27 }
 0x37f   : > { %v9710_v49 = vmax.f32 %v2934_v33, 0.0  ;;  %v2955_v25 = vld [vmem:[%s10946_s6] sm:$0xf] }
 0x380   : > { %v8504_v43 = vpack.i.bf16 %v9704_v12, %v9706_v51 }
 0x381   : > { %2966 = vrot.lane.b32.xlu0 %v9710_v49, %s8730_s27 }
 0x382   : > { %8505 = vrot.lane.b32.xlu1 %v8504_v43, %s8730_s27 }
 0x385   : > { %2943 = vrot.lane.b32.xlu0 %v9704_v12, %s11067_s1 }
 0x386   : > { %2945 = vrot.lane.b32.xlu1 %v9710_v49, %s11067_s1 }
 0x389   : > { %2939 = vrot.lane.b32.xlu0 %v9702_v9, %s11067_s1 }
 0x38a   : > { %2941 = vrot.lane.b32.xlu1 %v9706_v51, %s11067_s1 }
 0x38d   : > { %3178 = vrot.lane.b32.xlu0 %v9702_v9, %s11068_s26 }
 0x38e   : > { %3184 = vrot.lane.b32.xlu1 %v9710_v49, %s11068_s26 }
 0x391   : > { %3182 = vrot.lane.b32.xlu0 %v9704_v12, %s11068_s26 }
 0x392   : > { %3180 = vrot.lane.b32.xlu1 %v9706_v51, %s11068_s26 }
 0x395   : > { %3301 = vrot.lane.b32.xlu0 %v9702_v9, %s8731_s28 }
 0x396   : > { %3303 = vrot.lane.b32.xlu1 %v9706_v51, %s8731_s28 }
 0x399   : > { %3305 = vrot.lane.b32.xlu0 %v9704_v12, %s8731_s28 }
 0x39a   : > { %3307 = vrot.lane.b32.xlu1 %v9710_v49, %s8731_s28 }
 0x39d   : > { %3535 = vrot.lane.b32.xlu0 %v9702_v9, %s8732_s29 }
 0x39e   : > { %3541 = vrot.lane.b32.xlu1 %v9710_v49, %s8732_s29 }
 0x3a1   : > { %3539 = vrot.lane.b32.xlu0 %v9704_v12, %s8732_s29 }
 0x3a2   : > { %3537 = vrot.lane.b32.xlu1 %v9706_v51, %s8732_s29 }
 0x3a5   : > { %3658 = vrot.lane.b32.xlu0 %v9702_v9, %s11069_s30 }
 0x3a6   : > { %3660 = vrot.lane.b32.xlu1 %v9706_v51, %s11069_s30 }
 0x3a9   : > { %3662 = vrot.lane.b32.xlu0 %v9704_v12, %s11069_s30 }
 0x3aa   : > { %3664 = vrot.lane.b32.xlu1 %v9710_v49, %s11069_s30 }
 0x3ad   : > { %3781 = vrot.lane.b32.xlu0 %v9702_v9, %s11070_s19 }
 0x3ae   : > { %3787 = vrot.lane.b32.xlu1 %v9710_v49, %s11070_s19 }
 0x3b1   : > { %8510 = vrot.lane.b32.xlu0 %v8504_v43, %s11070_s19 }
 0x3b2   : > { %3904 = vrot.lane.b32.xlu1 %v9702_v9, %s8735_s21 }
 0x3b5   : > { %3906 = vrot.lane.b32.xlu0 %v9706_v51, %s8735_s21 }
 0x3b6   : > { %3908 = vrot.lane.b32.xlu1 %v9704_v12, %s8735_s21 }
 0x3b9   : > { %3910 = vrot.lane.b32.xlu0 %v9710_v49, %s8735_s21 }
 0x3ba   : > { %4030 = vperm.xlu1 %8467, %v4027_v28  }
 0x3f0   : > { %v2961_v50 = vpop.permute.xlu1 %2960 }
 0x3f3   : > { %v2967_v8 = vpop.permute.xlu0 %2966 }
 0x3f4   : > { %v2971_v46 = vsel %vm1291_vm10, %v2967_v8, %v2961_v50  ;;  %v8506_v57 = vpop.permute.xlu1 %8505 }
 0x3f5   : > { %v2972_v24 = vmul.f32 %v9135_v36, %v2971_v46  ;;  %v8508_v42 = vunpack.i.h.bf16 %v8506_v57  ;;  %v8507_v31 = vunpack.i.l.bf16 %v8506_v57 }
 0x3f7   : > { %v2978_v20 = vpack.c.bf16 %v2972_v24, %v2972_v24  ;;  %v2968_v3 = vsel %vm1291_vm10, %v8508_v42, %v2967_v8  ;;  %v2970_v22 = vsel %vm1291_vm10, %v2961_v50, %v8507_v31  ;;  %v2944_v47 = vpop.permute.xlu0 %2943  ;;  %v2969_v0 = vsel %vm1291_vm10, %v8507_v31, %v8508_v42 }
 0x3f8   : > { %v9782_v17 = vpack.c.bf16 %v2968_v3, %v2968_v3  ;;  %v9784_v52 = vpack.c.bf16 %v2970_v22, %v2970_v22  ;;  %v2946_v23 = vpop.permute.xlu1 %2945  ;;  %v2980_v13 = vpack.c.bf16 %v2969_v0, %v2969_v0 }
 0x3f9   : > { %v2947_v34 = vsel %vm1226_vm2, %v2944_v47, %v2946_v23  ;;  %v9794_v45 = vsel %vm2986_vm9, %v2978_v20, 0 }
 0x3fa   : > { %v2954_v58 = vmul.f32 %v9090_v62, %v2947_v34  ;;  %8176 = vmatprep.subr.msk.bf16.mxu0 %vm2986_vm9, %v9784_v52  ;;  %8178 = vmatprep.subr.msk.bf16.mxu1 %vm2986_vm9, %v9782_v17  ;;  %v9797_v41 = vsel %vm2986_vm9, %v2980_v13, 0 }
 0x3fb   : > { %v2940_v5 = vpop.permute.xlu0 %2939  ;;  %3014 = vmatpush1.bf16.msra.mxu0 %v9794_v45  ;;  %3055 = vmatpush1.bf16.msra.mxu1 %v9797_v41 }
 0x3fc   : > { %v9804_v55 = vpack.c.bf16 %v2954_v58, %v2954_v58  ;;  %v2950_v16 = vsel %vm1226_vm2, %v2946_v23, %v2940_v5  ;;  %v2942_v10 = vpop.permute.xlu1 %2941 }
 0x3fd   : > { %v2951_v21 = vmul.f32 %v9085_v61, %v2950_v16  ;;  %v2948_v38 = vsel %vm1226_vm2, %v2942_v10, %v2944_v47  ;;  %v2949_v19 = vsel %vm1226_vm2, %v2940_v5, %v2942_v10  ;;  %v8184_v5 = vld [vmem:[%s10946_s6 + $0x8] sm:$0xf] }
 0x3fe   : > { %v2952_v1 = vmul.f32 %v9003_v29, %v2949_v19  ;;  %v2953_v56 = vmul.f32 %v9006_v30, %v2948_v38  ;;  %8177 = vmatmul.mubr.msk.bf16.vlgmr.msra.gmra.mxu0 %vm2982_vm11, %v8175_v63  ;;  %8179 = vmatmul.mubr.msk.bf16.vlgmr.msra.gmra.mxu1 %vm2982_vm11, %v8175_v63 }
 0x3ff   : > { %v2956_v32 = vpack.c.bf16 %v2951_v21, %v2951_v21  ;;  %v3179_v48 = vpop.permute.xlu0 %3178  ;;  %8182 = vmatprep.subr.msk.bf16.mxu1 %vm2986_vm9, %v9804_v55  ;;  %3128 = vmatprep.mubr.bf16.mxu0 %v11075_v39 }
 0x400   : > { %v9820_v15 = vpack.c.bf16 %v2952_v1, %v2952_v1  ;;  %v2958_v4 = vpack.c.bf16 %v2953_v56, %v2953_v56  ;;  %v3185_v37 = vpop.permute.xlu1 %3184  ;;  %3169 = vmatprep.mubr.bf16.mxu1 %v11075_v39 }
 0x401   : > { %v3189_v27 = vsel %vm1359_vm13, %v3185_v37, %v3179_v48  ;;  %v9829_v6 = vsel %vm2986_vm9, %v2956_v32, 0 }
 0x402   : > { %v3190_v44 = vmul.f32 %v9100_v11, %v3189_v27  ;;  %8180 = vmatprep.subr.msk.bf16.mxu0 %vm2986_vm9, %v9820_v15  ;;  %v9832_v33 = vsel %vm2986_vm9, %v2958_v4, 0 }
 0x403   : > { %v3183_v26 = vpop.permute.xlu0 %3182  ;;  %3111 = vmatpush1.bf16.msra.mxu0 %v9829_v6  ;;  %3152 = vmatpush1.bf16.msra.mxu1 %v9832_v33 }
 0x404   : > { %v3186_v43 = vsel %vm1359_vm13, %v3183_v26, %v3185_v37  ;;  %v3181_v28 = vpop.permute.xlu1 %3180  ;;  %v3196_v57 = vpack.c.bf16 %v3190_v44, %v3190_v44 }
 0x405   : > { %v3193_v50 = vmul.f32 %v9105_v14, %v3186_v43  ;;  %v3187_v8 = vsel %vm1359_vm13, %v3181_v28, %v3183_v26  ;;  %v3188_v46 = vsel %vm1359_vm13, %v3179_v48, %v3181_v28  ;;  %v9897_v26 = vpack.c.bf16 %v9706_v51, %v9706_v51 }
 0x406   : > { %v3191_v24 = vmul.f32 %v9079_v59, %v3188_v46  ;;  %v3192_v42 = vmul.f32 %v9082_v60, %v3187_v8  ;;  %8181 = vmatmul.mubr.msk.bf16.vlgmr.msra.gmra.mxu0 %vm2982_vm11, %v2955_v25  ;;  %8183 = vmatmul.mubr.msk.bf16.vlgmr.msra.gmra.mxu1 %vm2982_vm11, %v2955_v25  ;;  %v9864_v13 = vsel %vm2986_vm9, %v3196_v57, 0  ;;  %v3430_v25 = vpack.c.bf16 %v9702_v9, %v9702_v9  ;;  %v8189_v9 = vld [vmem:[%s10946_s6 + $0xc] sm:$0xf] }
 0x407   : > { %v9850_v31 = vpack.c.bf16 %v3193_v50, %v3193_v50  ;;  %v3302_v20 = vpop.permute.xlu0 %3301  ;;  %3247 = vmatprep.mubr.bf16.mxu0 %v11075_v39  ;;  %3288 = vmatprep.mubr.bf16.mxu1 %v11075_v39  ;;  %11109 = vst [vmem:[#allocation53_spill] sm:$0xff] %v9864_v13  ;;  %11113 = vst [vmem:[#allocation57_spill] sm:$0xff] %v9897_v26  ;;  %v3432_v43 = vpack.c.bf16 %v9704_v12, %v9704_v12 }
 0x408   : > { %v9854_v3 = vpack.c.bf16 %v3191_v24, %v3191_v24  ;;  %v3198_v22 = vpack.c.bf16 %v3192_v42, %v3192_v42  ;;  %v3304_v47 = vpop.permute.xlu1 %3303  ;;  %v9914_v51 = vpack.c.bf16 %v9710_v49, %v9710_v49 }
 0x409   : > { %11108 = vst [vmem:[#allocation52_spill] sm:$0xff] %v9850_v31  ;;  %v3311_v0 = vsel %vm1427_vm1, %v3302_v20, %v3304_v47  ;;  %8187 = vmatprep.subr.msk.bf16.mxu1 %vm2986_vm9, %v9850_v31 }
 0x40a   : > { %v3314_v23 = vmul.f32 %v9003_v29, %v3311_v0  ;;  %8185 = vmatprep.subr.msk.bf16.mxu0 %vm2986_vm9, %v9854_v3  ;;  %v9867_v34 = vsel %vm2986_vm9, %v3198_v22, 0  ;;  %11116 = vst [vmem:[#allocation60_spill] sm:$0xff] %v9914_v51 }
 0x40b   : > { %11110 = vst [vmem:[#allocation54_spill] sm:$0xff] %v9867_v34  ;;  %v3306_v58 = vpop.permute.xlu0 %3305  ;;  %3230 = vmatpush1.bf16.msra.mxu0 %v9864_v13  ;;  %3271 = vmatpush1.bf16.msra.mxu1 %v9867_v34 }
 0x40c   : > { %v9874_v63 = vpack.c.bf16 %v3314_v23, %v3314_v23  ;;  %v3310_v16 = vsel %vm1427_vm1, %v3304_v47, %v3306_v58  ;;  %v3308_v10 = vpop.permute.xlu1 %3307  ;;  %v9942_v23 = vsel %vm2986_vm9, %v3432_v43, 0 }
 0x40d   : > { %v3315_v21 = vmul.f32 %v9006_v30, %v3310_v16  ;;  %v3309_v38 = vsel %vm1427_vm1, %v3306_v58, %v3308_v10  ;;  %v3312_v19 = vsel %vm1427_vm1, %v3308_v10, %v3302_v20  ;;  %v9933_v20 = vsel %vm2986_vm9, %v3430_v25, 0  ;;  %11119 = vst [vmem:[#allocation63_spill] sm:$0xff] %v9942_v23 }
 0x40e   : > { %11111 = vst [vmem:[#allocation55_spill] sm:$0xff] %v9874_v63  ;;  %v3313_v1 = vmul.f32 %v9116_v18, %v3312_v19  ;;  %v3316_v56 = vmul.f32 %v9090_v62, %v3309_v38  ;;  %8186 = vmatmul.mubr.msk.bf16.vlgmr.msra.gmra.mxu0 %vm2982_vm11, %v8184_v5  ;;  %8188 = vmatmul.mubr.msk.bf16.vlgmr.msra.gmra.mxu1 %vm2982_vm11, %v8184_v5  ;;  %11117 = vst [vmem:[#allocation61_spill] sm:$0xff] %v9933_v20 }
 0x40f   : > { %v3321_v32 = vpack.c.bf16 %v3315_v21, %v3315_v21  ;;  %v3536_v48 = vpop.permute.xlu0 %3535  ;;  %8190 = vmatprep.subr.msk.bf16.mxu0 %vm2986_vm9, %v9874_v63  ;;  %3370 = vmatprep.mubr.bf16.mxu0 %v11075_v39 }
 0x410   : > { %v3319_v4 = vpack.c.bf16 %v3313_v1, %v3313_v1  ;;  %v9890_v37 = vpack.c.bf16 %v3316_v56, %v3316_v56  ;;  %v3542_v27 = vpop.permute.xlu1 %3541  ;;  %3411 = vmatprep.mubr.bf16.mxu1 %v11075_v39  ;;  %v8194_v1 = vld [vmem:[%s10946_s6 + $0x10] sm:$0xf] }
 0x411   : > { %v3546_v44 = vsel %vm1550_vm5, %v3542_v27, %v3536_v48  ;;  %v9910_v8 = vsel %vm2986_vm9, %v3321_v32, 0 }
 0x412   : > { %11112 = vst [vmem:[#allocation56_spill] sm:$0xff] %v9890_v37  ;;  %v3550_v28 = vmul.f32 %v9105_v14, %v3546_v44  ;;  %8192 = vmatprep.subr.msk.bf16.mxu1 %vm2986_vm9, %v9890_v37  ;;  %v9907_v50 = vsel %vm2986_vm9, %v3319_v4, 0  ;;  %11115 = vst [vmem:[#allocation59_spill] sm:$0xff] %v9910_v8 }
 0x413   : > { %11114 = vst [vmem:[#allocation58_spill] sm:$0xff] %v9907_v50  ;;  %v3540_v46 = vpop.permute.xlu0 %3539  ;;  %3353 = vmatpush1.bf16.msra.mxu0 %v9907_v50  ;;  %3394 = vmatpush1.bf16.msra.mxu1 %v9910_v8 }
 0x414   : > { %v3543_v12 = vsel %vm1550_vm5, %v3540_v46, %v3542_v27  ;;  %v3538_v57 = vpop.permute.xlu1 %3537  ;;  %8195 = vmatprep.subr.msk.bf16.mxu0 %vm2986_vm9, %v9897_v26  ;;  %8197 = vmatprep.subr.msk.bf16.mxu1 %vm2986_vm9, %v9914_v51  ;;  %v9935_v22 = vpack.c.bf16 %v3550_v28, %v3550_v28 }
 0x415   : > { %v3549_v49 = vmul.f32 %v9082_v60, %v3543_v12  ;;  %v3544_v24 = vsel %vm1550_vm5, %v3538_v57, %v3540_v46  ;;  %v3545_v42 = vsel %vm1550_vm5, %v3536_v48, %v3538_v57 }
 0x416   : > { %11118 = vst [vmem:[#allocation62_spill] sm:$0xff] %v9935_v22  ;;  %v3547_v47 = vmul.f32 %v9130_v35, %v3545_v42  ;;  %v3548_v0 = vmul.f32 %v9079_v59, %v3544_v24  ;;  %8191 = vmatmul.mubr.msk.bf16.vlgmr.msra.gmra.mxu0 %vm2982_vm11, %v8189_v9  ;;  %8193 = vmatmul.mubr.msk.bf16.vlgmr.msra.gmra.mxu1 %vm2982_vm11, %v8189_v9 }
 0x417   : > { %v3659_v58 = vpop.permute.xlu0 %3658  ;;  %3464 = vmatpush1.bf16.msra.mxu0 %v9933_v20  ;;  %3505 = vmatpush1.bf16.msra.mxu1 %v9942_v23  ;;  %v3555_v10 = vpack.c.bf16 %v3549_v49, %v3549_v49 }
 0x418   : > { %v9946_v5 = vpack.c.bf16 %v3548_v0, %v3548_v0  ;;  %v3661_v16 = vpop.permute.xlu1 %3660  ;;  %8202 = vmatprep.subr.msk.bf16.mxu1 %vm2986_vm9, %v9935_v22  ;;  %3481 = vmatprep.mubr.bf16.mxu0 %v11075_v39  ;;  %v3553_v21 = vpack.c.bf16 %v3547_v47, %v3547_v47 }
 0x419   : > { %3522 = vmatprep.mubr.bf16.mxu1 %v11075_v39  ;;  %v3668_v38 = vsel %vm1618_vm15, %v3659_v58, %v3661_v16  ;;  %v9967_v44 = vsel %vm2986_vm9, %v3555_v10, 0 }
 0x41a   : > { %11120 = vst [vmem:[#allocation64_spill] sm:$0xff] %v9946_v5  ;;  %8200 = vmatprep.subr.msk.bf16.mxu0 %vm2986_vm9, %v9946_v5  ;;  %11121 = vst [vmem:[#allocation65_spill] sm:$0xff] %v9967_v44  ;;  %v3670_v25 = vmul.f32 %v9116_v18, %v3668_v38  ;;  %v9975_v46 = vsel %vm2986_vm9, %v3553_v21, 0 }
 0x41b   : > { %v3663_v19 = vpop.permute.xlu0 %3662  ;;  %11122 = vst [vmem:[#allocation66_spill] sm:$0xff] %v9975_v46 }
 0x41c   : > { %v3667_v56 = vsel %vm1618_vm15, %v3661_v16, %v3663_v19  ;;  %v3665_v32 = vpop.permute.xlu1 %3664  ;;  %v3676_v42 = vpack.c.bf16 %v3670_v25, %v3670_v25  ;;  %v8199_v16 = vld [vmem:[%s10946_s6 + $0x14] sm:$0xf] }
 0x41d   : > { %v3671_v48 = vmul.f32 %v9003_v29, %v3667_v56  ;;  %v3666_v4 = vsel %vm1618_vm15, %v3663_v19, %v3665_v32  ;;  %v3669_v27 = vsel %vm1618_vm15, %v3665_v32, %v3659_v58 }
 0x41e   : > { %v3672_v43 = vmul.f32 %v9006_v30, %v3666_v4  ;;  %v3673_v28 = vmul.f32 %v9138_v53, %v3669_v27  ;;  %8196 = vmatmul.mubr.msk.bf16.vlgmr.msra.gmra.mxu0 %vm2982_vm11, %v8194_v1  ;;  %8198 = vmatmul.mubr.msk.bf16.vlgmr.msra.gmra.mxu1 %vm2982_vm11, %v8194_v1  ;;  %v10002_v56 = vsel %vm2986_vm9, %v3676_v42, 0 }
 0x41f   : > { %v9977_v9 = vpack.c.bf16 %v3671_v48, %v3671_v48  ;;  %v3782_v12 = vpop.permute.xlu0 %3781  ;;  %3587 = vmatpush1.bf16.msra.mxu0 %v9975_v46  ;;  %3628 = vmatpush1.bf16.msra.mxu1 %v9967_v44  ;;  %11126 = vst [vmem:[#allocation70_spill] sm:$0xff] %v10002_v56 }
 0x420   : > { %v9981_v57 = vpack.c.bf16 %v3673_v28, %v3673_v28  ;;  %v3788_v49 = vpop.permute.xlu1 %3787  ;;  %3604 = vmatprep.mubr.bf16.mxu0 %v11075_v39  ;;  %3645 = vmatprep.mubr.bf16.mxu1 %v11075_v39  ;;  %v3678_v47 = vpack.c.bf16 %v3672_v43, %v3672_v43 }
 0x421   : > { %11123 = vst [vmem:[#allocation67_spill] sm:$0xff] %v9977_v9  ;;  %v3792_v24 = vsel %vm1686_vm3, %v3788_v49, %v3782_v12  ;;  %8205 = vmatprep.subr.msk.bf16.mxu0 %vm2986_vm9, %v9977_v9 }
 0x422   : > { %11124 = vst [vmem:[#allocation68_spill] sm:$0xff] %v9981_v57  ;;  %v3796_v0 = vmul.f32 %v9143_v54, %v3792_v24  ;;  %8207 = vmatprep.subr.msk.bf16.mxu1 %vm2986_vm9, %v9981_v57  ;;  %v10005_v32 = vsel %vm2986_vm9, %v3678_v47, 0 }
 0x423   : > { %v8511_v58 = vpop.permute.xlu0 %8510  ;;  %11127 = vst [vmem:[#allocation71_spill] sm:$0xff] %v10005_v32 }
 0x424   : > { %v9995_v10 = vpack.c.bf16 %v3796_v0, %v3796_v0  ;;  %v8513_v21 = vunpack.i.h.bf16 %v8511_v58  ;;  %v8512_v38 = vunpack.i.l.bf16 %v8511_v58  ;;  %v3905_v19 = vpop.permute.xlu1 %3904  ;;  %v8204_v0 = vld [vmem:[%s10946_s6 + $0x18] sm:$0xf] }
 0x426   : > { %11125 = vst [vmem:[#allocation69_spill] sm:$0xff] %v9995_v10  ;;  %v3790_v1 = vsel %vm1686_vm3, %v8512_v38, %v8513_v21  ;;  %8201 = vmatmul.mubr.msk.bf16.vlgmr.msra.gmra.mxu0 %vm2982_vm11, %v8199_v16  ;;  %8203 = vmatmul.mubr.msk.bf16.vlgmr.msra.gmra.mxu1 %vm2982_vm11, %v8199_v16  ;;  %v3791_v27 = vsel %vm1686_vm3, %v3782_v12, %v8512_v38 }
 0x427   : > { %v10007_v48 = vpack.c.bf16 %v3790_v1, %v3790_v1  ;;  %v3907_v4 = vpop.permute.xlu0 %3906  ;;  %3710 = vmatpush1.bf16.msra.mxu0 %v10002_v56  ;;  %3751 = vmatpush1.bf16.msra.mxu1 %v10005_v32  ;;  %v3789_v25 = vsel %vm1686_vm3, %v8513_v21, %v3788_v49  ;;  %v3799_v12 = vpack.c.bf16 %v3791_v27, %v3791_v27 }
 0x428   : > { %8212 = vmatprep.subr.msk.bf16.mxu1 %vm2986_vm9, %v9995_v10  ;;  %v3909_v43 = vpop.permute.xlu1 %3908  ;;  %3727 = vmatprep.mubr.bf16.mxu0 %v11075_v39  ;;  %v3801_v42 = vpack.c.bf16 %v3789_v25, %v3789_v25  ;;  %v3914_v49 = vsel %vm1754_vm6, %v3905_v19, %v3907_v4 }
 0x429   : > { %11128 = vst [vmem:[#allocation72_spill] sm:$0xff] %v10007_v48  ;;  %v3913_v28 = vsel %vm1754_vm6, %v3907_v4, %v3909_v43  ;;  %8210 = vmatprep.subr.msk.bf16.mxu0 %vm2986_vm9, %v10007_v48  ;;  %3768 = vmatprep.mubr.bf16.mxu1 %v11075_v39  ;;  %v3916_v1 = vmul.f32 %v9130_v35, %v3914_v49  ;;  %v10041_v4 = vsel %vm2986_vm9, %v3799_v12, 0  ;;  %v8214_v49 = vld [vmem:[%s10946_s6 + $0x20] sm:$0xf] }
 0x42a   : > { %v3917_v24 = vmul.f32 %v9079_v59, %v3913_v28  ;;  %11130 = vst [vmem:[#allocation74_spill] sm:$0xff] %v10041_v4  ;;  %v10044_v25 = vsel %vm2986_vm9, %v3801_v42, 0 }
 0x42b   : > { %v3911_v47 = vpop.permute.xlu0 %3910  ;;  %11131 = vst [vmem:[#allocation75_spill] sm:$0xff] %v10044_v25 }
 0x42c   : > { %v10029_v58 = vpack.c.bf16 %v3917_v24, %v3917_v24  ;;  %v3912_v16 = vsel %vm1754_vm6, %v3909_v43, %v3911_v47  ;;  %v3915_v21 = vsel %vm1754_vm6, %v3911_v47, %v3905_v19  ;;  %v3922_v19 = vpack.c.bf16 %v3916_v1, %v3916_v1  ;;  %v8209_v24 = vld [vmem:[%s10946_s6 + $0x1c] sm:$0xf] }
 0x42d   : > { %v3919_v38 = vmul.f32 %v9197_v7, %v3915_v21  ;;  %v3918_v27 = vmul.f32 %v9082_v60, %v3912_v16 }
 0x42e   : > { %11129 = vst [vmem:[#allocation73_spill] sm:$0xff] %v10029_v58  ;;  %8206 = vmatmul.mubr.msk.bf16.vlgmr.msra.gmra.mxu0 %vm2982_vm11, %v8204_v0  ;;  %8208 = vmatmul.mubr.msk.bf16.vlgmr.msra.gmra.mxu1 %vm2982_vm11, %v8204_v0  ;;  %v10062_v12 = vsel %vm2986_vm9, %v3922_v19, 0 }
 0x42f   : > { %v10046_v43 = vpack.c.bf16 %v3919_v38, %v3919_v38  ;;  %3833 = vmatpush1.bf16.msra.mxu0 %v10041_v4  ;;  %3874 = vmatpush1.bf16.msra.mxu1 %v10044_v25  ;;  %v3924_v28 = vpack.c.bf16 %v3918_v27, %v3918_v27  ;;  %11133 = vst [vmem:[#allocation77_spill] sm:$0xff] %v10062_v12 }
 0x430   : > { %8215 = vmatprep.subr.msk.bf16.mxu0 %vm2986_vm9, %v10029_v58  ;;  %3850 = vmatprep.mubr.bf16.mxu0 %v11075_v39 }
 0x431   : > { %11132 = vst [vmem:[#allocation76_spill] sm:$0xff] %v10046_v43  ;;  %8217 = vmatprep.subr.msk.bf16.mxu1 %vm2986_vm9, %v10046_v43  ;;  %3891 = vmatprep.mubr.bf16.mxu1 %v11075_v39  ;;  %v10065_v42 = vsel %vm2986_vm9, %v3924_v28, 0 }
 0x432   : > { %11134 = vst [vmem:[#allocation78_spill] sm:$0xff] %v10065_v42 }
 0x436   : > { %8211 = vmatmul.mubr.msk.bf16.vlgmr.msra.gmra.mxu0 %vm2982_vm11, %v8209_v24  ;;  %8213 = vmatmul.mubr.msk.bf16.vlgmr.msra.gmra.mxu1 %vm2982_vm11, %v8209_v24 }
 0x437   : > { %3956 = vmatpush1.bf16.msra.mxu0 %v10062_v12  ;;  %3997 = vmatpush1.bf16.msra.mxu1 %v10065_v42 }
 0x438   : > { %8219 = vmatprep.subr.msk.bf16.mxu0 %vm2986_vm9, %v9820_v15  ;;  %8221 = vmatprep.subr.msk.bf16.mxu1 %vm2986_vm9, %v9804_v55 }
 0x439   : > { %3973 = vmatprep.mubr.bf16.mxu0 %v11075_v39  ;;  %4014 = vmatprep.mubr.bf16.mxu1 %v11075_v39 }
 0x43e   : > { %8216 = vmatmul.mubr.msk.bf16.vlgmr.msra.gmra.mxu0 %vm2982_vm11, %v8214_v49  ;;  %8218 = vmatmul.mubr.msk.bf16.vlgmr.msra.gmra.mxu1 %vm2982_vm11, %v8214_v49 }
 0x43f   : > { %4081 = vmatpush1.bf16.msra.mxu0 %v9829_v6  ;;  %4122 = vmatpush1.bf16.msra.mxu1 %v9832_v33 }
 0x440   : > { %4098 = vmatprep.mubr.bf16.mxu0 %v11075_v39  ;;  %4139 = vmatprep.mubr.bf16.mxu1 %v11075_v39 }
 0x4be   : > { %v3033_v55 = vpop.f32.mrf.mxu0  ;;  %v3074_v15 = vpop.f32.mrf.mxu1 }
 0x4c0   : > { %v3035_v47 = vpop.f32.mrf.mxu0  ;;  %v3076_v0 = vpop.f32.mrf.mxu1 }
 0x4c2   : > { %v3037_v16 = vpop.f32.mrf.mxu0  ;;  %v3078_v21 = vpop.f32.mrf.mxu1 }
 0x4c4   : > { %v3038_v38 = vpop.f32.mrf.mxu0  ;;  %v3079_v1 = vpop.f32.mrf.mxu1 }
 0x4c6   : > { %v3130_v27 = vpop.f32.mrf.mxu0  ;;  %v3171_v19 = vpop.f32.mrf.mxu1 }
 0x4c7   : > { %v3131_v20 = vadd.f32 %v3130_v27, %v3033_v55  ;;  %v3172_v35 = vadd.f32 %v3171_v19, %v3074_v15 }
 0x4c8   : > { %v3132_v28 = vpop.f32.mrf.mxu0  ;;  %v3173_v24 = vpop.f32.mrf.mxu1 }
 0x4c9   : > { %v3133_v51 = vadd.f32 %v3132_v28, %v3035_v47 }
 0x4ca   : > { %v3134_v49 = vpop.f32.mrf.mxu0  ;;  %v3175_v6 = vpop.f32.mrf.mxu1 }
 0x4cc   : > { %v3135_v40 = vpop.f32.mrf.mxu0  ;;  %v3176_v33 = vpop.f32.mrf.mxu1 }
 0x4ce   : > { %v3249_v42 = vpop.f32.mrf.mxu0  ;;  %v3290_v12 = vpop.f32.mrf.mxu1 }
 0x4d0   : > { %v3251_v43 = vpop.f32.mrf.mxu0  ;;  %v3292_v58 = vpop.f32.mrf.mxu1 }
 0x4d1   : > { %v3298_v8 = vadd.f32 %v3251_v43, %v3133_v51 }
 0x4d2   : > { %v3253_v25 = vpop.f32.mrf.mxu0  ;;  %v3294_v4 = vpop.f32.mrf.mxu1 }
 0x4d4   : > { %v3254_v7 = vpop.f32.mrf.mxu0  ;;  %v3295_v10 = vpop.f32.mrf.mxu1 }
 0x4d6   : > { %v3372_v16 = vpop.f32.mrf.mxu0  ;;  %v3413_v21 = vpop.f32.mrf.mxu1 }
 0x4d8   : > { %v3374_v38 = vpop.f32.mrf.mxu0  ;;  %v3415_v1 = vpop.f32.mrf.mxu1 }
 0x4da   : > { %v3376_v48 = vpop.f32.mrf.mxu0  ;;  %v3417_v32 = vpop.f32.mrf.mxu1 }
 0x4dc   : > { %v3377_v56 = vpop.f32.mrf.mxu0  ;;  %v3418_v54 = vpop.f32.mrf.mxu1 }
 0x4de   : > { %v3483_v49 = vpop.f32.mrf.mxu0  ;;  %v3524_v6 = vpop.f32.mrf.mxu1 }
 0x4e0   : > { %v3485_v40 = vpop.f32.mrf.mxu0  ;;  %v3526_v33 = vpop.f32.mrf.mxu1 }
 0x4e2   : > { %v3487_v57 = vpop.f32.mrf.mxu0  ;;  %v3528_v9 = vpop.f32.mrf.mxu1 }
 0x4e3   : > { %v3174_v9 = vadd.f32 %v3173_v24, %v3076_v0 }
 0x4e4   : > { %v3488_v44 = vpop.f32.mrf.mxu0  ;;  %v3529_v46 = vpop.f32.mrf.mxu1 }
 0x4e5   : > { %v3297_v44 = vadd.f32 %v3249_v42, %v3131_v20  ;;  %v3299_v46 = vadd.f32 %v3290_v12, %v3172_v35  ;;  %v3300_v63 = vadd.f32 %v3292_v58, %v3174_v9 }
 0x4e6   : > { %v3606_v25 = vpop.f32.mrf.mxu0  ;;  %v3647_v4 = vpop.f32.mrf.mxu1 }
 0x4e7   : > { %v3423_v13 = vadd.f32 %v3415_v1, %v3300_v63 }
 0x4e8   : > { %v3608_v7 = vpop.f32.mrf.mxu0  ;;  %v3649_v10 = vpop.f32.mrf.mxu1 }
 0x4e9   : > { %v3534_v35 = vadd.f32 %v3526_v33, %v3423_v13 }
 0x4ea   : > { %v3610_v53 = vpop.f32.mrf.mxu0  ;;  %v3651_v22 = vpop.f32.mrf.mxu1 }
 0x4eb   : > { %v3420_v53 = vadd.f32 %v3372_v16, %v3297_v44  ;;  %v3422_v22 = vadd.f32 %v3413_v21, %v3299_v46  ;;  %v3657_v58 = vadd.f32 %v3649_v10, %v3534_v35  ;;  %v5945_v46 = vld [vmem:[%s10950_s10] sm:$0xf] }
 0x4ec   : > { %v3611_v5 = vpop.f32.mrf.mxu0  ;;  %v3652_v23 = vpop.f32.mrf.mxu1 }
 0x4ed   : > { %v3421_v5 = vadd.f32 %v3374_v38, %v3298_v8  ;;  %v3531_v18 = vadd.f32 %v3483_v49, %v3420_v53  ;;  %v3533_v31 = vadd.f32 %v3524_v6, %v3422_v22 }
 0x4ee   : > { %v3729_v48 = vpop.f32.mrf.mxu0  ;;  %v3770_v32 = vpop.f32.mrf.mxu1 }
 0x4ef   : > { %v3532_v55 = vadd.f32 %v3485_v40, %v3421_v5 }
 0x4f0   : > { %v3731_v56 = vpop.f32.mrf.mxu0  ;;  %v3772_v54 = vpop.f32.mrf.mxu1 }
 0x4f1   : > { %v3655_v51 = vadd.f32 %v3608_v7, %v3532_v55  ;;  %v3780_v27 = vadd.f32 %v3772_v54, %v3657_v58 }
 0x4f2   : > { %v3733_v26 = vpop.f32.mrf.mxu0  ;;  %v3774_v57 = vpop.f32.mrf.mxu1 }
 0x4f3   : > { %v4062_v26 = vld [vmem:[%s10949_s9] sm:$0x3]  ;;  %v3778_v0 = vadd.f32 %v3731_v56, %v3655_v51 }
 0x4f4   : > { %v3734_v50 = vpop.f32.mrf.mxu0  ;;  %v3775_v37 = vpop.f32.mrf.mxu1  ;;  %8220 = vmatmul.mubr.msk.bf16.vlgmr.msra.gmra.mxu0 %vm2982_vm11, %v4062_v26  ;;  %8222 = vmatmul.mubr.msk.bf16.vlgmr.msra.gmra.mxu1 %vm2982_vm11, %v4062_v26 }
 0x4f5   : > { %v3654_v37 = vadd.f32 %v3606_v25, %v3531_v18  ;;  %v3656_v50 = vadd.f32 %v3647_v4, %v3533_v31  ;;  %4195 = vmatprep.mubr.bf16.mxu0 %v11075_v39  ;;  %4236 = vmatprep.mubr.bf16.mxu1 %v11075_v39  ;;  %v4031_v18 = vpop.permute.xlu1 %4030 }
 0x4f6   : > { %v3852_v23 = vpop.f32.mrf.mxu0  ;;  %v3893_v34 = vpop.f32.mrf.mxu1 }
 0x4f7   : > { %v3777_v43 = vadd.f32 %v3729_v48, %v3654_v37  ;;  %v3779_v12 = vadd.f32 %v3770_v32, %v3656_v50 }
 0x4f8   : > { %v3854_v15 = vpop.f32.mrf.mxu0  ;;  %v3895_v20 = vpop.f32.mrf.mxu1 }
 0x4f9   : > { %v3900_v19 = vadd.f32 %v3852_v23, %v3777_v43  ;;  %v3902_v28 = vadd.f32 %v3893_v34, %v3779_v12  ;;  %v3901_v31 = vadd.f32 %v3854_v15, %v3778_v0  ;;  %v3903_v16 = vadd.f32 %v3895_v20, %v3780_v27 }
 0x4fa   : > { %v3856_v63 = vpop.f32.mrf.mxu0  ;;  %v3897_v8 = vpop.f32.mrf.mxu1 }
 0x4fc   : > { %v3857_v42 = vpop.f32.mrf.mxu0  ;;  %v3898_v47 = vpop.f32.mrf.mxu1 }
 0x4fe   : > { %v3975_v24 = vpop.f32.mrf.mxu0  ;;  %v4016_v13 = vpop.f32.mrf.mxu1 }
 0x4ff   : > { %v4023_v21 = vadd.f32 %v3975_v24, %v3900_v19  ;;  %v4025_v38 = vadd.f32 %v4016_v13, %v3902_v28 }
 0x500   : > { %v3977_v1 = vpop.f32.mrf.mxu0  ;;  %v4018_v49 = vpop.f32.mrf.mxu1 }
 0x501   : > { %v4033_v6 = vadd.f32 %v4031_v18, %v4023_v21  ;;  %v4024_v40 = vadd.f32 %v3977_v1, %v3901_v31  ;;  %v4026_v33 = vadd.f32 %v4018_v49, %v3903_v16  ;;  %v4035_v10 = vadd.f32 %v4031_v18, %v4025_v38 }
 0x502   : > { %v3979_v25 = vpop.f32.mrf.mxu0  ;;  %v4020_v4 = vpop.f32.mrf.mxu1 }
 0x503   : > { %v10091_v7 = vmax.f32 %v4033_v6, 0.0  ;;  %v4034_v48 = vadd.f32 %v4031_v18, %v4024_v40  ;;  %v4036_v54 = vadd.f32 %v4031_v18, %v4026_v33  ;;  %v10097_v57 = vmax.f32 %v4035_v10, 0.0  ;;  %v4057_v18 = vld [vmem:[%s10948_s8] sm:$0x3] }
 0x504   : > { %v3980_v32 = vpop.f32.mrf.mxu0  ;;  %v4021_v34 = vpop.f32.mrf.mxu1 }
 0x505   : > { %v10093_v56 = vmax.f32 %v4034_v48, 0.0  ;;  %4041 = vrot.lane.b32.xlu0 %v10091_v7, %s11067_s1  ;;  %v10101_v9 = vmax.f32 %v4036_v54, 0.0 }
 0x507   : > { %4043 = vrot.lane.b32.xlu1 %v10093_v56, %s11067_s1  ;;  %v8514_v44 = vpack.i.bf16 %v10097_v57, %v10093_v56 }
 0x509   : > { %4045 = vrot.lane.b32.xlu0 %v10097_v57, %s11067_s1 }
 0x50b   : > { %4047 = vrot.lane.b32.xlu1 %v10101_v9, %s11067_s1 }
 0x50d   : > { %4245 = vrot.lane.b32.xlu0 %v10091_v7, %s8730_s27 }
 0x50f   : > { %4251 = vrot.lane.b32.xlu1 %v10101_v9, %s8730_s27 }
 0x511   : > { %8515 = vrot.lane.b32.xlu0 %v8514_v44, %s8730_s27 }
 0x513   : > { %4459 = vrot.lane.b32.xlu1 %v10091_v7, %s11068_s26 }
 0x515   : > { %4461 = vrot.lane.b32.xlu0 %v10093_v56, %s11068_s26 }
 0x517   : > { %4463 = vrot.lane.b32.xlu1 %v10097_v57, %s11068_s26 }
 0x519   : > { %4465 = vrot.lane.b32.xlu0 %v10101_v9, %s11068_s26 }
 0x51b   : > { %4673 = vrot.lane.b32.xlu1 %v10091_v7, %s8731_s28 }
 0x51d   : > { %4675 = vrot.lane.b32.xlu0 %v10093_v56, %s8731_s28 }
 0x51f   : > { %4677 = vrot.lane.b32.xlu1 %v10097_v57, %s8731_s28 }
 0x521   : > { %4679 = vrot.lane.b32.xlu0 %v10101_v9, %s8731_s28 }
 0x523   : > { %5089 = vrot.lane.b32.xlu1 %v10091_v7, %s8732_s29 }
 0x525   : > { %5091 = vrot.lane.b32.xlu0 %v10093_v56, %s8732_s29 }
 0x527   : > { %5093 = vrot.lane.b32.xlu1 %v10097_v57, %s8732_s29 }
 0x529   : > { %5095 = vrot.lane.b32.xlu0 %v10101_v9, %s8732_s29 }
 0x52b   : > { %5303 = vrot.lane.b32.xlu1 %v10091_v7, %s11069_s30 }
 0x52d   : > { %5305 = vrot.lane.b32.xlu0 %v10093_v56, %s11069_s30 }
 0x52f   : > { %5307 = vrot.lane.b32.xlu1 %v10097_v57, %s11069_s30 }
 0x531   : > { %5309 = vrot.lane.b32.xlu0 %v10101_v9, %s11069_s30 }
 0x533   : > { %5517 = vrot.lane.b32.xlu1 %v10091_v7, %s11070_s19 }
 0x535   : > { %5523 = vrot.lane.b32.xlu0 %v10101_v9, %s11070_s19 }
 0x537   : > { %8520 = vrot.lane.b32.xlu1 %v8514_v44, %s11070_s19 }
 0x539   : > { %5731 = vrot.lane.b32.xlu0 %v10091_v7, %s8735_s21 }
 0x53b   : > { %5733 = vrot.lane.b32.xlu1 %v10093_v56, %s8735_s21 }
 0x53d   : > { %5735 = vrot.lane.b32.xlu0 %v10097_v57, %s8735_s21 }
 0x53f   : > { %5737 = vrot.lane.b32.xlu1 %v10101_v9, %s8735_s21 }
 0x541   : > { %5948 = vperm.xlu0 %8473, %v5945_v46  }
 0x577   : > { %v4042_v53 = vpop.permute.xlu0 %4041 }
 0x579   : > { %v4044_v22 = vpop.permute.xlu1 %4043 }
 0x57a   : > { %v4051_v5 = vsel %vm1226_vm2, %v4042_v53, %v4044_v22 }
 0x57b   : > { %v4054_v23 = vmul.f32 %v9003_v29, %v4051_v5  ;;  %v4046_v26 = vpop.permute.xlu0 %4045 }
 0x57c   : > { %v4050_v55 = vsel %vm1226_vm2, %v4044_v22, %v4046_v26 }
 0x57d   : > { %v4059_v15 = vpack.c.bf16 %v4054_v23, %v4054_v23  ;;  %v4055_v20 = vmul.f32 %v9006_v30, %v4050_v55  ;;  %v4048_v35 = vpop.permute.xlu1 %4047 }
 0x57e   : > { %v4049_v37 = vsel %vm1226_vm2, %v4046_v26, %v4048_v35  ;;  %v4052_v50 = vsel %vm1226_vm2, %v4048_v35, %v4042_v53  ;;  %v8227_v53 = vld [vmem:[%s10948_s8 + $0x2] sm:$0x3] }
 0x57f   : > { %v4060_v63 = vpack.c.bf16 %v4055_v20, %v4055_v20  ;;  %v4053_v8 = vmul.f32 %v9085_v61, %v4052_v50  ;;  %v4056_v51 = vmul.f32 %v9090_v62, %v4049_v37  ;;  %v4246_v58 = vpop.permute.xlu0 %4245  ;;  %8223 = vmatprep.subr.msk.bf16.mxu0 %vm2986_vm9, %v4059_v15  ;;  %v8232_v35 = vld [vmem:[%s10949_s9 + $0x2] sm:$0x3] }
 0x581   : > { %v4058_v43 = vpack.c.bf16 %v4053_v8, %v4053_v8  ;;  %v4061_v12 = vpack.c.bf16 %v4056_v51, %v4056_v51  ;;  %v4252_v42 = vpop.permute.xlu1 %4251  ;;  %v4158_v28 = vsel %vm2986_vm9, %v4060_v63, 0  ;;  %v11135_v51 = vld [vmem:[#allocation52_spill] sm:$0xff] }
 0x582   : > { %v4256_v47 = vsel %vm1291_vm10, %v4252_v42, %v4246_v58 }
 0x583   : > { %v4257_v0 = vmul.f32 %v9135_v36, %v4256_v47  ;;  %v8516_v27 = vpop.permute.xlu0 %8515  ;;  %8225 = vmatprep.subr.msk.bf16.mxu1 %vm2986_vm9, %v4061_v12  ;;  %v4152_v19 = vsel %vm2986_vm9, %v4058_v43, 0 }
 0x584   : > { %v8518_v24 = vunpack.i.h.bf16 %v8516_v27  ;;  %v8517_v13 = vunpack.i.l.bf16 %v8516_v27  ;;  %4178 = vmatpush1.bf16.msra.mxu0 %v4152_v19  ;;  %4219 = vmatpush1.bf16.msra.mxu1 %v4158_v28  ;;  %v11136_v27 = vld [vmem:[#allocation11_spill] sm:$0xff] }
 0x585   : > { %v4263_v31 = vpack.c.bf16 %v4257_v0, %v4257_v0  ;;  %v4460_v16 = vpop.permute.xlu1 %4459 }
 0x586   : > { %v4253_v21 = vsel %vm1291_vm10, %v8518_v24, %v4252_v42  ;;  %v4255_v38 = vsel %vm1291_vm10, %v4246_v58, %v8517_v13  ;;  %v4254_v1 = vsel %vm1291_vm10, %v8517_v13, %v8518_v24  ;;  %v11137_v24 = vld [vmem:[#allocation53_spill] sm:$0xff]  ;;  %v11138_v13 = vld [vmem:[#allocation54_spill] sm:$0xff] }
 0x587   : > { %v4264_v49 = vpack.c.bf16 %v4255_v38, %v4255_v38  ;;  %v4266_v6 = vpack.c.bf16 %v4253_v21, %v4253_v21  ;;  %v4462_v40 = vpop.permute.xlu0 %4461  ;;  %8224 = vmatmul.mubr.msk.bf16.vlgmr.msra.gmra.mxu0 %vm2982_vm11, %v4057_v18  ;;  %8226 = vmatmul.mubr.msk.bf16.vlgmr.msra.gmra.mxu1 %vm2982_vm11, %v4057_v18  ;;  %v4265_v33 = vpack.c.bf16 %v4254_v1, %v4254_v1  ;;  %v4271_v10 = vsel %vm2986_vm9, %v4263_v31, 0  ;;  %v11139_v1 = vld [vmem:[#allocation55_spill] sm:$0xff] }
 0x588   : > { %v4469_v25 = vsel %vm1359_vm13, %v4460_v16, %v4462_v40  ;;  %4314 = vmatprep.mubr.bf16.mxu0 %v11075_v39  ;;  %4355 = vmatprep.mubr.bf16.mxu1 %v11075_v39 }
 0x589   : > { %8228 = vmatprep.subr.msk.bf16.mxu0 %vm2986_vm9, %v4264_v49  ;;  %8230 = vmatprep.subr.msk.bf16.mxu1 %vm2986_vm9, %v4266_v6  ;;  %v4464_v4 = vpop.permute.xlu1 %4463  ;;  %v4277_v48 = vsel %vm2986_vm9, %v4265_v33, 0  ;;  %v4472_v32 = vmul.f32 %v9079_v59, %v4469_v25  ;;  %v11140_v49 = vld [vmem:[#allocation56_spill] sm:$0xff]  ;;  %v4894_v25 = vpack.c.bf16 %v10093_v56, %v10093_v56  ;;  %v4895_v56 = vpack.c.bf16 %v10097_v57, %v10097_v57 }
 0x58a   : > { %4297 = vmatpush1.bf16.msra.mxu0 %v4271_v10  ;;  %4338 = vmatpush1.bf16.msra.mxu1 %v4277_v48  ;;  %v4468_v54 = vsel %vm1359_vm13, %v4462_v40, %v4464_v4  ;;  %v8247_v6 = vld [vmem:[%s10948_s8 + $0x6] sm:$0x3]  ;;  %v11141_v10 = vld [vmem:[#allocation58_spill] sm:$0xff]  ;;  %v11142_v48 = vld [vmem:[#allocation59_spill] sm:$0xff] }
 0x58b   : > { %v4466_v34 = vpop.permute.xlu0 %4465  ;;  %8233 = vmatprep.subr.msk.bf16.mxu0 %vm2986_vm9, %v9784_v52  ;;  %8235 = vmatprep.subr.msk.bf16.mxu1 %vm2986_vm9, %v9782_v17  ;;  %v4478_v5 = vpack.c.bf16 %v4472_v32, %v4472_v32  ;;  %v4473_v52 = vmul.f32 %v9082_v60, %v4468_v54  ;;  %v4893_v32 = vpack.c.bf16 %v10091_v7, %v10091_v7 }
 0x58c   : > { %v4467_v44 = vsel %vm1359_vm13, %v4464_v4, %v4466_v34  ;;  %v4470_v46 = vsel %vm1359_vm13, %v4466_v34, %v4460_v16  ;;  %v8242_v16 = vld [vmem:[%s10949_s9 + $0x4] sm:$0x3]  ;;  %v4896_v4 = vpack.c.bf16 %v10101_v9, %v10101_v9  ;;  %v8252_v9 = vld [vmem:[%s10949_s9 + $0x6] sm:$0x3] }
 0x58d   : > { %v4474_v22 = vmul.f32 %v9105_v14, %v4467_v44  ;;  %v4471_v17 = vmul.f32 %v9100_v11, %v4470_v46  ;;  %v4674_v55 = vpop.permute.xlu1 %4673  ;;  %v4479_v15 = vpack.c.bf16 %v4473_v52, %v4473_v52  ;;  %v4901_v44 = vsel %vm2986_vm9, %v4893_v32, 0  ;;  %v11144_v52 = vld [vmem:[#allocation60_spill] sm:$0xff] }
 0x58e   : > { %v4907_v46 = vsel %vm2986_vm9, %v4895_v56, 0 }
 0x58f   : > { %v4480_v23 = vpack.c.bf16 %v4474_v22, %v4474_v22  ;;  %v4676_v26 = vpop.permute.xlu0 %4675  ;;  %8229 = vmatmul.mubr.msk.bf16.vlgmr.msra.gmra.mxu0 %vm2982_vm11, %v8227_v53  ;;  %8231 = vmatmul.mubr.msk.bf16.vlgmr.msra.gmra.mxu1 %vm2982_vm11, %v8227_v53  ;;  %v4477_v20 = vpack.c.bf16 %v4471_v17, %v4471_v17  ;;  %v4491_v63 = vsel %vm2986_vm9, %v4479_v15, 0 }
 0x590   : > { %4388 = vmatpush1.bf16.msra.mxu0 %v9794_v45  ;;  %4429 = vmatpush1.bf16.msra.mxu1 %v9797_v41  ;;  %v4683_v45 = vsel %vm1427_vm1, %v4674_v55, %v4676_v26 }
 0x591   : > { %8238 = vmatprep.subr.msk.bf16.mxu0 %vm2986_vm9, %v4478_v5  ;;  %8240 = vmatprep.subr.msk.bf16.mxu1 %vm2986_vm9, %v4480_v23  ;;  %v4678_v41 = vpop.permute.xlu1 %4677  ;;  %v4485_v50 = vsel %vm2986_vm9, %v4477_v20, 0  ;;  %v4686_v58 = vmul.f32 %v9003_v29, %v4683_v45  ;;  %v11143_v5 = vld [vmem:[#allocation57_spill] sm:$0xff] }
 0x592   : > { %4405 = vmatprep.mubr.bf16.mxu0 %v11075_v39  ;;  %4446 = vmatprep.mubr.bf16.mxu1 %v11075_v39  ;;  %v4682_v12 = vsel %vm1427_vm1, %v4676_v26, %v4678_v41 }
 0x593   : > { %v4680_v37 = vpop.permute.xlu0 %4679  ;;  %v4692_v47 = vpack.c.bf16 %v4686_v58, %v4686_v58  ;;  %v4687_v0 = vmul.f32 %v9006_v30, %v4682_v12 }
 0x594   : > { %v4681_v8 = vsel %vm1427_vm1, %v4678_v41, %v4680_v37  ;;  %v4684_v42 = vsel %vm1427_vm1, %v4680_v37, %v4674_v55  ;;  %v11145_v41 = vld [vmem:[#allocation12_spill] sm:$0xff] }
 0x595   : > { %v4688_v43 = vmul.f32 %v9090_v62, %v4681_v8  ;;  %v4685_v19 = vmul.f32 %v11136_v27, %v4684_v42  ;;  %v4693_v18 = vpack.c.bf16 %v4687_v0, %v4687_v0  ;;  %v5090_v40 = vpop.permute.xlu1 %5089 }
 0x597   : > { %8234 = vmatmul.mubr.msk.bf16.vlgmr.msra.gmra.mxu0 %vm2982_vm11, %v8232_v35  ;;  %8236 = vmatmul.mubr.msk.bf16.vlgmr.msra.gmra.mxu1 %vm2982_vm11, %v8232_v35  ;;  %v4694_v28 = vpack.c.bf16 %v4688_v43, %v4688_v43  ;;  %v4691_v31 = vpack.c.bf16 %v4685_v19, %v4685_v19  ;;  %v4705_v38 = vsel %vm2986_vm9, %v4693_v18, 0  ;;  %v5092_v33 = vpop.permute.xlu0 %5091  ;;  %v8257_v35 = vld [vmem:[%s10948_s8 + $0x8] sm:$0x3] }
 0x598   : > { %4511 = vmatpush1.bf16.msra.mxu0 %v4485_v50  ;;  %4552 = vmatpush1.bf16.msra.mxu1 %v4491_v63  ;;  %v5099_v26 = vsel %vm1550_vm5, %v5090_v40, %v5092_v33 }
 0x599   : > { %8243 = vmatprep.subr.msk.bf16.mxu0 %vm2986_vm9, %v9854_v3  ;;  %8245 = vmatprep.subr.msk.bf16.mxu1 %vm2986_vm9, %v11135_v51  ;;  %v8237_v3 = vld [vmem:[%s10948_s8 + $0x4] sm:$0x3]  ;;  %v4699_v21 = vsel %vm2986_vm9, %v4691_v31, 0  ;;  %v5094_v34 = vpop.permute.xlu1 %5093  ;;  %v5101_v50 = vmul.f32 %v11145_v41, %v5099_v26 }
 0x59a   : > { %4528 = vmatprep.mubr.bf16.mxu0 %v11075_v39  ;;  %4569 = vmatprep.mubr.bf16.mxu1 %v11075_v39  ;;  %v5098_v7 = vsel %vm1550_vm5, %v5092_v33, %v5094_v34 }
 0x59b   : > { %v5096_v54 = vpop.permute.xlu0 %5095  ;;  %v5102_v55 = vmul.f32 %v9079_v59, %v5098_v7  ;;  %v5107_v0 = vpack.c.bf16 %v5101_v50, %v5101_v50  ;;  %v8272_v7 = vld [vmem:[%s10949_s9 + $0xa] sm:$0x3] }
 0x59c   : > { %v5100_v57 = vsel %vm1550_vm5, %v5096_v54, %v5090_v40  ;;  %v5097_v20 = vsel %vm1550_vm5, %v5094_v34, %v5096_v54  ;;  %v11150_v40 = vld [vmem:[#allocation13_spill] sm:$0xff]  ;;  %v11151_v34 = vld [vmem:[#allocation66_spill] sm:$0xff] }
 0x59d   : > { %v5104_v15 = vmul.f32 %v9105_v14, %v5100_v57  ;;  %v5304_v63 = vpop.permute.xlu1 %5303  ;;  %v5108_v51 = vpack.c.bf16 %v5102_v55, %v5102_v55  ;;  %v5103_v58 = vmul.f32 %v9082_v60, %v5097_v20  ;;  %v5115_v18 = vsel %vm2986_vm9, %v5107_v0, 0  ;;  %v11152_v54 = vld [vmem:[#allocation65_spill] sm:$0xff] }
 0x59f   : > { %8239 = vmatmul.mubr.msk.bf16.vlgmr.msra.gmra.mxu0 %vm2982_vm11, %v8237_v3  ;;  %8241 = vmatmul.mubr.msk.bf16.vlgmr.msra.gmra.mxu1 %vm2982_vm11, %v8237_v3  ;;  %v5110_v43 = vpack.c.bf16 %v5104_v15, %v5104_v15  ;;  %v5306_v12 = vpop.permute.xlu0 %5305  ;;  %v11146_v3 = vld [vmem:[#allocation61_spill] sm:$0xff]  ;;  %v5109_v19 = vpack.c.bf16 %v5103_v58, %v5103_v58 }
 0x5a0   : > { %4602 = vmatpush1.bf16.msra.mxu0 %v11137_v24  ;;  %4643 = vmatpush1.bf16.msra.mxu1 %v11138_v13 }
 0x5a1   : > { %8248 = vmatprep.subr.msk.bf16.mxu0 %vm2986_vm9, %v4692_v47  ;;  %8250 = vmatprep.subr.msk.bf16.mxu1 %vm2986_vm9, %v4694_v28  ;;  %v11147_v47 = vld [vmem:[#allocation63_spill] sm:$0xff]  ;;  %v8262_v28 = vld [vmem:[%s10949_s9 + $0x8] sm:$0x3]  ;;  %v5308_v24 = vpop.permute.xlu1 %5307  ;;  %v5121_v31 = vsel %vm2986_vm9, %v5109_v19, 0 }
 0x5a2   : > { %4619 = vmatprep.mubr.bf16.mxu0 %v11075_v39  ;;  %4660 = vmatprep.mubr.bf16.mxu1 %v11075_v39 }
 0x5a3   : > { %v5310_v13 = vpop.permute.xlu0 %5309 }
 0x5a7   : > { %8244 = vmatmul.mubr.msk.bf16.vlgmr.msra.gmra.mxu0 %vm2982_vm11, %v8242_v16  ;;  %8246 = vmatmul.mubr.msk.bf16.vlgmr.msra.gmra.mxu1 %vm2982_vm11, %v8242_v16  ;;  %v5312_v16 = vsel %vm1618_vm15, %v5306_v12, %v5308_v24  ;;  %v5524_v57 = vpop.permute.xlu0 %5523 }
 0x5a8   : > { %4725 = vmatpush1.bf16.msra.mxu0 %v4699_v21  ;;  %4766 = vmatpush1.bf16.msra.mxu1 %v4705_v38  ;;  %v5314_v21 = vsel %vm1618_vm15, %v5310_v13, %v5304_v63  ;;  %v11148_v38 = vld [vmem:[#allocation64_spill] sm:$0xff] }
 0x5a9   : > { %8253 = vmatprep.subr.msk.bf16.mxu0 %vm2986_vm9, %v11139_v1  ;;  %8255 = vmatprep.subr.msk.bf16.mxu1 %vm2986_vm9, %v11140_v49  ;;  %v11149_v1 = vld [vmem:[#allocation62_spill] sm:$0xff]  ;;  %v5313_v49 = vsel %vm1618_vm15, %v5304_v63, %v5306_v12  ;;  %v5318_v33 = vmul.f32 %v11150_v40, %v5314_v21 }
 0x5aa   : > { %4742 = vmatprep.mubr.bf16.mxu0 %v11075_v39  ;;  %4783 = vmatprep.mubr.bf16.mxu1 %v11075_v39 }
 0x5ab   : > { %v5324_v56 = vpack.c.bf16 %v5318_v33, %v5318_v33 }
 0x5af   : > { %8249 = vmatmul.mubr.msk.bf16.vlgmr.msra.gmra.mxu0 %vm2982_vm11, %v8247_v6  ;;  %8251 = vmatmul.mubr.msk.bf16.vlgmr.msra.gmra.mxu1 %vm2982_vm11, %v8247_v6  ;;  %v5316_v6 = vmul.f32 %v9003_v29, %v5312_v16 }
 0x5b0   : > { %4816 = vmatpush1.bf16.msra.mxu0 %v11141_v10  ;;  %4857 = vmatpush1.bf16.msra.mxu1 %v11142_v48  ;;  %v5315_v10 = vmul.f32 %v11136_v27, %v5313_v49  ;;  %v11159_v49 = vld [vmem:[#allocation69_spill] sm:$0xff] }
 0x5b1   : > { %8258 = vmatprep.subr.msk.bf16.mxu0 %vm2986_vm9, %v4894_v25  ;;  %8260 = vmatprep.subr.msk.bf16.mxu1 %vm2986_vm9, %v4896_v4  ;;  %v5311_v25 = vsel %vm1618_vm15, %v5308_v24, %v5310_v13  ;;  %v8267_v4 = vld [vmem:[%s10948_s8 + $0xa] sm:$0x3]  ;;  %v5322_v48 = vpack.c.bf16 %v5316_v6, %v5316_v6  ;;  %v8282_v24 = vld [vmem:[%s10949_s9 + $0xc] sm:$0x3] }
 0x5b2   : > { %4833 = vmatprep.mubr.bf16.mxu0 %v11075_v39  ;;  %4874 = vmatprep.mubr.bf16.mxu1 %v11075_v39  ;;  %v5317_v32 = vmul.f32 %v9006_v30, %v5311_v25  ;;  %v11160_v25 = vld [vmem:[#allocation15_spill] sm:$0xff] }
 0x5b4   : > { %v10304_v53 = vpop.f32.mrf.mxu0  ;;  %v10306_v22 = vpop.f32.mrf.mxu1 }
 0x5b6   : > { %v10314_v17 = vpop.f32.mrf.mxu0  ;;  %v10316_v23 = vpop.f32.mrf.mxu1 }
 0x5b7   : > { %8254 = vmatmul.mubr.msk.bf16.vlgmr.msra.gmra.mxu0 %vm2982_vm11, %v8252_v9  ;;  %8256 = vmatmul.mubr.msk.bf16.vlgmr.msra.gmra.mxu1 %vm2982_vm11, %v8252_v9  ;;  %v5518_v9 = vpop.permute.xlu1 %5517 }
 0x5b8   : > { %4927 = vmatpush1.bf16.msra.mxu0 %v4901_v44  ;;  %4968 = vmatpush1.bf16.msra.mxu1 %v4907_v46  ;;  %v4104_v37 = vpop.f32.mrf.mxu0  ;;  %v4145_v45 = vpop.f32.mrf.mxu1  ;;  %v5321_v44 = vpack.c.bf16 %v5315_v10, %v5315_v10  ;;  %v5323_v46 = vpack.c.bf16 %v5317_v32, %v5317_v32  ;;  %v5528_v55 = vsel %vm1686_vm3, %v5524_v57, %v5518_v9 }
 0x5b9   : > { %8263 = vmatprep.subr.msk.bf16.mxu0 %vm2986_vm9, %v11143_v5  ;;  %8265 = vmatprep.subr.msk.bf16.mxu1 %vm2986_vm9, %v11144_v52  ;;  %v11154_v37 = vld [vmem:[#allocation68_spill] sm:$0xff]  ;;  %v11155_v45 = vld [vmem:[#allocation14_spill] sm:$0xff] }
 0x5ba   : > { %4944 = vmatprep.mubr.bf16.mxu0 %v11075_v39  ;;  %4985 = vmatprep.mubr.bf16.mxu1 %v11075_v39  ;;  %v4105_v8 = vpop.f32.mrf.mxu0  ;;  %v4146_v42 = vpop.f32.mrf.mxu1  ;;  %v5329_v52 = vsel %vm2986_vm9, %v5321_v44, 0  ;;  %v5335_v26 = vsel %vm2986_vm9, %v5323_v46, 0  ;;  %v5532_v50 = vmul.f32 %v11155_v45, %v5528_v55  ;;  %v11162_v44 = vld [vmem:[#allocation75_spill] sm:$0xff]  ;;  %v11164_v55 = vld [vmem:[#allocation76_spill] sm:$0xff] }
 0x5bb   : > { %v8521_v5 = vpop.permute.xlu1 %8520  ;;  %v8277_v8 = vld [vmem:[%s10948_s8 + $0xc] sm:$0x3]  ;;  %v11156_v42 = vld [vmem:[#allocation70_spill] sm:$0xff] }
 0x5bc   : > { %v8523_v15 = vunpack.i.h.bf16 %v8521_v5  ;;  %v8522_v20 = vunpack.i.l.bf16 %v8521_v5 }
 0x5be   : > { %v5526_v63 = vsel %vm1686_vm3, %v8522_v20, %v8523_v15  ;;  %v5525_v0 = vsel %vm1686_vm3, %v8523_v15, %v5524_v57  ;;  %v8292_v57 = vld [vmem:[%s10949_s9 + $0xe] sm:$0x3]  ;;  %v8297_v15 = vld [vmem:[%s10948_s8 + $0x10] sm:$0x3] }
 0x5bf   : > { %8259 = vmatmul.mubr.msk.bf16.vlgmr.msra.gmra.mxu0 %vm2982_vm11, %v8257_v35  ;;  %8261 = vmatmul.mubr.msk.bf16.vlgmr.msra.gmra.mxu1 %vm2982_vm11, %v8257_v35  ;;  %v11153_v35 = vld [vmem:[#allocation67_spill] sm:$0xff]  ;;  %v5536_v58 = vpack.c.bf16 %v5526_v63, %v5526_v63  ;;  %v5734_v12 = vpop.permute.xlu1 %5733  ;;  %v8302_v63 = vld [vmem:[%s10949_s9 + $0x10] sm:$0x3] }
 0x5c0   : > { %5018 = vmatpush1.bf16.msra.mxu0 %v11146_v3  ;;  %5059 = vmatpush1.bf16.msra.mxu1 %v11147_v47  ;;  %v11157_v3 = vld [vmem:[#allocation71_spill] sm:$0xff]  ;;  %v5527_v47 = vsel %vm1686_vm3, %v5518_v9, %v8522_v20  ;;  %v11165_v20 = vld [vmem:[#allocation77_spill] sm:$0xff] }
 0x5c1   : > { %8268 = vmatprep.subr.msk.bf16.mxu0 %vm2986_vm9, %v5108_v51  ;;  %8270 = vmatprep.subr.msk.bf16.mxu1 %vm2986_vm9, %v5110_v43  ;;  %v5538_v51 = vpack.c.bf16 %v5532_v50, %v5532_v50  ;;  %v5732_v43 = vpop.permute.xlu0 %5731  ;;  %v5535_v19 = vpack.c.bf16 %v5527_v47, %v5527_v47  ;;  %v11168_v50 = vld [vmem:[#allocation21_spill] sm:$0xff] }
 0x5c2   : > { %5035 = vmatprep.mubr.bf16.mxu0 %v11075_v39  ;;  %5076 = vmatprep.mubr.bf16.mxu1 %v11075_v39  ;;  %v5741_v6 = vsel %vm1754_vm6, %v5732_v43, %v5734_v12 }
 0x5c3   : > { %v5743_v32 = vmul.f32 %v11145_v41, %v5741_v6 }
 0x5c5   : > { %v5736_v13 = vpop.permute.xlu0 %5735  ;;  %v5749_v46 = vpack.c.bf16 %v5743_v32, %v5743_v32 }
 0x5c6   : > { %v5740_v21 = vsel %vm1754_vm6, %v5734_v12, %v5736_v13 }
 0x5c7   : > { %8264 = vmatmul.mubr.msk.bf16.vlgmr.msra.gmra.mxu0 %vm2982_vm11, %v8262_v28  ;;  %8266 = vmatmul.mubr.msk.bf16.vlgmr.msra.gmra.mxu1 %vm2982_vm11, %v8262_v28  ;;  %v5537_v28 = vpack.c.bf16 %v5525_v0, %v5525_v0  ;;  %v5744_v33 = vmul.f32 %v9079_v59, %v5740_v21  ;;  %v5757_v5 = vsel %vm2986_vm9, %v5749_v46, 0 }
 0x5c8   : > { %5141 = vmatpush1.bf16.msra.mxu0 %v5115_v18  ;;  %5182 = vmatpush1.bf16.msra.mxu1 %v5121_v31  ;;  %v5738_v18 = vpop.permute.xlu1 %5737  ;;  %v5543_v31 = vsel %vm2986_vm9, %v5535_v19, 0 }
 0x5c9   : > { %8273 = vmatprep.subr.msk.bf16.mxu0 %vm2986_vm9, %v11148_v38  ;;  %8275 = vmatprep.subr.msk.bf16.mxu1 %vm2986_vm9, %v11149_v1  ;;  %v5549_v16 = vsel %vm2986_vm9, %v5537_v28, 0  ;;  %v5742_v38 = vsel %vm1754_vm6, %v5738_v18, %v5732_v43  ;;  %v11158_v1 = vld [vmem:[#allocation72_spill] sm:$0xff]  ;;  %v5739_v10 = vsel %vm1754_vm6, %v5736_v13, %v5738_v18 }
 0x5ca   : > { %5158 = vmatprep.mubr.bf16.mxu0 %v11075_v39  ;;  %5199 = vmatprep.mubr.bf16.mxu1 %v11075_v39  ;;  %v5745_v9 = vmul.f32 %v9082_v60, %v5739_v10 }
 0x5cf   : > { %8269 = vmatmul.mubr.msk.bf16.vlgmr.msra.gmra.mxu0 %vm2982_vm11, %v8267_v4  ;;  %8271 = vmatmul.mubr.msk.bf16.vlgmr.msra.gmra.mxu1 %vm2982_vm11, %v8267_v4  ;;  %v5746_v4 = vmul.f32 %v11160_v25, %v5742_v38 }
 0x5d0   : > { %5232 = vmatpush1.bf16.msra.mxu0 %v11151_v34  ;;  %5273 = vmatpush1.bf16.msra.mxu1 %v11152_v54  ;;  %v11161_v54 = vld [vmem:[#allocation74_spill] sm:$0xff] }
 0x5d1   : > { %8278 = vmatprep.subr.msk.bf16.mxu0 %vm2986_vm9, %v5322_v48  ;;  %8280 = vmatprep.subr.msk.bf16.mxu1 %vm2986_vm9, %v5324_v56  ;;  %v8287_v48 = vld [vmem:[%s10948_s8 + $0xe] sm:$0x3]  ;;  %v5750_v56 = vpack.c.bf16 %v5744_v33, %v5744_v33  ;;  %v5752_v34 = vpack.c.bf16 %v5746_v4, %v5746_v4 }
 0x5d2   : > { %5249 = vmatprep.mubr.bf16.mxu0 %v11075_v39  ;;  %5290 = vmatprep.mubr.bf16.mxu1 %v11075_v39 }
 0x5d7   : > { %8274 = vmatmul.mubr.msk.bf16.vlgmr.msra.gmra.mxu0 %vm2982_vm11, %v8272_v7  ;;  %8276 = vmatmul.mubr.msk.bf16.vlgmr.msra.gmra.mxu1 %vm2982_vm11, %v8272_v7  ;;  %v5751_v7 = vpack.c.bf16 %v5745_v9, %v5745_v9 }
 0x5d8   : > { %5355 = vmatpush1.bf16.msra.mxu0 %v5329_v52  ;;  %5396 = vmatpush1.bf16.msra.mxu1 %v5335_v26  ;;  %v11163_v26 = vld [vmem:[#allocation73_spill] sm:$0xff] }
 0x5d9   : > { %8283 = vmatprep.subr.msk.bf16.mxu0 %vm2986_vm9, %v11153_v35  ;;  %8285 = vmatprep.subr.msk.bf16.mxu1 %vm2986_vm9, %v11154_v37  ;;  %v5763_v52 = vsel %vm2986_vm9, %v5751_v7, 0  ;;  %v11166_v35 = vld [vmem:[#allocation78_spill] sm:$0xff]  ;;  %v11167_v37 = vld [vmem:[#allocation20_spill] sm:$0xff] }
 0x5da   : > { %5372 = vmatprep.mubr.bf16.mxu0 %v11075_v39  ;;  %5413 = vmatprep.mubr.bf16.mxu1 %v11075_v39 }
 0x5df   : > { %8279 = vmatmul.mubr.msk.bf16.vlgmr.msra.gmra.mxu0 %vm2982_vm11, %v8277_v8  ;;  %8281 = vmatmul.mubr.msk.bf16.vlgmr.msra.gmra.mxu1 %vm2982_vm11, %v8277_v8  ;;  %v11169_v8 = vld [vmem:[#allocation22_spill] sm:$0xff] }
 0x5e0   : > { %5446 = vmatpush1.bf16.msra.mxu0 %v11156_v42  ;;  %5487 = vmatpush1.bf16.msra.mxu1 %v11157_v3 }
 0x5e1   : > { %8288 = vmatprep.subr.msk.bf16.mxu0 %vm2986_vm9, %v5536_v58  ;;  %8290 = vmatprep.subr.msk.bf16.mxu1 %vm2986_vm9, %v5538_v51  ;;  %v11170_v51 = vld [vmem:[#allocation23_spill] sm:$0xff] }
 0x5e2   : > { %5463 = vmatprep.mubr.bf16.mxu0 %v11075_v39  ;;  %5504 = vmatprep.mubr.bf16.mxu1 %v11075_v39 }
 0x5e7   : > { %8284 = vmatmul.mubr.msk.bf16.vlgmr.msra.gmra.mxu0 %vm2982_vm11, %v8282_v24  ;;  %8286 = vmatmul.mubr.msk.bf16.vlgmr.msra.gmra.mxu1 %vm2982_vm11, %v8282_v24 }
 0x5e8   : > { %5569 = vmatpush1.bf16.msra.mxu0 %v5543_v31  ;;  %5610 = vmatpush1.bf16.msra.mxu1 %v5549_v16 }
 0x5e9   : > { %8293 = vmatprep.subr.msk.bf16.mxu0 %vm2986_vm9, %v11158_v1  ;;  %8295 = vmatprep.subr.msk.bf16.mxu1 %vm2986_vm9, %v11159_v49 }
 0x5ea   : > { %5586 = vmatprep.mubr.bf16.mxu0 %v11075_v39  ;;  %5627 = vmatprep.mubr.bf16.mxu1 %v11075_v39 }
 0x5ef   : > { %8289 = vmatmul.mubr.msk.bf16.vlgmr.msra.gmra.mxu0 %vm2982_vm11, %v8287_v48  ;;  %8291 = vmatmul.mubr.msk.bf16.vlgmr.msra.gmra.mxu1 %vm2982_vm11, %v8287_v48 }
 0x5f0   : > { %5660 = vmatpush1.bf16.msra.mxu0 %v11161_v54  ;;  %5701 = vmatpush1.bf16.msra.mxu1 %v11162_v44 }
 0x5f1   : > { %8298 = vmatprep.subr.msk.bf16.mxu0 %vm2986_vm9, %v5750_v56  ;;  %8300 = vmatprep.subr.msk.bf16.mxu1 %vm2986_vm9, %v5752_v34 }
 0x5f2   : > { %5677 = vmatprep.mubr.bf16.mxu0 %v11075_v39  ;;  %5718 = vmatprep.mubr.bf16.mxu1 %v11075_v39 }
 0x5f7   : > { %8294 = vmatmul.mubr.msk.bf16.vlgmr.msra.gmra.mxu0 %vm2982_vm11, %v8292_v57  ;;  %8296 = vmatmul.mubr.msk.bf16.vlgmr.msra.gmra.mxu1 %vm2982_vm11, %v8292_v57 }
 0x5f8   : > { %5783 = vmatpush1.bf16.msra.mxu0 %v5757_v5  ;;  %5824 = vmatpush1.bf16.msra.mxu1 %v5763_v52 }
 0x5f9   : > { %8303 = vmatprep.subr.msk.bf16.mxu0 %vm2986_vm9, %v11163_v26  ;;  %8305 = vmatprep.subr.msk.bf16.mxu1 %vm2986_vm9, %v11164_v55 }
 0x5fa   : > { %5800 = vmatprep.mubr.bf16.mxu0 %v11075_v39  ;;  %5841 = vmatprep.mubr.bf16.mxu1 %v11075_v39 }
 0x5ff   : > { %8299 = vmatmul.mubr.msk.bf16.vlgmr.msra.gmra.mxu0 %vm2982_vm11, %v8297_v15  ;;  %8301 = vmatmul.mubr.msk.bf16.vlgmr.msra.gmra.mxu1 %vm2982_vm11, %v8297_v15 }
 0x600   : > { %5874 = vmatpush1.bf16.msra.mxu0 %v11165_v20  ;;  %5915 = vmatpush1.bf16.msra.mxu1 %v11166_v35 }
 0x601   : > { %8307 = vmatprep.subr.msk.bf16.mxu0 %vm1884_vm7, %v11167_v37  ;;  %8309 = vmatprep.subr.msk.bf16.mxu1 %vm1884_vm7, %v11168_v50 }
 0x602   : > { %5891 = vmatprep.mubr.bf16.mxu0 %v11075_v39  ;;  %5932 = vmatprep.mubr.bf16.mxu1 %v11075_v39 }
 0x607   : > { %8304 = vmatmul.mubr.msk.bf16.vlgmr.msra.gmra.mxu0 %vm2982_vm11, %v8302_v63  ;;  %8306 = vmatmul.mubr.msk.bf16.vlgmr.msra.gmra.mxu1 %vm2982_vm11, %v8302_v63 }
 0x608   : > { %5999 = vmatpush1.bf16.msra.mxu0 %v11169_v8  ;;  %6040 = vmatpush1.bf16.msra.mxu1 %v11170_v51 }
 0x609   : > { %6016 = vmatprep.mubr.bf16.mxu0 %v11075_v39  ;;  %6057 = vmatprep.mubr.bf16.mxu1 %v11075_v39 }
 0x647   : > { %v4197_v58 = vpop.f32.mrf.mxu0  ;;  %v4238_v43 = vpop.f32.mrf.mxu1 }
 0x648   : > { %v4198_v28 = vadd.f32 %v4197_v58, %v10304_v53  ;;  %v4239_v24 = vadd.f32 %v4238_v43, %v10306_v22 }
 0x649   : > { %v4199_v12 = vpop.f32.mrf.mxu0  ;;  %v4240_v42 = vpop.f32.mrf.mxu1 }
 0x64a   : > { %v4200_v31 = vadd.f32 %v4199_v12, %v10314_v17  ;;  %v4241_v16 = vadd.f32 %v4240_v42, %v10316_v23 }
 0x64b   : > { %v4201_v3 = vpop.f32.mrf.mxu0  ;;  %v4242_v47 = vpop.f32.mrf.mxu1 }
 0x64d   : > { %v4202_v0 = vpop.f32.mrf.mxu0  ;;  %v4243_v19 = vpop.f32.mrf.mxu1 }
 0x64f   : > { %v4316_v13 = vpop.f32.mrf.mxu0  ;;  %v4357_v18 = vpop.f32.mrf.mxu1 }
 0x650   : > { %v4364_v21 = vadd.f32 %v4316_v13, %v4198_v28  ;;  %v4366_v38 = vadd.f32 %v4357_v18, %v4239_v24 }
 0x651   : > { %v4318_v1 = vpop.f32.mrf.mxu0  ;;  %v4359_v49 = vpop.f32.mrf.mxu1 }
 0x652   : > { %v4365_v6 = vadd.f32 %v4318_v1, %v4200_v31  ;;  %v4367_v33 = vadd.f32 %v4359_v49, %v4241_v16 }
 0x653   : > { %v4320_v4 = vpop.f32.mrf.mxu0  ;;  %v4361_v10 = vpop.f32.mrf.mxu1 }
 0x655   : > { %v4321_v48 = vpop.f32.mrf.mxu0  ;;  %v4362_v32 = vpop.f32.mrf.mxu1 }
 0x657   : > { %v4407_v56 = vpop.f32.mrf.mxu0  ;;  %v4448_v53 = vpop.f32.mrf.mxu1 }
 0x658   : > { %v4455_v9 = vadd.f32 %v4407_v56, %v4364_v21  ;;  %v4457_v22 = vadd.f32 %v4448_v53, %v4366_v38 }
 0x659   : > { %v4409_v34 = vpop.f32.mrf.mxu0  ;;  %v4450_v54 = vpop.f32.mrf.mxu1 }
 0x65a   : > { %v4456_v44 = vadd.f32 %v4409_v34, %v4365_v6  ;;  %v4458_v17 = vadd.f32 %v4450_v54, %v4367_v33 }
 0x65b   : > { %v4411_v46 = vpop.f32.mrf.mxu0  ;;  %v4452_v23 = vpop.f32.mrf.mxu1 }
 0x65d   : > { %v4412_v7 = vpop.f32.mrf.mxu0  ;;  %v4453_v57 = vpop.f32.mrf.mxu1 }
 0x65f   : > { %v4530_v5 = vpop.f32.mrf.mxu0  ;;  %v4571_v52 = vpop.f32.mrf.mxu1 }
 0x660   : > { %v4578_v26 = vadd.f32 %v4530_v5, %v4455_v9  ;;  %v4580_v55 = vadd.f32 %v4571_v52, %v4457_v22 }
 0x661   : > { %v4532_v15 = vpop.f32.mrf.mxu0  ;;  %v4573_v20 = vpop.f32.mrf.mxu1 }
 0x662   : > { %v4579_v35 = vadd.f32 %v4532_v15, %v4456_v44  ;;  %v4581_v37 = vadd.f32 %v4573_v20, %v4458_v17 }
 0x663   : > { %v4534_v50 = vpop.f32.mrf.mxu0  ;;  %v4575_v63 = vpop.f32.mrf.mxu1 }
 0x665   : > { %v4535_v8 = vpop.f32.mrf.mxu0  ;;  %v4576_v51 = vpop.f32.mrf.mxu1 }
 0x667   : > { %v4621_v58 = vpop.f32.mrf.mxu0  ;;  %v4662_v43 = vpop.f32.mrf.mxu1 }
 0x668   : > { %v4669_v12 = vadd.f32 %v4621_v58, %v4578_v26  ;;  %v4671_v42 = vadd.f32 %v4662_v43, %v4580_v55 }
 0x669   : > { %v4623_v3 = vpop.f32.mrf.mxu0  ;;  %v4664_v47 = vpop.f32.mrf.mxu1 }
 0x66a   : > { %v4670_v0 = vadd.f32 %v4623_v3, %v4579_v35  ;;  %v4672_v19 = vadd.f32 %v4664_v47, %v4581_v37 }
 0x66b   : > { %v4625_v28 = vpop.f32.mrf.mxu0  ;;  %v4666_v24 = vpop.f32.mrf.mxu1 }
 0x66d   : > { %v4626_v13 = vpop.f32.mrf.mxu0  ;;  %v4667_v18 = vpop.f32.mrf.mxu1 }
 0x66f   : > { %v4744_v31 = vpop.f32.mrf.mxu0  ;;  %v4785_v16 = vpop.f32.mrf.mxu1 }
 0x670   : > { %v10481_v21 = vadd.f32 %v4744_v31, %v4669_v12  ;;  %v4794_v38 = vadd.f32 %v4785_v16, %v4671_v42 }
 0x671   : > { %v4746_v1 = vpop.f32.mrf.mxu0  ;;  %v4787_v49 = vpop.f32.mrf.mxu1 }
 0x672   : > { %v10483_v6 = vadd.f32 %v4746_v1, %v4670_v0  ;;  %v4795_v33 = vadd.f32 %v4787_v49, %v4672_v19 }
 0x673   : > { %v4748_v4 = vpop.f32.mrf.mxu0  ;;  %v4789_v10 = vpop.f32.mrf.mxu1 }
 0x675   : > { %v4749_v48 = vpop.f32.mrf.mxu0  ;;  %v4790_v32 = vpop.f32.mrf.mxu1 }
 0x677   : > { %v10485_v56 = vpop.f32.mrf.mxu0  ;;  %v4876_v53 = vpop.f32.mrf.mxu1 }
 0x678   : > { %v10487_v9 = vadd.f32 %v4876_v53, %v4794_v38 }
 0x679   : > { %v10489_v22 = vpop.f32.mrf.mxu0  ;;  %v4878_v34 = vpop.f32.mrf.mxu1 }
 0x67a   : > { %v10491_v54 = vadd.f32 %v4878_v34, %v4795_v33 }
 0x67b   : > { %v4839_v44 = vpop.f32.mrf.mxu0  ;;  %v4880_v17 = vpop.f32.mrf.mxu1 }
 0x67d   : > { %v4840_v46 = vpop.f32.mrf.mxu0  ;;  %v4881_v23 = vpop.f32.mrf.mxu1 }
 0x67f   : > { %v4946_v7 = vpop.f32.mrf.mxu0  ;;  %v4987_v57 = vpop.f32.mrf.mxu1 }
 0x681   : > { %v4948_v5 = vpop.f32.mrf.mxu0  ;;  %v4989_v52 = vpop.f32.mrf.mxu1 }
 0x683   : > { %v4950_v26 = vpop.f32.mrf.mxu0  ;;  %v4991_v55 = vpop.f32.mrf.mxu1 }
 0x685   : > { %v4951_v15 = vpop.f32.mrf.mxu0  ;;  %v4992_v20 = vpop.f32.mrf.mxu1 }
 0x687   : > { %v5037_v35 = vpop.f32.mrf.mxu0  ;;  %v5078_v37 = vpop.f32.mrf.mxu1 }
 0x689   : > { %v5039_v50 = vpop.f32.mrf.mxu0  ;;  %v5080_v63 = vpop.f32.mrf.mxu1 }
 0x68b   : > { %v5041_v8 = vpop.f32.mrf.mxu0  ;;  %v5082_v51 = vpop.f32.mrf.mxu1 }
 0x68d   : > { %v5042_v58 = vpop.f32.mrf.mxu0  ;;  %v5083_v43 = vpop.f32.mrf.mxu1 }
 0x68f   : > { %v5160_v12 = vpop.f32.mrf.mxu0  ;;  %v5201_v42 = vpop.f32.mrf.mxu1 }
 0x691   : > { %v5162_v3 = vpop.f32.mrf.mxu0  ;;  %v5203_v47 = vpop.f32.mrf.mxu1 }
 0x693   : > { %v5164_v0 = vpop.f32.mrf.mxu0  ;;  %v5205_v19 = vpop.f32.mrf.mxu1 }
 0x695   : > { %v5165_v28 = vpop.f32.mrf.mxu0  ;;  %v5206_v24 = vpop.f32.mrf.mxu1 }
 0x697   : > { %v5251_v13 = vpop.f32.mrf.mxu0  ;;  %v5292_v18 = vpop.f32.mrf.mxu1 }
 0x699   : > { %v5253_v31 = vpop.f32.mrf.mxu0  ;;  %v5294_v16 = vpop.f32.mrf.mxu1 }
 0x69b   : > { %v5255_v38 = vpop.f32.mrf.mxu0  ;;  %v5296_v1 = vpop.f32.mrf.mxu1 }
 0x69c   : > { %v4883_v38 = vadd.f32 %v10485_v56, %v10481_v21 }
 0x69d   : > { %v5256_v49 = vpop.f32.mrf.mxu0  ;;  %v5297_v33 = vpop.f32.mrf.mxu1 }
 0x69e   : > { %v4884_v33 = vadd.f32 %v10489_v22, %v10483_v6 }
 0x69f   : > { %v5374_v4 = vpop.f32.mrf.mxu0  ;;  %v5415_v10 = vpop.f32.mrf.mxu1 }
 0x6a1   : > { %v5376_v48 = vpop.f32.mrf.mxu0  ;;  %v5417_v32 = vpop.f32.mrf.mxu1 }
 0x6a3   : > { %v5378_v53 = vpop.f32.mrf.mxu0  ;;  %v5419_v34 = vpop.f32.mrf.mxu1 }
 0x6a4   : > { %v4994_v53 = vadd.f32 %v4946_v7, %v4883_v38  ;;  %v4996_v34 = vadd.f32 %v4987_v57, %v10487_v9 }
 0x6a5   : > { %v5379_v44 = vpop.f32.mrf.mxu0  ;;  %v5420_v17 = vpop.f32.mrf.mxu1 }
 0x6a7   : > { %v5465_v46 = vpop.f32.mrf.mxu0  ;;  %v5506_v23 = vpop.f32.mrf.mxu1 }
 0x6a9   : > { %v5467_v26 = vpop.f32.mrf.mxu0  ;;  %v5508_v55 = vpop.f32.mrf.mxu1 }
 0x6ab   : > { %v5469_v15 = vpop.f32.mrf.mxu0  ;;  %v5510_v20 = vpop.f32.mrf.mxu1 }
 0x6ac   : > { %v4995_v15 = vadd.f32 %v4948_v5, %v4884_v33  ;;  %v4997_v20 = vadd.f32 %v4989_v52, %v10491_v54 }
 0x6ad   : > { %v5470_v8 = vpop.f32.mrf.mxu0  ;;  %v5511_v51 = vpop.f32.mrf.mxu1 }
 0x6ae   : > { %v5085_v8 = vadd.f32 %v5037_v35, %v4994_v53  ;;  %v5087_v51 = vadd.f32 %v5078_v37, %v4996_v34  ;;  %v5086_v25 = vadd.f32 %v5039_v50, %v4995_v15  ;;  %v5088_v45 = vadd.f32 %v5080_v63, %v4997_v20 }
 0x6af   : > { %v5588_v58 = vpop.f32.mrf.mxu0  ;;  %v5629_v43 = vpop.f32.mrf.mxu1 }
 0x6b0   : > { %v5208_v21 = vadd.f32 %v5160_v12, %v5085_v8  ;;  %v5210_v56 = vadd.f32 %v5201_v42, %v5087_v51  ;;  %v5209_v40 = vadd.f32 %v5162_v3, %v5086_v25  ;;  %v5211_v6 = vadd.f32 %v5203_v47, %v5088_v45  ;;  %v5949_v8 = vpop.permute.xlu0 %5948 }
 0x6b1   : > { %v5590_v0 = vpop.f32.mrf.mxu0  ;;  %v5631_v19 = vpop.f32.mrf.mxu1 }
 0x6b2   : > { %v5299_v22 = vadd.f32 %v5251_v13, %v5208_v21  ;;  %v5301_v7 = vadd.f32 %v5292_v18, %v5210_v56  ;;  %v5300_v38 = vadd.f32 %v5253_v31, %v5209_v40  ;;  %v5302_v5 = vadd.f32 %v5294_v16, %v5211_v6 }
 0x6b3   : > { %v5592_v28 = vpop.f32.mrf.mxu0  ;;  %v5633_v24 = vpop.f32.mrf.mxu1 }
 0x6b4   : > { %v5422_v33 = vadd.f32 %v5374_v4, %v5299_v22  ;;  %v5424_v54 = vadd.f32 %v5415_v10, %v5301_v7  ;;  %v5423_v37 = vadd.f32 %v5376_v48, %v5300_v38  ;;  %v5425_v53 = vadd.f32 %v5417_v32, %v5302_v5 }
 0x6b5   : > { %v5593_v1 = vpop.f32.mrf.mxu0  ;;  %v5634_v49 = vpop.f32.mrf.mxu1 }
 0x6b6   : > { %v5513_v50 = vadd.f32 %v5465_v46, %v5422_v33  ;;  %v5515_v63 = vadd.f32 %v5506_v23, %v5424_v54  ;;  %v5514_v34 = vadd.f32 %v5467_v26, %v5423_v37  ;;  %v5516_v15 = vadd.f32 %v5508_v55, %v5425_v53  ;;  %v7863_v33 = vld [vmem:[#allocation2] sm:$0x1] }
 0x6b7   : > { %v5679_v44 = vpop.f32.mrf.mxu0  ;;  %v5720_v17 = vpop.f32.mrf.mxu1 }
 0x6b8   : > { %v5636_v25 = vadd.f32 %v5588_v58, %v5513_v50  ;;  %v5638_v45 = vadd.f32 %v5629_v43, %v5515_v63  ;;  %v5637_v13 = vadd.f32 %v5590_v0, %v5514_v34  ;;  %v5639_v18 = vadd.f32 %v5631_v19, %v5516_v15 }
 0x6b9   : > { %v5681_v28 = vpop.f32.mrf.mxu0  ;;  %v5722_v24 = vpop.f32.mrf.mxu1 }
 0x6ba   : > { %v5727_v40 = vadd.f32 %v5679_v44, %v5636_v25  ;;  %v5729_v31 = vadd.f32 %v5720_v17, %v5638_v45  ;;  %v5728_v10 = vadd.f32 %v5681_v28, %v5637_v13  ;;  %v5730_v20 = vadd.f32 %v5722_v24, %v5639_v18  ;;  %v5980_v17 = vld [vmem:[%s10952_s12] sm:$0x1] }
 0x6bb   : > { %v5683_v1 = vpop.f32.mrf.mxu0  ;;  %v5724_v49 = vpop.f32.mrf.mxu1  ;;  %8308 = vmatmul.mubr.msk.bf16.vlgmr.msra.gmra.mxu0 %vm1880_vm8, %v5980_v17  ;;  %8310 = vmatmul.mubr.msk.bf16.vlgmr.msra.gmra.mxu1 %vm1880_vm8, %v5980_v17 }
 0x6bc   : > { %6113 = vmatprep.mubr.bf16.mxu0 %v11075_v39  ;;  %6154 = vmatprep.mubr.bf16.mxu1 %v11075_v39 }
 0x6bd   : > { %v5684_v9 = vpop.f32.mrf.mxu0  ;;  %v5725_v57 = vpop.f32.mrf.mxu1 }
 0x6bf   : > { %v5802_v52 = vpop.f32.mrf.mxu0  ;;  %v5843_v35 = vpop.f32.mrf.mxu1 }
 0x6c0   : > { %v5850_v48 = vadd.f32 %v5802_v52, %v5727_v40  ;;  %v5852_v32 = vadd.f32 %v5843_v35, %v5729_v31 }
 0x6c1   : > { %v5804_v12 = vpop.f32.mrf.mxu0  ;;  %v5845_v42 = vpop.f32.mrf.mxu1 }
 0x6c2   : > { %v5851_v51 = vadd.f32 %v5804_v12, %v5728_v10  ;;  %v5853_v26 = vadd.f32 %v5845_v42, %v5730_v20 }
 0x6c3   : > { %v5806_v3 = vpop.f32.mrf.mxu0  ;;  %v5847_v47 = vpop.f32.mrf.mxu1 }
 0x6c5   : > { %v5807_v16 = vpop.f32.mrf.mxu0  ;;  %v5848_v4 = vpop.f32.mrf.mxu1 }
 0x6c7   : > { %v5893_v46 = vpop.f32.mrf.mxu0  ;;  %v5934_v23 = vpop.f32.mrf.mxu1 }
 0x6c8   : > { %v5941_v55 = vadd.f32 %v5893_v46, %v5850_v48  ;;  %v5943_v58 = vadd.f32 %v5934_v23, %v5852_v32  ;;  %v5975_v32 = vld [vmem:[%s10951_s11] sm:$0x1] }
 0x6c9   : > { %v5895_v43 = vpop.f32.mrf.mxu0  ;;  %v5936_v21 = vpop.f32.mrf.mxu1 }
 0x6ca   : > { %v5951_v56 = vadd.f32 %v5949_v8, %v5941_v55  ;;  %v5953_v0 = vadd.f32 %v5949_v8, %v5943_v58  ;;  %v5942_v19 = vadd.f32 %v5895_v43, %v5851_v51  ;;  %v5944_v44 = vadd.f32 %v5936_v21, %v5853_v26 }
 0x6cb   : > { %v5897_v28 = vpop.f32.mrf.mxu0  ;;  %v5938_v24 = vpop.f32.mrf.mxu1 }
 0x6cc   : > { %v10504_v1 = vmax.f32 %v5951_v56, 0.0  ;;  %v5952_v49 = vadd.f32 %v5949_v8, %v5942_v19  ;;  %v10508_v7 = vmax.f32 %v5953_v0, 0.0  ;;  %v5954_v57 = vadd.f32 %v5949_v8, %v5944_v44  ;;  %v11171_v28 = vld [vmem:[#allocation16_spill] sm:$0xff]  ;;  %v11172_v24 = vld [vmem:[#allocation17_spill] sm:$0xff] }
 0x6cd   : > { %v5898_v6 = vpop.f32.mrf.mxu0  ;;  %v5939_v22 = vpop.f32.mrf.mxu1 }
 0x6ce   : > { %v10510_v9 = vmax.f32 %v5952_v49, 0.0  ;;  %5959 = vrot.lane.b32.xlu1 %v10504_v1, %s11067_s1  ;;  %v10518_v5 = vmax.f32 %v5954_v57, 0.0  ;;  %v8315_v57 = vld [vmem:[%s10951_s11 + $0x1] sm:$0x1] }
 0x6d0   : > { %5961 = vrot.lane.b32.xlu0 %v10510_v9, %s11067_s1  ;;  %v8524_v38 = vpack.i.bf16 %v10508_v7, %v10510_v9 }
 0x6d2   : > { %5963 = vrot.lane.b32.xlu1 %v10508_v7, %s11067_s1 }
 0x6d4   : > { %5965 = vrot.lane.b32.xlu0 %v10518_v5, %s11067_s1 }
 0x6d6   : > { %6163 = vrot.lane.b32.xlu1 %v10504_v1, %s8730_s27 }
 0x6d8   : > { %6169 = vrot.lane.b32.xlu0 %v10518_v5, %s8730_s27 }
 0x6da   : > { %8525 = vrot.lane.b32.xlu1 %v8524_v38, %s8730_s27 }
 0x6dc   : > { %6377 = vrot.lane.b32.xlu0 %v10504_v1, %s11068_s26 }
 0x6de   : > { %6379 = vrot.lane.b32.xlu1 %v10510_v9, %s11068_s26 }
 0x6e0   : > { %6381 = vrot.lane.b32.xlu0 %v10508_v7, %s11068_s26 }
 0x6e2   : > { %6383 = vrot.lane.b32.xlu1 %v10518_v5, %s11068_s26  ;;  %s473_s26 = sand.u32 1, %s8714_s16  }
 0x6e4   : > { %6591 = vrot.lane.b32.xlu0 %v10504_v1, %s8731_s28 }
 0x6e6   : > { %6593 = vrot.lane.b32.xlu1 %v10510_v9, %s8731_s28 }
 0x6e8   : > { %6595 = vrot.lane.b32.xlu0 %v10508_v7, %s8731_s28 }
 0x6ea   : > { %6597 = vrot.lane.b32.xlu1 %v10518_v5, %s8731_s28 }
 0x6ec   : > { %7007 = vrot.lane.b32.xlu0 %v10504_v1, %s8732_s29 }
 0x6ee   : > { %7009 = vrot.lane.b32.xlu1 %v10510_v9, %s8732_s29 }
 0x6f0   : > { %7011 = vrot.lane.b32.xlu0 %v10508_v7, %s8732_s29 }
 0x6f2   : > { %7013 = vrot.lane.b32.xlu1 %v10518_v5, %s8732_s29 }
 0x6f4   : > { %7221 = vrot.lane.b32.xlu0 %v10504_v1, %s11069_s30 }
 0x6f6   : > { %7223 = vrot.lane.b32.xlu1 %v10510_v9, %s11069_s30 }
 0x6f8   : > { %7225 = vrot.lane.b32.xlu0 %v10508_v7, %s11069_s30 }
 0x6fa   : > { %7227 = vrot.lane.b32.xlu1 %v10518_v5, %s11069_s30  ;;  %s8031_s30 = sshll.u32 %s473_s26, 2 }
 0x6fb   : > { %s475_s0 = scalar_lea.vmem [#allocation6], %s8031_s30 }
 0x6fc   : > { %7435 = vrot.lane.b32.xlu0 %v10504_v1, %s11070_s19  ;;  %s7954_s22 = sshll.u32 %s475_s0, 4  ;;  %s7955_s22 = int_to_ptr.vmem [resolvable:$true] %s7954_s22 }
 0x6fe   : > { %7441 = vrot.lane.b32.xlu1 %v10518_v5, %s11070_s19 }
 0x700   : > { %8530 = vrot.lane.b32.xlu0 %v8524_v38, %s11070_s19  ;;  %s8400_s19 = sshll.u32 %s8839_s13, 6  ;;  %s8662_s13 = sshll.u32 %s8739_s2, 4  ;;  %s8663_s13 = int_to_ptr.vmem [resolvable:$false] %s8662_s13 }
 0x701   : > { %s7952_s29 = scalar_lea.hbm %s10954_s14, %s8400_s19  ;;  %s8664_s30 = scalar_lea.vmem %s8663_s13, 128 }
 0x702   : > { %7649 = vrot.lane.b32.xlu1 %v10504_v1, %s8735_s21  ;;  %p8665_p11 = scmp.lt.s32.totalorder %s7955_s22, %s8663_s13 }
 0x704   : > { %7651 = vrot.lane.b32.xlu0 %v10510_v9, %s8735_s21 }
 0x706   : > { %7653 = vrot.lane.b32.xlu1 %v10508_v7, %s8735_s21 }
 0x708   : > { %7655 = vrot.lane.b32.xlu0 %v10518_v5, %s8735_s21  ;;  %s7940_s21 = scalar_lea.sflag [#allocation5], %s473_s26 }
 0x70a   : > { %7866 = vperm.xlu1 %8467, %v7863_v33  }
 0x740   : > { %v5960_v54 = vpop.permute.xlu1 %5959 }
 0x742   : > { %v5962_v52 = vpop.permute.xlu0 %5961 }
 0x743   : > { %v5969_v35 = vsel %vm1226_vm2, %v5960_v54, %v5962_v52 }
 0x744   : > { %v5972_v37 = vmul.f32 %v9003_v29, %v5969_v35  ;;  %v5964_v53 = vpop.permute.xlu1 %5963 }
 0x745   : > { %v5968_v50 = vsel %vm1226_vm2, %v5962_v52, %v5964_v53 }
 0x746   : > { %v5977_v63 = vpack.c.bf16 %v5972_v37, %v5972_v37  ;;  %v5973_v12 = vmul.f32 %v9006_v30, %v5968_v50  ;;  %v5966_v42 = vpop.permute.xlu0 %5965  ;;  %v11174_v50 = vld [vmem:[#allocation19_spill] sm:$0xff] }
 0x747   : > { %v5967_v34 = vsel %vm1226_vm2, %v5964_v53, %v5966_v42  ;;  %v5970_v15 = vsel %vm1226_vm2, %v5966_v42, %v5960_v54  ;;  %v11173_v53 = vld [vmem:[#allocation18_spill] sm:$0xff]  ;;  %v8320_v42 = vld [vmem:[%s10952_s12 + $0x1] sm:$0x1]  ;;  %vm7881_vm2 = vcmask 1040384  }
 0x748   : > { %v5978_v25 = vpack.c.bf16 %v5973_v12, %v5973_v12  ;;  %v5971_v45 = vmul.f32 %v9085_v61, %v5970_v15  ;;  %v5974_v3 = vmul.f32 %v9090_v62, %v5967_v34  ;;  %8311 = vmatprep.subr.msk.bf16.mxu0 %vm1884_vm7, %v5977_v63  ;;  %v6164_v47 = vpop.permute.xlu1 %6163 }
 0x74a   : > { %v5976_v13 = vpack.c.bf16 %v5971_v45, %v5971_v45  ;;  %v5979_v18 = vpack.c.bf16 %v5974_v3, %v5974_v3  ;;  %v6170_v40 = vpop.permute.xlu0 %6169  ;;  %v6076_v61 = vsel %vm1884_vm7, %v5978_v25, 0 }
 0x74b   : > { %v6174_v31 = vsel %vm1291_vm10, %v6170_v40, %v6164_v47 }
 0x74c   : > { %v6175_v16 = vmul.f32 %v9135_v36, %v6174_v31  ;;  %8313 = vmatprep.subr.msk.bf16.mxu1 %vm1884_vm7, %v5979_v18  ;;  %v8526_v4 = vpop.permute.xlu1 %8525  ;;  %v6070_v10 = vsel %vm1884_vm7, %v5976_v13, 0  ;;  %v11175_v13 = vld [vmem:[#allocation24_spill] sm:$0xff]  ;;  %v11176_v18 = vld [vmem:[#allocation25_spill] sm:$0xff] }
 0x74d   : > { %v8528_v20 = vunpack.i.h.bf16 %v8526_v4  ;;  %v8527_v48 = vunpack.i.l.bf16 %v8526_v4  ;;  %6096 = vmatpush1.bf16.msra.mxu0 %v6070_v10  ;;  %6137 = vmatpush1.bf16.msra.mxu1 %v6076_v61  ;;  %v8325_v10 = vld [vmem:[%s10951_s11 + $0x2] sm:$0x1] }
 0x74e   : > { %v6181_v46 = vpack.c.bf16 %v6175_v16, %v6175_v16  ;;  %v6378_v23 = vpop.permute.xlu0 %6377 }
 0x74f   : > { %v6171_v36 = vsel %vm1291_vm10, %v8528_v20, %v6170_v40  ;;  %v6173_v8 = vsel %vm1291_vm10, %v6164_v47, %v8527_v48  ;;  %v6172_v51 = vsel %vm1291_vm10, %v8527_v48, %v8528_v20 }
 0x750   : > { %v6184_v26 = vpack.c.bf16 %v6171_v36, %v6171_v36  ;;  %v6182_v55 = vpack.c.bf16 %v6173_v8, %v6173_v8  ;;  %8312 = vmatmul.mubr.msk.bf16.vlgmr.msra.gmra.mxu0 %vm1880_vm8, %v5975_v32  ;;  %8314 = vmatmul.mubr.msk.bf16.vlgmr.msra.gmra.mxu1 %vm1880_vm8, %v5975_v32  ;;  %v6380_v58 = vpop.permute.xlu1 %6379  ;;  %v6183_v43 = vpack.c.bf16 %v6172_v51, %v6172_v51  ;;  %v6189_v0 = vsel %vm1884_vm7, %v6181_v46, 0  ;;  %v11178_v46 = vld [vmem:[#allocation27_spill] sm:$0xff]  ;;  %v8330_v8 = vld [vmem:[%s10952_s12 + $0x2] sm:$0x1] }
 0x751   : > { %v6387_v21 = vsel %vm1359_vm13, %v6378_v23, %v6380_v58  ;;  %6232 = vmatprep.mubr.bf16.mxu0 %v11075_v39  ;;  %6273 = vmatprep.mubr.bf16.mxu1 %v11075_v39 }
 0x752   : > { %v6382_v56 = vpop.permute.xlu0 %6381  ;;  %8316 = vmatprep.subr.msk.bf16.mxu0 %vm1884_vm7, %v6182_v55  ;;  %8318 = vmatprep.subr.msk.bf16.mxu1 %vm1884_vm7, %v6184_v26  ;;  %v6195_v19 = vsel %vm1884_vm7, %v6183_v43, 0  ;;  %v6390_v44 = vmul.f32 %v9079_v59, %v6387_v21  ;;  %v11179_v55 = vld [vmem:[#allocation28_spill] sm:$0xff] }
 0x753   : > { %6215 = vmatpush1.bf16.msra.mxu0 %v6189_v0  ;;  %6256 = vmatpush1.bf16.msra.mxu1 %v6195_v19  ;;  %v6386_v49 = vsel %vm1359_vm13, %v6380_v58, %v6382_v56  ;;  %v11180_v58 = vld [vmem:[#allocation29_spill] sm:$0xff]  ;;  %v8335_v43 = vld [vmem:[%s10951_s11 + $0x3] sm:$0x1]  ;;  %v6812_v0 = vpack.c.bf16 %v10510_v9, %v10510_v9  ;;  %v6814_v19 = vpack.c.bf16 %v10518_v5, %v10518_v5 }
 0x754   : > { %v6384_v17 = vpop.permute.xlu1 %6383  ;;  %8321 = vmatprep.subr.msk.bf16.mxu0 %vm1884_vm7, %v11171_v28  ;;  %8323 = vmatprep.subr.msk.bf16.mxu1 %vm1884_vm7, %v11172_v24  ;;  %v6396_v33 = vpack.c.bf16 %v6390_v44, %v6390_v44  ;;  %v6391_v54 = vmul.f32 %v9082_v60, %v6386_v49  ;;  %v11181_v44 = vld [vmem:[#allocation30_spill] sm:$0xff]  ;;  %v6811_v28 = vpack.c.bf16 %v10504_v1, %v10504_v1  ;;  %v8340_v5 = vld [vmem:[%s10952_s12 + $0x3] sm:$0x1] }
 0x755   : > { %v6385_v6 = vsel %vm1359_vm13, %v6382_v56, %v6384_v17  ;;  %v6388_v22 = vsel %vm1359_vm13, %v6384_v17, %v6378_v23  ;;  %v11182_v17 = vld [vmem:[#allocation31_spill] sm:$0xff]  ;;  %v6813_v9 = vpack.c.bf16 %v10508_v7, %v10508_v7 }
 0x756   : > { %v6392_v38 = vmul.f32 %v9105_v14, %v6385_v6  ;;  %v6389_v52 = vmul.f32 %v9100_v11, %v6388_v22  ;;  %v6592_v63 = vpop.permute.xlu0 %6591  ;;  %v6397_v11 = vpack.c.bf16 %v6391_v54, %v6391_v54  ;;  %v6819_v6 = vsel %vm1884_vm7, %v6811_v28, 0 }
 0x757   : > { %v6825_v22 = vsel %vm1884_vm7, %v6813_v9, 0 }
 0x758   : > { %v6398_v35 = vpack.c.bf16 %v6392_v38, %v6392_v38  ;;  %v6594_v37 = vpop.permute.xlu1 %6593  ;;  %8317 = vmatmul.mubr.msk.bf16.vlgmr.msra.gmra.mxu0 %vm1880_vm8, %v8315_v57  ;;  %8319 = vmatmul.mubr.msk.bf16.vlgmr.msra.gmra.mxu1 %vm1880_vm8, %v8315_v57  ;;  %v6395_v12 = vpack.c.bf16 %v6389_v52, %v6389_v52  ;;  %v6409_v3 = vsel %vm1884_vm7, %v6397_v11, 0  ;;  %v11183_v57 = vld [vmem:[#allocation32_spill] sm:$0xff]  ;;  %v11184_v38 = vld [vmem:[#allocation33_spill] sm:$0xff] }
 0x759   : > { %6306 = vmatpush1.bf16.msra.mxu0 %v11173_v53  ;;  %6347 = vmatpush1.bf16.msra.mxu1 %v11174_v50  ;;  %v6601_v15 = vsel %vm1427_vm1, %v6592_v63, %v6594_v37 }
 0x75a   : > { %8326 = vmatprep.subr.msk.bf16.mxu0 %vm1884_vm7, %v6396_v33  ;;  %8328 = vmatprep.subr.msk.bf16.mxu1 %vm1884_vm7, %v6398_v35  ;;  %v6596_v25 = vpop.permute.xlu0 %6595  ;;  %v6403_v45 = vsel %vm1884_vm7, %v6395_v12, 0  ;;  %v6604_v40 = vmul.f32 %v9003_v29, %v6601_v15 }
 0x75b   : > { %6323 = vmatprep.mubr.bf16.mxu0 %v11075_v39  ;;  %6364 = vmatprep.mubr.bf16.mxu1 %v11075_v39  ;;  %v6600_v16 = vsel %vm1427_vm1, %v6594_v37, %v6596_v25  ;;  %v8345_v37 = vld [vmem:[%s10951_s11 + $0x4] sm:$0x1] }
 0x75c   : > { %v6598_v34 = vpop.permute.xlu1 %6597  ;;  %v6610_v61 = vpack.c.bf16 %v6604_v40, %v6604_v40  ;;  %v6605_v20 = vmul.f32 %v9006_v30, %v6600_v16 }
 0x75d   : > { %v6599_v47 = vsel %vm1427_vm1, %v6596_v25, %v6598_v34  ;;  %v6602_v4 = vsel %vm1427_vm1, %v6598_v34, %v6592_v63  ;;  %v11186_v34 = vld [vmem:[#allocation35_spill] sm:$0xff] }
 0x75e   : > { %v6606_v31 = vmul.f32 %v9090_v62, %v6599_v47  ;;  %v6603_v48 = vmul.f32 %v11136_v27, %v6602_v4  ;;  %v11177_v62 = vld [vmem:[#allocation26_spill] sm:$0xff]  ;;  %v6611_v23 = vpack.c.bf16 %v6605_v20, %v6605_v20  ;;  %v7008_v21 = vpop.permute.xlu0 %7007  ;;  %v8350_v47 = vld [vmem:[%s10952_s12 + $0x4] sm:$0x1] }
 0x760   : > { %8322 = vmatmul.mubr.msk.bf16.vlgmr.msra.gmra.mxu0 %vm1880_vm8, %v8320_v42  ;;  %8324 = vmatmul.mubr.msk.bf16.vlgmr.msra.gmra.mxu1 %vm1880_vm8, %v8320_v42  ;;  %v6612_v32 = vpack.c.bf16 %v6606_v31, %v6606_v31  ;;  %v6609_v36 = vpack.c.bf16 %v6603_v48, %v6603_v48  ;;  %v6623_v26 = vsel %vm1884_vm7, %v6611_v23, 0  ;;  %v7010_v56 = vpop.permute.xlu1 %7009  ;;  %v11188_v23 = vld [vmem:[#allocation37_spill] sm:$0xff] }
 0x761   : > { %6429 = vmatpush1.bf16.msra.mxu0 %v6403_v45  ;;  %6470 = vmatpush1.bf16.msra.mxu1 %v6409_v3  ;;  %v7017_v33 = vsel %vm1550_vm5, %v7008_v21, %v7010_v56 }
 0x762   : > { %8331 = vmatprep.subr.msk.bf16.mxu0 %vm1884_vm7, %v11175_v13  ;;  %8333 = vmatprep.subr.msk.bf16.mxu1 %vm1884_vm7, %v11176_v18  ;;  %v6617_v51 = vsel %vm1884_vm7, %v6609_v36, 0  ;;  %v7012_v24 = vpop.permute.xlu0 %7011  ;;  %v7019_v53 = vmul.f32 %v11145_v41, %v7017_v33 }
 0x763   : > { %6446 = vmatprep.mubr.bf16.mxu0 %v11075_v39  ;;  %6487 = vmatprep.mubr.bf16.mxu1 %v11075_v39  ;;  %v7016_v1 = vsel %vm1550_vm5, %v7010_v56, %v7012_v24 }
 0x764   : > { %v7014_v49 = vpop.permute.xlu1 %7013  ;;  %v7020_v54 = vmul.f32 %v9079_v59, %v7016_v1  ;;  %v7025_v45 = vpack.c.bf16 %v7019_v53, %v7019_v53  ;;  %v11192_v1 = vld [vmem:[#allocation40_spill] sm:$0xff] }
 0x765   : > { %v7018_v7 = vsel %vm1550_vm5, %v7014_v49, %v7008_v21  ;;  %v7015_v35 = vsel %vm1550_vm5, %v7012_v24, %v7014_v49 }
 0x766   : > { %v7022_v52 = vmul.f32 %v9105_v14, %v7018_v7  ;;  %v7026_v50 = vpack.c.bf16 %v7020_v54, %v7020_v54  ;;  %v7021_v63 = vmul.f32 %v9082_v60, %v7015_v35  ;;  %v7222_v12 = vpop.permute.xlu0 %7221  ;;  %v11185_v14 = vld [vmem:[#allocation34_spill] sm:$0xff]  ;;  %v11193_v7 = vld [vmem:[#allocation41_spill] sm:$0xff]  ;;  %v8365_v54 = vld [vmem:[%s10951_s11 + $0x6] sm:$0x1] }
 0x768   : > { %8327 = vmatmul.mubr.msk.bf16.vlgmr.msra.gmra.mxu0 %vm1880_vm8, %v8325_v10  ;;  %8329 = vmatmul.mubr.msk.bf16.vlgmr.msra.gmra.mxu1 %vm1880_vm8, %v8325_v10  ;;  %v7028_v11 = vpack.c.bf16 %v7022_v52, %v7022_v52  ;;  %v7224_v42 = vpop.permute.xlu1 %7223  ;;  %v7027_v3 = vpack.c.bf16 %v7021_v63, %v7021_v63  ;;  %v7033_v10 = vsel %vm1884_vm7, %v7025_v45, 0  ;;  %v11196_v63 = vld [vmem:[#allocation44_spill] sm:$0xff] }
 0x769   : > { %6520 = vmatpush1.bf16.msra.mxu0 %v11177_v62  ;;  %6561 = vmatpush1.bf16.msra.mxu1 %v11178_v46  ;;  %v11187_v46 = vld [vmem:[#allocation36_spill] sm:$0xff]  ;;  %v7231_v36 = vsel %vm1618_vm15, %v7222_v12, %v7224_v42 }
 0x76a   : > { %8336 = vmatprep.subr.msk.bf16.mxu0 %vm1884_vm7, %v6610_v61  ;;  %8338 = vmatprep.subr.msk.bf16.mxu1 %vm1884_vm7, %v6612_v32  ;;  %v7226_v40 = vpop.permute.xlu0 %7225  ;;  %v7039_v61 = vsel %vm1884_vm7, %v7027_v3, 0 }
 0x76b   : > { %6537 = vmatprep.mubr.bf16.mxu0 %v11075_v39  ;;  %6578 = vmatprep.mubr.bf16.mxu1 %v11075_v39  ;;  %v7230_v20 = vsel %vm1618_vm15, %v7224_v42, %v7226_v40 }
 0x76c   : > { %v7228_v31 = vpop.permute.xlu1 %7227 }
 0x76d   : > { %v7232_v48 = vsel %vm1618_vm15, %v7228_v31, %v7222_v12 }
 0x770   : > { %8332 = vmatmul.mubr.msk.bf16.vlgmr.msra.gmra.mxu0 %vm1880_vm8, %v8330_v8  ;;  %8334 = vmatmul.mubr.msk.bf16.vlgmr.msra.gmra.mxu1 %vm1880_vm8, %v8330_v8  ;;  %v7234_v8 = vmul.f32 %v9003_v29, %v7230_v20  ;;  %v11190_v29 = vld [vmem:[#allocation38_spill] sm:$0xff]  ;;  %v7442_v28 = vpop.permute.xlu1 %7441 }
 0x771   : > { %6643 = vmatpush1.bf16.msra.mxu0 %v6617_v51  ;;  %6684 = vmatpush1.bf16.msra.mxu1 %v6623_v26  ;;  %v11189_v51 = vld [vmem:[#allocation13_spill] sm:$0xff] }
 0x772   : > { %8341 = vmatprep.subr.msk.bf16.mxu0 %vm1884_vm7, %v11179_v55  ;;  %8343 = vmatprep.subr.msk.bf16.mxu1 %vm1884_vm7, %v11180_v58  ;;  %v7236_v26 = vmul.f32 %v11189_v51, %v7232_v48  ;;  %v7229_v55 = vsel %vm1618_vm15, %v7226_v40, %v7228_v31  ;;  %v8355_v58 = vld [vmem:[%s10951_s11 + $0x5] sm:$0x1]  ;;  %v7240_v21 = vpack.c.bf16 %v7234_v8, %v7234_v8  ;;  %v11199_v48 = vld [vmem:[#allocation15_spill] sm:$0xff] }
 0x773   : > { %6660 = vmatprep.mubr.bf16.mxu0 %v11075_v39  ;;  %6701 = vmatprep.mubr.bf16.mxu1 %v11075_v39  ;;  %v7235_v56 = vmul.f32 %v9006_v30, %v7229_v55 }
 0x775   : > { %v7241_v30 = vpack.c.bf16 %v7235_v56, %v7235_v56  ;;  %v8385_v56 = vld [vmem:[%s10951_s11 + $0x8] sm:$0x1] }
 0x777   : > { %v7253_v24 = vsel %vm1884_vm7, %v7241_v30, 0 }
 0x778   : > { %8337 = vmatmul.mubr.msk.bf16.vlgmr.msra.gmra.mxu0 %vm1880_vm8, %v8335_v43  ;;  %8339 = vmatmul.mubr.msk.bf16.vlgmr.msra.gmra.mxu1 %vm1880_vm8, %v8335_v43  ;;  %v7233_v43 = vmul.f32 %v11136_v27, %v7231_v36 }
 0x779   : > { %6734 = vmatpush1.bf16.msra.mxu0 %v11181_v44  ;;  %6775 = vmatpush1.bf16.msra.mxu1 %v11182_v17  ;;  %v11191_v44 = vld [vmem:[#allocation39_spill] sm:$0xff]  ;;  %v8360_v17 = vld [vmem:[%s10952_s12 + $0x5] sm:$0x1] }
 0x77a   : > { %8346 = vmatprep.subr.msk.bf16.mxu0 %vm1884_vm7, %v6812_v0  ;;  %8348 = vmatprep.subr.msk.bf16.mxu1 %vm1884_vm7, %v6814_v19  ;;  %v7242_v0 = vpack.c.bf16 %v7236_v26, %v7236_v26  ;;  %v7436_v19 = vpop.permute.xlu0 %7435  ;;  %v7239_v27 = vpack.c.bf16 %v7233_v43, %v7233_v43  ;;  %v11201_v26 = vld [vmem:[#allocation48_spill] sm:$0xff]  ;;  %v11202_v43 = vld [vmem:[#allocation49_spill] sm:$0xff] }
 0x77b   : > { %6751 = vmatprep.mubr.bf16.mxu0 %v11075_v39  ;;  %6792 = vmatprep.mubr.bf16.mxu1 %v11075_v39  ;;  %v10741_v15 = vpop.f32.mrf.mxu0  ;;  %v10743_v25 = vpop.f32.mrf.mxu1  ;;  %v7446_v49 = vsel %vm1686_vm3, %v7442_v28, %v7436_v19 }
 0x77d   : > { %v10748_v13 = vpop.f32.mrf.mxu0  ;;  %v10750_v18 = vpop.f32.mrf.mxu1 }
 0x77e   : > { %v8531_v9 = vpop.permute.xlu0 %8530 }
 0x77f   : > { %v6022_v16 = vpop.f32.mrf.mxu0  ;;  %v6063_v4 = vpop.f32.mrf.mxu1 }
 0x780   : > { %8342 = vmatmul.mubr.msk.bf16.vlgmr.msra.gmra.mxu0 %vm1880_vm8, %v8340_v5  ;;  %8344 = vmatmul.mubr.msk.bf16.vlgmr.msra.gmra.mxu1 %vm1880_vm8, %v8340_v5  ;;  %v7247_v5 = vsel %vm1884_vm7, %v7239_v27, 0  ;;  %v11197_v4 = vld [vmem:[#allocation45_spill] sm:$0xff] }
 0x781   : > { %6845 = vmatpush1.bf16.msra.mxu0 %v6819_v6  ;;  %6886 = vmatpush1.bf16.msra.mxu1 %v6825_v22  ;;  %v6023_v32 = vpop.f32.mrf.mxu0  ;;  %v6064_v62 = vpop.f32.mrf.mxu1  ;;  %v8533_v6 = vunpack.i.h.bf16 %v8531_v9  ;;  %v8532_v22 = vunpack.i.l.bf16 %v8531_v9 }
 0x782   : > { %8351 = vmatprep.subr.msk.bf16.mxu0 %vm1884_vm7, %v11183_v57  ;;  %8353 = vmatprep.subr.msk.bf16.mxu1 %vm1884_vm7, %v11184_v38  ;;  %v11194_v57 = vld [vmem:[#allocation14_spill] sm:$0xff]  ;;  %v7652_v53 = vpop.permute.xlu0 %7651 }
 0x783   : > { %6862 = vmatprep.mubr.bf16.mxu0 %v11075_v39  ;;  %6903 = vmatprep.mubr.bf16.mxu1 %v11075_v39  ;;  %v7450_v38 = vmul.f32 %v11194_v57, %v7446_v49  ;;  %v7444_v33 = vsel %vm1686_vm3, %v8532_v22, %v8533_v6  ;;  %v7443_v12 = vsel %vm1686_vm3, %v8533_v6, %v7442_v28 }
 0x784   : > { %v7454_v35 = vpack.c.bf16 %v7444_v33, %v7444_v33 }
 0x785   : > { %v7456_v52 = vpack.c.bf16 %v7450_v38, %v7450_v38 }
 0x786   : > { %v7656_v3 = vpop.permute.xlu0 %7655 }
 0x788   : > { %8347 = vmatmul.mubr.msk.bf16.vlgmr.msra.gmra.mxu0 %vm1880_vm8, %v8345_v37  ;;  %8349 = vmatmul.mubr.msk.bf16.vlgmr.msra.gmra.mxu1 %vm1880_vm8, %v8345_v37  ;;  %v7650_v37 = vpop.permute.xlu1 %7649 }
 0x789   : > { %6936 = vmatpush1.bf16.msra.mxu0 %v11185_v14  ;;  %6977 = vmatpush1.bf16.msra.mxu1 %v11186_v34  ;;  %v7455_v14 = vpack.c.bf16 %v7443_v12, %v7443_v12  ;;  %v8370_v34 = vld [vmem:[%s10952_s12 + $0x6] sm:$0x1]  ;;  %v7660_v16 = vsel %vm1754_vm6, %v7656_v3, %v7650_v37 }
 0x78a   : > { %8356 = vmatprep.subr.msk.bf16.mxu0 %vm1884_vm7, %v7026_v50  ;;  %8358 = vmatprep.subr.msk.bf16.mxu1 %vm1884_vm7, %v7028_v11  ;;  %v11195_v50 = vld [vmem:[#allocation43_spill] sm:$0xff]  ;;  %v7445_v11 = vsel %vm1686_vm3, %v7436_v19, %v8532_v22  ;;  %v7664_v32 = vmul.f32 %v11199_v48, %v7660_v16 }
 0x78b   : > { %6953 = vmatprep.mubr.bf16.mxu0 %v11075_v39  ;;  %6994 = vmatprep.mubr.bf16.mxu1 %v11075_v39  ;;  %v7453_v42 = vpack.c.bf16 %v7445_v11, %v7445_v11  ;;  %v7467_v40 = vsel %vm1884_vm7, %v7455_v14, 0  ;;  %v11205_v19 = vld [vmem:[#allocation51_spill] sm:$0xff] }
 0x78c   : > { %v7654_v45 = vpop.permute.xlu1 %7653  ;;  %v7670_v51 = vpack.c.bf16 %v7664_v32, %v7664_v32 }
 0x78d   : > { %v7658_v31 = vsel %vm1754_vm6, %v7652_v53, %v7654_v45  ;;  %v7657_v62 = vsel %vm1754_vm6, %v7654_v45, %v7656_v3 }
 0x78e   : > { %v7662_v20 = vmul.f32 %v9079_v59, %v7658_v31  ;;  %v7663_v8 = vmul.f32 %v9082_v60, %v7657_v62  ;;  %v11200_v59 = vld [vmem:[#allocation47_spill] sm:$0xff]  ;;  %v8380_v60 = vld [vmem:[%s10952_s12 + $0x7] sm:$0x1] }
 0x790   : > { %8352 = vmatmul.mubr.msk.bf16.vlgmr.msra.gmra.mxu0 %vm1880_vm8, %v8350_v47  ;;  %8354 = vmatmul.mubr.msk.bf16.vlgmr.msra.gmra.mxu1 %vm1880_vm8, %v8350_v47  ;;  %v7461_v47 = vsel %vm1884_vm7, %v7453_v42, 0  ;;  %v7668_v36 = vpack.c.bf16 %v7662_v20, %v7662_v20 }
 0x791   : > { %7059 = vmatpush1.bf16.msra.mxu0 %v7033_v10  ;;  %7100 = vmatpush1.bf16.msra.mxu1 %v7039_v61  ;;  %v11198_v10 = vld [vmem:[#allocation42_spill] sm:$0xff]  ;;  %v7659_v61 = vsel %vm1754_vm6, %v7650_v37, %v7652_v53 }
 0x792   : > { %8361 = vmatprep.subr.msk.bf16.mxu0 %vm1884_vm7, %v11187_v46  ;;  %8363 = vmatprep.subr.msk.bf16.mxu1 %vm1884_vm7, %v11188_v23  ;;  %v8375_v46 = vld [vmem:[%s10951_s11 + $0x7] sm:$0x1]  ;;  %v7661_v23 = vmul.f32 %v11145_v41, %v7659_v61  ;;  %v7669_v41 = vpack.c.bf16 %v7663_v8, %v7663_v8 }
 0x793   : > { %7076 = vmatprep.mubr.bf16.mxu0 %v11075_v39  ;;  %7117 = vmatprep.mubr.bf16.mxu1 %v11075_v39 }
 0x794   : > { %v7667_v2 = vpack.c.bf16 %v7661_v23, %v7661_v23 }
 0x796   : > { %v7675_v55 = vsel %vm1884_vm7, %v7667_v2, 0 }
 0x798   : > { %8357 = vmatmul.mubr.msk.bf16.vlgmr.msra.gmra.mxu0 %vm1880_vm8, %v8355_v58  ;;  %8359 = vmatmul.mubr.msk.bf16.vlgmr.msra.gmra.mxu1 %vm1880_vm8, %v8355_v58  ;;  %v7681_v58 = vsel %vm1884_vm7, %v7669_v41, 0 }
 0x799   : > { %7150 = vmatpush1.bf16.msra.mxu0 %v11190_v29  ;;  %7191 = vmatpush1.bf16.msra.mxu1 %v11191_v44  ;;  %v8390_v29 = vld [vmem:[%s10952_s12 + $0x8] sm:$0x1] }
 0x79a   : > { %8366 = vmatprep.subr.msk.bf16.mxu0 %vm1884_vm7, %v7240_v21  ;;  %8368 = vmatprep.subr.msk.bf16.mxu1 %vm1884_vm7, %v7242_v0  ;;  %v11203_v21 = vld [vmem:[#allocation46_spill] sm:$0xff] }
 0x79b   : > { %7167 = vmatprep.mubr.bf16.mxu0 %v11075_v39  ;;  %7208 = vmatprep.mubr.bf16.mxu1 %v11075_v39  ;;  %v11204_v0 = vld [vmem:[#allocation50_spill] sm:$0xff] }
 0x7a0   : > { %8362 = vmatmul.mubr.msk.bf16.vlgmr.msra.gmra.mxu0 %vm1880_vm8, %v8360_v17  ;;  %8364 = vmatmul.mubr.msk.bf16.vlgmr.msra.gmra.mxu1 %vm1880_vm8, %v8360_v17 }
 0x7a1   : > { %7273 = vmatpush1.bf16.msra.mxu0 %v7247_v5  ;;  %7314 = vmatpush1.bf16.msra.mxu1 %v7253_v24 }
 0x7a2   : > { %8371 = vmatprep.subr.msk.bf16.mxu0 %vm1884_vm7, %v11192_v1  ;;  %8373 = vmatprep.subr.msk.bf16.mxu1 %vm1884_vm7, %v11193_v7 }
 0x7a3   : > { %7290 = vmatprep.mubr.bf16.mxu0 %v11075_v39  ;;  %7331 = vmatprep.mubr.bf16.mxu1 %v11075_v39 }
 0x7a8   : > { %8367 = vmatmul.mubr.msk.bf16.vlgmr.msra.gmra.mxu0 %vm1880_vm8, %v8365_v54  ;;  %8369 = vmatmul.mubr.msk.bf16.vlgmr.msra.gmra.mxu1 %vm1880_vm8, %v8365_v54 }
 0x7a9   : > { %7364 = vmatpush1.bf16.msra.mxu0 %v11195_v50  ;;  %7405 = vmatpush1.bf16.msra.mxu1 %v11196_v63 }
 0x7aa   : > { %8376 = vmatprep.subr.msk.bf16.mxu0 %vm1884_vm7, %v7454_v35  ;;  %8378 = vmatprep.subr.msk.bf16.mxu1 %vm1884_vm7, %v7456_v52 }
 0x7ab   : > { %7381 = vmatprep.mubr.bf16.mxu0 %v11075_v39  ;;  %7422 = vmatprep.mubr.bf16.mxu1 %v11075_v39 }
 0x7b0   : > { %8372 = vmatmul.mubr.msk.bf16.vlgmr.msra.gmra.mxu0 %vm1880_vm8, %v8370_v34  ;;  %8374 = vmatmul.mubr.msk.bf16.vlgmr.msra.gmra.mxu1 %vm1880_vm8, %v8370_v34 }
 0x7b1   : > { %7487 = vmatpush1.bf16.msra.mxu0 %v7461_v47  ;;  %7528 = vmatpush1.bf16.msra.mxu1 %v7467_v40 }
 0x7b2   : > { %8381 = vmatprep.subr.msk.bf16.mxu0 %vm1884_vm7, %v11197_v4  ;;  %8383 = vmatprep.subr.msk.bf16.mxu1 %vm1884_vm7, %v11198_v10 }
 0x7b3   : > { %7504 = vmatprep.mubr.bf16.mxu0 %v11075_v39  ;;  %7545 = vmatprep.mubr.bf16.mxu1 %v11075_v39 }
 0x7b8   : > { %8377 = vmatmul.mubr.msk.bf16.vlgmr.msra.gmra.mxu0 %vm1880_vm8, %v8375_v46  ;;  %8379 = vmatmul.mubr.msk.bf16.vlgmr.msra.gmra.mxu1 %vm1880_vm8, %v8375_v46 }
 0x7b9   : > { %7578 = vmatpush1.bf16.msra.mxu0 %v11200_v59  ;;  %7619 = vmatpush1.bf16.msra.mxu1 %v11201_v26 }
 0x7ba   : > { %8386 = vmatprep.subr.msk.bf16.mxu0 %vm1884_vm7, %v7668_v36  ;;  %8388 = vmatprep.subr.msk.bf16.mxu1 %vm1884_vm7, %v7670_v51 }
 0x7bb   : > { %7595 = vmatprep.mubr.bf16.mxu0 %v11075_v39  ;;  %7636 = vmatprep.mubr.bf16.mxu1 %v11075_v39 }
 0x7c0   : > { %8382 = vmatmul.mubr.msk.bf16.vlgmr.msra.gmra.mxu0 %vm1880_vm8, %v8380_v60  ;;  %8384 = vmatmul.mubr.msk.bf16.vlgmr.msra.gmra.mxu1 %vm1880_vm8, %v8380_v60 }
 0x7c1   : > { %7701 = vmatpush1.bf16.msra.mxu0 %v7675_v55  ;;  %7742 = vmatpush1.bf16.msra.mxu1 %v7681_v58 }
 0x7c2   : > { %8391 = vmatprep.subr.msk.bf16.mxu0 %vm1884_vm7, %v11202_v43  ;;  %8393 = vmatprep.subr.msk.bf16.mxu1 %vm1884_vm7, %v11203_v21 }
 0x7c3   : > { %7718 = vmatprep.mubr.bf16.mxu0 %v11075_v39  ;;  %7759 = vmatprep.mubr.bf16.mxu1 %v11075_v39 }
 0x7c8   : > { %8387 = vmatmul.mubr.msk.bf16.vlgmr.msra.gmra.mxu0 %vm1880_vm8, %v8385_v56  ;;  %8389 = vmatmul.mubr.msk.bf16.vlgmr.msra.gmra.mxu1 %vm1880_vm8, %v8385_v56 }
 0x7c9   : > { %7792 = vmatpush1.bf16.msra.mxu0 %v11204_v0  ;;  %7833 = vmatpush1.bf16.msra.mxu1 %v11205_v19 }
 0x7ca   : > { %7809 = vmatprep.mubr.bf16.mxu0 %v11075_v39  ;;  %7850 = vmatprep.mubr.bf16.mxu1 %v11075_v39 }
 0x7d0   : > { %8392 = vmatmul.mubr.msk.bf16.vlgmr.msra.gmra.mxu0 %vm1880_vm8, %v8390_v29  ;;  %8394 = vmatmul.mubr.msk.bf16.vlgmr.msra.gmra.mxu1 %vm1880_vm8, %v8390_v29 }
 0x810   : > { %v6115_v44 = vpop.f32.mrf.mxu0  ;;  %v6156_v27 = vpop.f32.mrf.mxu1 }
 0x811   : > { %v6116_v49 = vadd.f32 %v6115_v44, %v10741_v15  ;;  %v6157_v39 = vadd.f32 %v6156_v27, %v10743_v25 }
 0x812   : > { %v6117_v30 = vpop.f32.mrf.mxu0  ;;  %v6158_v17 = vpop.f32.mrf.mxu1 }
 0x813   : > { %v6118_v1 = vadd.f32 %v6117_v30, %v10748_v13  ;;  %v6159_v7 = vadd.f32 %v6158_v17, %v10750_v18 }
 0x814   : > { %v6119_v28 = vpop.f32.mrf.mxu0  ;;  %v6160_v9 = vpop.f32.mrf.mxu1 }
 0x816   : > { %v6120_v5 = vpop.f32.mrf.mxu0  ;;  %v6161_v24 = vpop.f32.mrf.mxu1 }
 0x818   : > { %v6234_v6 = vpop.f32.mrf.mxu0  ;;  %v6275_v22 = vpop.f32.mrf.mxu1 }
 0x819   : > { %v6282_v57 = vadd.f32 %v6234_v6, %v6116_v49  ;;  %v6284_v38 = vadd.f32 %v6275_v22, %v6157_v39 }
 0x81a   : > { %v6236_v33 = vpop.f32.mrf.mxu0  ;;  %v6277_v54 = vpop.f32.mrf.mxu1 }
 0x81b   : > { %v6283_v52 = vadd.f32 %v6236_v33, %v6118_v1  ;;  %v6285_v35 = vadd.f32 %v6277_v54, %v6159_v7 }
 0x81c   : > { %v6238_v37 = vpop.f32.mrf.mxu0  ;;  %v6279_v53 = vpop.f32.mrf.mxu1 }
 0x81e   : > { %v6239_v50 = vpop.f32.mrf.mxu0  ;;  %v6280_v63 = vpop.f32.mrf.mxu1 }
 0x820   : > { %v6325_v11 = vpop.f32.mrf.mxu0  ;;  %v6366_v15 = vpop.f32.mrf.mxu1 }
 0x821   : > { %v6373_v12 = vadd.f32 %v6325_v11, %v6282_v57  ;;  %v6375_v25 = vadd.f32 %v6366_v15, %v6284_v38 }
 0x822   : > { %v6327_v42 = vpop.f32.mrf.mxu0  ;;  %v6368_v14 = vpop.f32.mrf.mxu1 }
 0x823   : > { %v6374_v34 = vadd.f32 %v6327_v42, %v6283_v52  ;;  %v6376_v13 = vadd.f32 %v6368_v14, %v6285_v35 }
 0x824   : > { %v6329_v45 = vpop.f32.mrf.mxu0  ;;  %v6370_v18 = vpop.f32.mrf.mxu1 }
 0x826   : > { %v6330_v3 = vpop.f32.mrf.mxu0  ;;  %v6371_v47 = vpop.f32.mrf.mxu1 }
 0x828   : > { %v6448_v40 = vpop.f32.mrf.mxu0  ;;  %v6489_v31 = vpop.f32.mrf.mxu1 }
 0x829   : > { %v6496_v16 = vadd.f32 %v6448_v40, %v6373_v12  ;;  %v6498_v4 = vadd.f32 %v6489_v31, %v6375_v25 }
 0x82a   : > { %v6450_v10 = vpop.f32.mrf.mxu0  ;;  %v6491_v61 = vpop.f32.mrf.mxu1 }
 0x82b   : > { %v6497_v20 = vadd.f32 %v6450_v10, %v6374_v34  ;;  %v6499_v48 = vadd.f32 %v6491_v61, %v6376_v13 }
 0x82c   : > { %v6452_v32 = vpop.f32.mrf.mxu0  ;;  %v6493_v62 = vpop.f32.mrf.mxu1 }
 0x82e   : > { %v6453_v46 = vpop.f32.mrf.mxu0  ;;  %v6494_v23 = vpop.f32.mrf.mxu1 }
 0x830   : > { %v6539_v36 = vpop.f32.mrf.mxu0  ;;  %v6580_v8 = vpop.f32.mrf.mxu1 }
 0x831   : > { %v6587_v51 = vadd.f32 %v6539_v36, %v6496_v16  ;;  %v6589_v59 = vadd.f32 %v6580_v8, %v6498_v4 }
 0x832   : > { %v6541_v26 = vpop.f32.mrf.mxu0  ;;  %v6582_v2 = vpop.f32.mrf.mxu1 }
 0x833   : > { %v6588_v41 = vadd.f32 %v6541_v26, %v6497_v20  ;;  %v6590_v60 = vadd.f32 %v6582_v2, %v6499_v48 }
 0x834   : > { %v6543_v55 = vpop.f32.mrf.mxu0  ;;  %v6584_v58 = vpop.f32.mrf.mxu1 }
 0x836   : > { %v6544_v43 = vpop.f32.mrf.mxu0  ;;  %v6585_v21 = vpop.f32.mrf.mxu1 }
 0x838   : > { %v6662_v56 = vpop.f32.mrf.mxu0  ;;  %v6703_v0 = vpop.f32.mrf.mxu1 }
 0x839   : > { %v10885_v19 = vadd.f32 %v6662_v56, %v6587_v51  ;;  %v10887_v29 = vadd.f32 %v6703_v0, %v6589_v59 }
 0x83a   : > { %v6664_v44 = vpop.f32.mrf.mxu0  ;;  %v6705_v27 = vpop.f32.mrf.mxu1 }
 0x83b   : > { %v10889_v30 = vadd.f32 %v6664_v44, %v6588_v41  ;;  %v10891_v17 = vadd.f32 %v6705_v27, %v6590_v60 }
 0x83c   : > { %v6666_v28 = vpop.f32.mrf.mxu0  ;;  %v6707_v9 = vpop.f32.mrf.mxu1 }
 0x83e   : > { %v6667_v5 = vpop.f32.mrf.mxu0  ;;  %v6708_v24 = vpop.f32.mrf.mxu1 }
 0x840   : > { %v6753_v49 = vpop.f32.mrf.mxu0  ;;  %v6794_v39 = vpop.f32.mrf.mxu1 }
 0x842   : > { %v10893_v6 = vpop.f32.mrf.mxu0  ;;  %v10895_v22 = vpop.f32.mrf.mxu1 }
 0x844   : > { %v6757_v1 = vpop.f32.mrf.mxu0  ;;  %v6798_v7 = vpop.f32.mrf.mxu1 }
 0x846   : > { %v6758_v57 = vpop.f32.mrf.mxu0  ;;  %v6799_v38 = vpop.f32.mrf.mxu1 }
 0x847   : > { %v6801_v57 = vadd.f32 %v6753_v49, %v10885_v19  ;;  %v6803_v38 = vadd.f32 %v6794_v39, %v10887_v29 }
 0x848   : > { %v6864_v33 = vpop.f32.mrf.mxu0  ;;  %v6905_v54 = vpop.f32.mrf.mxu1 }
 0x84a   : > { %v6866_v52 = vpop.f32.mrf.mxu0  ;;  %v6907_v35 = vpop.f32.mrf.mxu1 }
 0x84c   : > { %v6868_v37 = vpop.f32.mrf.mxu0  ;;  %v6909_v53 = vpop.f32.mrf.mxu1 }
 0x84e   : > { %v6869_v50 = vpop.f32.mrf.mxu0  ;;  %v6910_v63 = vpop.f32.mrf.mxu1 }
 0x84f   : > { %v6802_v50 = vadd.f32 %v10893_v6, %v10889_v30  ;;  %v6804_v63 = vadd.f32 %v10895_v22, %v10891_v17 }
 0x850   : > { %v6955_v11 = vpop.f32.mrf.mxu0  ;;  %v6996_v15 = vpop.f32.mrf.mxu1 }
 0x852   : > { %v6957_v12 = vpop.f32.mrf.mxu0  ;;  %v6998_v25 = vpop.f32.mrf.mxu1 }
 0x854   : > { %v6959_v42 = vpop.f32.mrf.mxu0  ;;  %v7000_v14 = vpop.f32.mrf.mxu1 }
 0x855   : > { %v6912_v42 = vadd.f32 %v6864_v33, %v6801_v57  ;;  %v6914_v14 = vadd.f32 %v6905_v54, %v6803_v38 }
 0x856   : > { %v6960_v34 = vpop.f32.mrf.mxu0  ;;  %v7001_v13 = vpop.f32.mrf.mxu1 }
 0x858   : > { %v7078_v45 = vpop.f32.mrf.mxu0  ;;  %v7119_v18 = vpop.f32.mrf.mxu1 }
 0x85a   : > { %v7080_v3 = vpop.f32.mrf.mxu0  ;;  %v7121_v47 = vpop.f32.mrf.mxu1 }
 0x85c   : > { %v7082_v40 = vpop.f32.mrf.mxu0  ;;  %v7123_v31 = vpop.f32.mrf.mxu1 }
 0x85d   : > { %v6913_v40 = vadd.f32 %v6866_v52, %v6802_v50  ;;  %v6915_v31 = vadd.f32 %v6907_v35, %v6804_v63 }
 0x85e   : > { %v7083_v16 = vpop.f32.mrf.mxu0  ;;  %v7124_v4 = vpop.f32.mrf.mxu1 }
 0x85f   : > { %v7003_v16 = vadd.f32 %v6955_v11, %v6912_v42  ;;  %v7005_v4 = vadd.f32 %v6996_v15, %v6914_v14  ;;  %v7004_v49 = vadd.f32 %v6957_v12, %v6913_v40  ;;  %v7006_v29 = vadd.f32 %v6998_v25, %v6915_v31 }
 0x860   : > { %v7169_v10 = vpop.f32.mrf.mxu0  ;;  %v7210_v61 = vpop.f32.mrf.mxu1 }
 0x861   : > { %v7126_v39 = vadd.f32 %v7078_v45, %v7003_v16  ;;  %v7127_v30 = vadd.f32 %v7080_v3, %v7004_v49  ;;  %v7129_v6 = vadd.f32 %v7121_v47, %v7006_v29 }
 0x862   : > { %v7171_v20 = vpop.f32.mrf.mxu0  ;;  %v7212_v48 = vpop.f32.mrf.mxu1 }
 0x863   : > { %v7218_v54 = vadd.f32 %v7171_v20, %v7127_v30 }
 0x864   : > { %v7173_v32 = vpop.f32.mrf.mxu0  ;;  %v7214_v62 = vpop.f32.mrf.mxu1 }
 0x865   : > { %v7128_v62 = vadd.f32 %v7119_v18, %v7005_v4 }
 0x866   : > { %v7174_v46 = vpop.f32.mrf.mxu0  ;;  %v7215_v23 = vpop.f32.mrf.mxu1 }
 0x867   : > { %v7219_v17 = vadd.f32 %v7210_v61, %v7128_v62 }
 0x868   : > { %v7292_v36 = vpop.f32.mrf.mxu0  ;;  %v7333_v8 = vpop.f32.mrf.mxu1 }
 0x869   : > { %v7342_v35 = vadd.f32 %v7333_v8, %v7219_v17 }
 0x86a   : > { %v7294_v51 = vpop.f32.mrf.mxu0  ;;  %v7335_v59 = vpop.f32.mrf.mxu1 }
 0x86c   : > { %v7296_v26 = vpop.f32.mrf.mxu0  ;;  %v7337_v2 = vpop.f32.mrf.mxu1 }
 0x86d   : > { %v7217_v26 = vadd.f32 %v7169_v10, %v7126_v39  ;;  %v7220_v2 = vadd.f32 %v7212_v48, %v7129_v6 }
 0x86e   : > { %v7297_v41 = vpop.f32.mrf.mxu0  ;;  %v7338_v60 = vpop.f32.mrf.mxu1 }
 0x86f   : > { %v7340_v52 = vadd.f32 %v7292_v36, %v7217_v26  ;;  %v7341_v41 = vadd.f32 %v7294_v51, %v7218_v54  ;;  %v7343_v60 = vadd.f32 %v7335_v59, %v7220_v2 }
 0x870   : > { %v7383_v55 = vpop.f32.mrf.mxu0  ;;  %v7424_v58 = vpop.f32.mrf.mxu1 }
 0x871   : > { %v7431_v12 = vadd.f32 %v7383_v55, %v7340_v52  ;;  %v7433_v25 = vadd.f32 %v7424_v58, %v7342_v35  ;;  %v11206_v58 = vld [vmem:[#allocation10_spill] sm:$0xff] }
 0x872   : > { %v7385_v43 = vpop.f32.mrf.mxu0  ;;  %v7426_v21 = vpop.f32.mrf.mxu1 }
 0x874   : > { %v7387_v56 = vpop.f32.mrf.mxu0  ;;  %v7428_v0 = vpop.f32.mrf.mxu1 }
 0x875   : > { %v7432_v56 = vadd.f32 %v7385_v43, %v7341_v41  ;;  %v7434_v0 = vadd.f32 %v7426_v21, %v7343_v60 }
 0x876   : > { %v7388_v44 = vpop.f32.mrf.mxu0  ;;  %v7429_v27 = vpop.f32.mrf.mxu1 }
 0x877   : > { %v7867_v44 = vpop.permute.xlu1 %7866 }
 0x878   : > { %v7506_v28 = vpop.f32.mrf.mxu0  ;;  %v7547_v9 = vpop.f32.mrf.mxu1  ;;  %v7872_v57 = vrot.slane %v7867_v44, %v11206_v58 }
 0x879   : > { %v7554_v3 = vadd.f32 %v7506_v28, %v7431_v12  ;;  %v7556_v47 = vadd.f32 %v7547_v9, %v7433_v25  ;;  %v11207_v25 = vld [vmem:[#allocation9_spill] sm:$0xff] }
 0x87a   : > { %v7508_v5 = vpop.f32.mrf.mxu0  ;;  %v7549_v24 = vpop.f32.mrf.mxu1 }
 0x87b   : > { %v7555_v27 = vadd.f32 %v7508_v5, %v7432_v56  ;;  %v7557_v20 = vadd.f32 %v7549_v24, %v7434_v0 }
 0x87c   : > { %v7510_v1 = vpop.f32.mrf.mxu0  ;;  %v7551_v7 = vpop.f32.mrf.mxu1 }
 0x87e   : > { %v7511_v37 = vpop.f32.mrf.mxu0  ;;  %v7552_v53 = vpop.f32.mrf.mxu1 }
 0x880   : > { %v7597_v34 = vpop.f32.mrf.mxu0  ;;  %v7638_v13 = vpop.f32.mrf.mxu1 }
 0x881   : > { %v7645_v48 = vadd.f32 %v7597_v34, %v7554_v3  ;;  %v7647_v36 = vadd.f32 %v7638_v13, %v7556_v47 }
 0x882   : > { %v7599_v32 = vpop.f32.mrf.mxu0  ;;  %v7640_v19 = vpop.f32.mrf.mxu1 }
 0x883   : > { %v7646_v7 = vadd.f32 %v7599_v32, %v7555_v27  ;;  %v7648_v51 = vadd.f32 %v7640_v19, %v7557_v20  ;;  %v11208_v20 = vlaneseq }
 0x884   : > { %v7601_v46 = vpop.f32.mrf.mxu0  ;;  %v7642_v23 = vpop.f32.mrf.mxu1 }
 0x885   : > { %vm7936_vm10 = vcmp.lt.s32.totalorder %v11208_v20, 512 }
 0x886   : > { %v7602_v22 = vpop.f32.mrf.mxu0  ;;  %v7643_v33 = vpop.f32.mrf.mxu1 }
 0x888   : > { %v7720_v11 = vpop.f32.mrf.mxu0  ;;  %v7761_v15 = vpop.f32.mrf.mxu1 }
 0x889   : > { %v7768_v59 = vadd.f32 %v7720_v11, %v7645_v48  ;;  %v7770_v55 = vadd.f32 %v7761_v15, %v7647_v36  ;;  %v8738_v15 = vmov 1966171168  }
 0x88a   : > { %v7722_v45 = vpop.f32.mrf.mxu0  ;;  %v7763_v18 = vpop.f32.mrf.mxu1  ;;  %v7912_v41 = vunpack.c.l.s4 %v8738_v15 }
 0x88b   : > { %v7769_v21 = vadd.f32 %v7722_v45, %v7646_v7  ;;  %v7771_v28 = vadd.f32 %v7763_v18, %v7648_v51 }
 0x88c   : > { %v7724_v10 = vpop.f32.mrf.mxu0  ;;  %v7765_v61 = vpop.f32.mrf.mxu1  ;;  %v7913_v60 = vunpack.c.0.s8 %v7912_v41 }
 0x88e   : > { %v7725_v8 = vpop.f32.mrf.mxu0  ;;  %v7766_v1 = vpop.f32.mrf.mxu1  ;;  %v7916_v45 = vsub.s32 %v7913_v60, %v11207_v25 }
 0x890   : > { %v7811_v38 = vpop.f32.mrf.mxu0  ;;  %v7852_v43 = vpop.f32.mrf.mxu1 }
 0x891   : > { %v7859_v9 = vadd.f32 %v7811_v38, %v7768_v59  ;;  %v7861_v37 = vadd.f32 %v7852_v43, %v7770_v55 }
 0x892   : > { %v7813_v53 = vpop.f32.mrf.mxu0  ;;  %v7854_v50 = vpop.f32.mrf.mxu1 }
 0x893   : > { %v7873_v5 = vadd.f32 %v7872_v57, %v7859_v9  ;;  %v7875_v24 = vadd.f32 %v7872_v57, %v7861_v37  ;;  %v7860_v63 = vadd.f32 %v7813_v53, %v7769_v21  ;;  %v7862_v42 = vadd.f32 %v7854_v50, %v7771_v28 }
 0x894   : > { %v7815_v14 = vpop.f32.mrf.mxu0  ;;  %v7856_v34 = vpop.f32.mrf.mxu1 }
 0x895   : > { %v7877_v13 = vmax.f32 %v7873_v5, 0.0  ;;  %v7879_v40 = vmax.f32 %v7875_v24, 0.0  ;;  %v7874_v31 = vadd.f32 %v7872_v57, %v7860_v63  ;;  %v7876_v16 = vadd.f32 %v7872_v57, %v7862_v42 }
 0x896   : > { %v7816_v4 = vpop.f32.mrf.mxu0  ;;  %v7857_v32 = vpop.f32.mrf.mxu1 }
 0x897   : > { %v7878_v19 = vmax.f32 %v7874_v31, 0.0  ;;  %v7880_v49 = vmax.f32 %v7876_v16, 0.0  ;;  %v7882_v29 = vsel %vm7881_vm2, %v7877_v13, -inf  ;;  %v7884_v39 = vsel %vm7881_vm2, %v7879_v40, -inf }
 0x899   : > { %v7883_v62 = vsel %vm7881_vm2, %v7878_v19, -inf  ;;  %v7885_v46 = vsel %vm7881_vm2, %v7880_v49, -inf }
 0x89a   : > { %v7886_v23 = vmax.f32 %v7882_v29, %v7883_v62  ;;  %v7887_v30 = vmax.f32 %v7884_v39, %v7885_v46 }
 0x89c   : > { %v7888_v6 = vmax.f32 %v7886_v23, %v7887_v30 }
 0x89e   : > { %7889 = vmax.xlane.f32.xlu0 %v7888_v6 }
 0x927   : > { %v7890_v26 = vpop.xlane.xlu0 %7889 }
 0x928   : > { %v7891_v17 = vrot.slane %v7890_v26, 4 }
 0x92a   : > { %v7892_v22 = vmax.f32 %v7890_v26, %v7891_v17 }
 0x92c   : > { %v7893_v33 = vrot.slane %v7892_v22, 2 }
 0x92e   : > { %v7894_v54 = vmax.f32 %v7892_v22, %v7893_v33 }
 0x930   : > { %v7895_v2 = vrot.slane %v7894_v54, 1 }
 0x932   : > { %v7896_v52 = vmax.f32 %v7894_v54, %v7895_v2 }
 0x934   : > { %8401 = vpush %v7896_v52 }
 0x965   : > { %s8402_s1 = spop %8401 }
 0x966   : > { %v7898_v35 = vstv %s8402_s1  ;;  %s8658_s1 = scalar_lea.vmem %s7955_s22, 64 }
 0x967   : > { %v7899_v11 = vmax.f32 %v7898_v35, 1e-12  ;;  %p8659_p8 = scmp.ne.s32.totalorder %s7955_s22, %s8658_s1  ;;  %p8666_p12 = scmp.lt.s32.totalorder %s8664_s30, %s8658_s1 }
 0x969   : > { %8630 = vrcp.f32 %v7899_v11  ;;  %p8660_p9 = pnand %p8659_p8, %p8856_p5  ;;  %p8667_p13 = por %p8666_p12, %p8665_p11 }
 0x96b   : > { %p8661_p10 = pneg %p8660_p9 }
 0x96d   : > { %p8668_p0 = pnand %p8667_p13, %p8661_p10 }
 0x976   : > { %v8631_v12 = vpop.eup %8630 }
 0x977   : > { %v7901_v18 = vmul.f32 %v8631_v12, %v7877_v13  ;;  %v7902_v56 = vmul.f32 %v8631_v12, %v7878_v19  ;;  %v7903_v0 = vmul.f32 %v8631_v12, %v7879_v40  ;;  %v7904_v3 = vmul.f32 %v8631_v12, %v7880_v49 }
 0x979   : > { %v7909_v47 = vcombine.low %v7901_v18, %v7902_v56  ;;  %v7910_v10 = vcombine.low %v7903_v0, %v7904_v3 }
 0x97b   : > { %v7917_v61 = vrot.slane %v7909_v47, %v7916_v45  ;;  %v7924_v44 = vrot.slane %v7910_v10, %v7916_v45 }
 0x97d   : > { %v7925_v27 = vcombine.low %v7917_v61, %v7924_v44 }
 0x97f   : > { %v7932_v48 = vrot.slane %v7925_v27, %v7916_v45 }
 0x981   : > { %7938 = vst.msk [vmem:[%s475_s0] sm:$0xf] %vm7936_vm10, %v7932_v48 }
 0x982   : > { %8671 = shalt.err (!%p8668_p0)
}
 0x983   : > { %s8672_s3 = scalar_lea.hbm %s7952_s29, 64  ;;  %s8676_s0 = scalar_lea.hbm %s10954_s14, 128 }
 0x984   : > { %p8673_p1 = scmp.ne.s32.totalorder %s7952_s29, %s8672_s3  ;;  %p8677_p4 = scmp.lt.s32.totalorder %s7952_s29, %s10954_s14 }
 0x985   : > { %p8678_p7 = scmp.lt.s32.totalorder %s8676_s0, %s8672_s3 }
 0x986   : > { %p8674_p2 = pnand %p8673_p1, %p8856_p5 }
 0x987   : > { %p8679_p6 = por %p8678_p7, %p8677_p4 }
 0x988   : > { %p8675_p3 = pneg %p8674_p2 }
 0x98a   : > { %p8680_p8 = pnand %p8679_p6, %p8675_p3 }
 0x98c   : > { %8683 = shalt.err (!%p8680_p8)
}
 0x98d   : > { %8407 = dma.vmem_to_hbm [thread:$0]  (%p8856_p5), %s7955_s22, 64, %s7952_s29, %s7940_s21  }
 0x98e PF: > { %p8419_p9 = scmp.ge.s32.totalorder %s8722_s18, 2  ;;  %s7966_s2 = sand.u32 1, %s8710_s15  }
 0x98f   : > { %p11209_p10 = scmp.ne.s32.totalorder %s11046_s25, 0  ;;  %s7967_s1 = scalar_lea.sflag [#allocation5], %s7966_s2 }
 0x991   : > { %p8414_p11 = pnand %p8419_p9, %p11209_p10 }
 0x993   : > { %p8415_p12 = pneg %p8414_p11 }
 0x995   : > { %8705 = dma.done.wait (%p8415_p12), %s7967_s1, 64  }
 0x996   : > { %8707 = vsyncadd (%p8415_p12), %s7967_s1, 4294967232  ;;  %p27_p13 = scmp.ge.s32.totalorder %s8843_s20, 4   ;;  %s11210_s15 = smov %s8714_s16 }
 0x997   : > { %s11211_s16 = smov %s8718_s17  ;;  %s11212_s17 = smov %s8854_s23 }
 0x998   : > { %s11213_s18 = smov %s8843_s20  ;;  %29 = sbr.rel (!%p27_p13) target bundleno = 9 (0x9), region = 172 }
 0x99d   :  { %7972 = vsyncpa [#allocation4], 1 }
 0x99e   :  { %7974 = vsyncpa [#allocation4 + $0x1], 1 }
 0x99f   :  { %7975 = vsyncpa [#allocation5], 1 }
 0x9a0   :  { %7977 = vsyncpa [#allocation5 + $0x1], 1 }

</bundles_post_ra>
